<compile_context>
chip_gen: v7x
topology: tpu7x:2x2x1
jax: 0.10.0
libtpu: 0.0.40
codegen_flags: <defaults>
</compile_context>

<pallas_src>
import functools
from math import sqrt

import jax
import jax.numpy as jnp
from jax.experimental import pallas as pl
from jax.experimental.pallas import tpu as pltpu

NEG_SLOPE = 0.2


# ---------------------------------------------------------------------------
# Fused kernel: one grid step = one batch element.
#   x_ref    : (Cin,  Sp + 2M)  bf16   margin-padded, flattened padded volume
#   w1_ref   : (Cmid, K1^3*Cin) bf16   EqualLR-scaled, matmul-ready
#   b1_ref   : (Cmid, 1)        f32
#   w2_ref   : (Cout, K2^3*Cmid) bf16
#   b2_ref   : (Cout, 1)        f32
#   mask_ref : (1, Sp)          f32    1 on interior (valid) positions, 0 on ring
#   o_ref    : (Cout, Sp)       f32    output on the padded grid (interior valid)
#   col1/col2: VMEM im2col scratches; hpad_ref: margin-padded intermediate.
# ---------------------------------------------------------------------------
def _fused_conv_block_kernel(x_ref, w1_ref, b1_ref, w2_ref, b2_ref, mask_ref,
                             o_ref, col1_ref, hpad_ref, col2_ref,
                             *, offs1, offs2, c_in, c_mid, sp, margin):
    # ----- stage 1: conv1 (single matmul over im2col) + bias + LeakyReLU -----
    for t, o in enumerate(offs1):
        s = margin + o                      # static python int offset
        col1_ref[t * c_in:(t + 1) * c_in, :] = x_ref[:, s:s + sp]
    h = jnp.dot(w1_ref[...], col1_ref[...],
                preferred_element_type=jnp.float32)          # (Cmid, Sp) f32
    h = h + b1_ref[...]
    h = jnp.where(h > 0, h, NEG_SLOPE * h)
    # zero the border ring -> becomes conv2's zero padding on the same grid
    h = h * mask_ref[...]

    hpad_ref[...] = jnp.zeros(hpad_ref.shape, hpad_ref.dtype)
    hpad_ref[:, margin:margin + sp] = h.astype(hpad_ref.dtype)

    # ----- stage 2: conv2 + bias + LeakyReLU ---------------------------------
    for t, o in enumerate(offs2):
        s = margin + o
        col2_ref[t * c_mid:(t + 1) * c_mid, :] = hpad_ref[:, s:s + sp]
    y = jnp.dot(w2_ref[...], col2_ref[...],
                preferred_element_type=jnp.float32)          # (Cout, Sp) f32
    y = y + b2_ref[...]
    y = jnp.where(y > 0, y, NEG_SLOPE * y)
    o_ref[...] = y.astype(o_ref.dtype)


# ---------------------------------------------------------------------------
# Wrapper: layout/padding/EqualLR glue + pallas_call.
# ---------------------------------------------------------------------------
@functools.partial(jax.jit, static_argnums=(3, 6))
def conv_block_forward(x_ncdhw, w1, b1, pad1, w2, b2, pad2):
    N, Cin, D, H, W = x_ncdhw.shape
    Cmid, Cin_w, K1, _, _ = w1.shape
    Cout, Cmid_w, K2, _, _ = w2.shape
    assert Cin == Cin_w and Cmid == Cmid_w
    # fused same-size-conv requirement (default ConvBlock: k=3, pad=1)
    assert 2 * pad1 == K1 - 1 and 2 * pad2 == K2 - 1 and pad2 <= pad1, \
        "fused kernel supports 'same' convolutions (padding == (kernel-1)//2)"

    Dp, Hp, Wp = D + 2 * pad1, H + 2 * pad1, W + 2 * pad1
    Sp = Dp * Hp * Wp                       # flattened padded spatial volume

    # static per-tap lane offsets on the flattened padded grid
    offs1 = tuple(((kd - pad1) * Hp + (kh - pad1)) * Wp + (kw - pad1)
                  for kd in range(K1) for kh in range(K1) for kw in range(K1))
    offs2 = tuple(((kd - pad2) * Hp + (kh - pad2)) * Wp + (kw - pad2)
                  for kd in range(K2) for kh in range(K2) for kw in range(K2))
    M = max(max(abs(o) for o in offs1), max(abs(o) for o in offs2))
    Wtot = Sp + 2 * M

    # EqualLR scaling + 2-D matmul weights (row order = (kd,kh,kw,c)) -- glue
    s1 = sqrt(2.0 / (Cin * K1 ** 3))
    s2 = sqrt(2.0 / (Cmid * K2 ** 3))
    w1m = jnp.transpose(w1 * s1, (0, 2, 3, 4, 1)).reshape(
        Cmid, K1 ** 3 * Cin).astype(jnp.bfloat16)
    w2m = jnp.transpose(w2 * s2, (0, 2, 3, 4, 1)).reshape(
        Cout, K2 ** 3 * Cmid).astype(jnp.bfloat16)
    b1m = b1.reshape(Cmid, 1).astype(jnp.float32)
    b2m = b2.reshape(Cout, 1).astype(jnp.float32)

    # spatial zero-pad, flatten, add lane margin (glue)
    xpad = jnp.pad(x_ncdhw, ((0, 0), (0, 0),
                             (pad1, pad1), (pad1, pad1), (pad1, pad1)))
    xflat = xpad.reshape(N, Cin, Sp)
    xin = jnp.pad(xflat, ((0, 0), (0, 0), (M, M))).astype(jnp.bfloat16)

    # interior mask: 1 on valid output positions of the padded grid, 0 on ring
    mask = jnp.pad(jnp.ones((D, H, W), jnp.float32),
                   ((pad1, pad1), (pad1, pad1), (pad1, pad1))).reshape(1, Sp)

    kernel = functools.partial(_fused_conv_block_kernel,
                               offs1=offs1, offs2=offs2,
                               c_in=Cin, c_mid=Cmid, sp=Sp, margin=M)

    out_flat = pl.pallas_call(
        kernel,
        out_shape=jax.ShapeDtypeStruct((N, Cout, Sp), jnp.float32),
        grid_spec=pltpu.PrefetchScalarGridSpec(
            num_scalar_prefetch=0,
            grid=(N,),
            in_specs=[
                pl.BlockSpec((None, Cin, Wtot), lambda n: (n, 0, 0)),
                pl.BlockSpec((Cmid, K1 ** 3 * Cin), lambda n: (0, 0)),
                pl.BlockSpec((Cmid, 1), lambda n: (0, 0)),
                pl.BlockSpec((Cout, K2 ** 3 * Cmid), lambda n: (0, 0)),
                pl.BlockSpec((Cout, 1), lambda n: (0, 0)),
                pl.BlockSpec((1, Sp), lambda n: (0, 0)),
            ],
            out_specs=pl.BlockSpec((None, Cout, Sp), lambda n: (n, 0, 0)),
            scratch_shapes=[
                pltpu.VMEM((K1 ** 3 * Cin, Sp), jnp.bfloat16),   # col1
                pltpu.VMEM((Cmid, Wtot), jnp.bfloat16),          # padded interm.
                pltpu.VMEM((K2 ** 3 * Cmid, Sp), jnp.bfloat16),  # col2
            ],
        ),
        compiler_params=pltpu.CompilerParams(
            dimension_semantics=("parallel",),
            vmem_limit_bytes=32 * 1024 * 1024),
    )(xin, w1m, b1m, w2m, b2m, mask)

    # back to NCDHW: keep only interior (valid) positions of the padded grid
    out = out_flat.reshape(N, Cout, Dp, Hp, Wp)[
        :, :, pad1:pad1 + D, pad1:pad1 + H, pad1:pad1 + W]
    return out


# ---------------------------------------------------------------------------
# ConvBlock(in_channel, out_channel, kernel_size, padding)  — default path
#   conv1 = EqualConv3d(in,  out, k1, pad1) + LeakyReLU(0.2)
#   conv2 = EqualConv3d(out, out, k2, pad2) + LeakyReLU(0.2)
# ---------------------------------------------------------------------------
class ConvBlockPallas:
    def __init__(self, in_channel, out_channel, kernel_size, padding,
                 kernel_size2=None, padding2=None, key=None):
        k1 = kernel_size
        k2 = kernel_size if kernel_size2 is None else kernel_size2
        self.pad1 = padding
        self.pad2 = padding if padding2 is None else padding2

        key = jax.random.PRNGKey(0) if key is None else key
        kw1, kw2 = jax.random.split(key)
        # EqualConv3d: conv.weight.data.normal_(), conv.bias.data.zero_()
        self.w1 = jax.random.normal(kw1, (out_channel, in_channel, k1, k1, k1),
                                    dtype=jnp.float32)
        self.b1 = jnp.zeros((out_channel,), dtype=jnp.float32)
        self.w2 = jax.random.normal(kw2, (out_channel, out_channel, k2, k2, k2),
                                    dtype=jnp.float32)
        self.b2 = jnp.zeros((out_channel,), dtype=jnp.float32)

    def __call__(self, x_ncdhw):
        return conv_block_forward(x_ncdhw, self.w1, self.b1, self.pad1,
                                  self.w2, self.b2, self.pad2)


# ---------------------------------------------------------------------------
# Pure-JAX reference (correctness check only; mirrors the kernel's bf16
# rounding of activations/weights, f32 accumulation).
# ---------------------------------------------------------------------------
def _ref_conv_block(x, w1, b1, p1, w2, b2, p2):
    def conv_lrelu(inp, w, b, p):
        cin, k = w.shape[1], w.shape[2]
        scale = sqrt(2.0 / (cin * k * k * k))
        wb = (w * scale).astype(jnp.bfloat16).astype(jnp.float32)
        out = jax.lax.conv_general_dilated(
            inp, wb, window_strides=(1, 1, 1), padding=[(p, p)] * 3,
            dimension_numbers=("NCDHW", "OIDHW", "NCDHW"))
        out = out + b[None, :, None, None, None]
        return jnp.where(out > 0, out, NEG_SLOPE * out)

    xb = x.astype(jnp.bfloat16).astype(jnp.float32)
    h = conv_lrelu(xb, w1, b1, p1)
    h = h.astype(jnp.bfloat16).astype(jnp.float32)
    return conv_lrelu(h, w2, b2, p2)


if __name__ == "__main__":
    # Small shapes consistent with ConvBlock: N=2, Cin=4, Cout=8, spatial=8^3
    N, Cin, Cout, S, K, PAD = 2, 4, 8, 8, 3, 1

    key = jax.random.PRNGKey(0)
    kx, kp, kb1, kb2 = jax.random.split(key, 4)
    x = jax.random.normal(kx, (N, Cin, S, S, S), dtype=jnp.float32)

    block = ConvBlockPallas(Cin, Cout, K, PAD, key=kp)
    # module inits biases to zero; use nonzero biases here to exercise the
    # bias path (reviewer's correctness note)
    block.b1 = 0.3 * jax.random.normal(kb1, (Cout,), dtype=jnp.float32)
    block.b2 = 0.3 * jax.random.normal(kb2, (Cout,), dtype=jnp.float32)

    out = jax.block_until_ready(block(x))

    ref = _ref_conv_block(x, block.w1, block.b1, block.pad1,
                          block.w2, block.b2, block.pad2)
    assert out.shape == (N, Cout, S, S, S), out.shape
    max_err = float(jnp.max(jnp.abs(out - ref)))
    assert jnp.allclose(out, ref, atol=1e-2, rtol=1e-2), max_err

    print("KERNEL_OK")
</pallas_src>

<mosaic_0001>
module attributes {stable_mosaic.version = 11 : i64} {
  func.func @_fused_conv_block_kernel(%arg0: i32, %arg1: memref<1x4x1222xbf16, #tpu.memory_space<vmem>>, %arg2: memref<8x108xbf16, #tpu.memory_space<vmem>>, %arg3: memref<8x1xf32, #tpu.memory_space<vmem>>, %arg4: memref<8x216xbf16, #tpu.memory_space<vmem>>, %arg5: memref<8x1xf32, #tpu.memory_space<vmem>>, %arg6: memref<1x1000xf32, #tpu.memory_space<vmem>>, %arg7: memref<1x8x1000xf32, #tpu.memory_space<vmem>>, %arg8: memref<108x1000xbf16, #tpu.memory_space<vmem>>, %arg9: memref<8x1222xbf16, #tpu.memory_space<vmem>>, %arg10: memref<216x1000xbf16, #tpu.memory_space<vmem>>) attributes {dimension_semantics = [#tpu.dimension_semantics<parallel>], iteration_bounds = array<i64: 2>, scalar_prefetch = 0 : i64, scratch_operands = 3 : i64, tpu.core_type = #tpu.core_type<tc>, window_params = [{transform_indices = @transform_0, window_bounds = array<i64: 1, 4, 1222>}, {pipeline_mode = #tpu.pipeline_mode<synchronous>, transform_indices = @transform_1, window_bounds = array<i64: 8, 108>}, {pipeline_mode = #tpu.pipeline_mode<synchronous>, transform_indices = @transform_2, window_bounds = array<i64: 8, 1>}, {pipeline_mode = #tpu.pipeline_mode<synchronous>, transform_indices = @transform_3, window_bounds = array<i64: 8, 216>}, {pipeline_mode = #tpu.pipeline_mode<synchronous>, transform_indices = @transform_4, window_bounds = array<i64: 8, 1>}, {pipeline_mode = #tpu.pipeline_mode<synchronous>, transform_indices = @transform_5, window_bounds = array<i64: 1, 1000>}, {transform_indices = @transform_6, window_bounds = array<i64: 1, 8, 1000>}]} {
    %c0 = arith.constant 0 : index
    %c0_0 = arith.constant 0 : index
    %c0_1 = arith.constant 0 : index
    %0 = vector.load %arg1[%c0, %c0_0, %c0_1] : memref<1x4x1222xbf16, #tpu.memory_space<vmem>>, vector<1x4x1000xbf16>
    %1 = vector.shape_cast %0 : vector<1x4x1000xbf16> to vector<4x1000xbf16>
    %c0_2 = arith.constant 0 : index
    %c0_3 = arith.constant 0 : index
    %2 = vector.load %arg8[%c0_2, %c0_3] : memref<108x1000xbf16, #tpu.memory_space<vmem>>, vector<4x1000xbf16>
    tpu.vector_store %arg8[%c0_2, %c0_3], %1 {strides = array<i32>} : memref<108x1000xbf16, #tpu.memory_space<vmem>>, vector<4x1000xbf16>,
    %c0_4 = arith.constant 0 : index
    %c0_5 = arith.constant 0 : index
    %c1 = arith.constant 1 : index
    %3 = vector.load %arg1[%c0_4, %c0_5, %c1] : memref<1x4x1222xbf16, #tpu.memory_space<vmem>>, vector<1x4x1000xbf16>
    %4 = vector.shape_cast %3 : vector<1x4x1000xbf16> to vector<4x1000xbf16>
    %c4 = arith.constant 4 : index
    %c0_6 = arith.constant 0 : index
    %5 = vector.load %arg8[%c4, %c0_6] : memref<108x1000xbf16, #tpu.memory_space<vmem>>, vector<4x1000xbf16>
    tpu.vector_store %arg8[%c4, %c0_6], %4 {strides = array<i32>} : memref<108x1000xbf16, #tpu.memory_space<vmem>>, vector<4x1000xbf16>,
    %c0_7 = arith.constant 0 : index
    %c0_8 = arith.constant 0 : index
    %c2 = arith.constant 2 : index
    %6 = vector.load %arg1[%c0_7, %c0_8, %c2] : memref<1x4x1222xbf16, #tpu.memory_space<vmem>>, vector<1x4x1000xbf16>
    %7 = vector.shape_cast %6 : vector<1x4x1000xbf16> to vector<4x1000xbf16>
    %c8 = arith.constant 8 : index
    %c0_9 = arith.constant 0 : index
    %8 = vector.load %arg8[%c8, %c0_9] : memref<108x1000xbf16, #tpu.memory_space<vmem>>, vector<4x1000xbf16>
    tpu.vector_store %arg8[%c8, %c0_9], %7 {strides = array<i32>} : memref<108x1000xbf16, #tpu.memory_space<vmem>>, vector<4x1000xbf16>,
    %c0_10 = arith.constant 0 : index
    %c0_11 = arith.constant 0 : index
    %c10 = arith.constant 10 : index
    %9 = vector.load %arg1[%c0_10, %c0_11, %c10] : memref<1x4x1222xbf16, #tpu.memory_space<vmem>>, vector<1x4x1000xbf16>
    %10 = vector.shape_cast %9 : vector<1x4x1000xbf16> to vector<4x1000xbf16>
    %c12 = arith.constant 12 : index
    %c0_12 = arith.constant 0 : index
    %11 = vector.load %arg8[%c12, %c0_12] : memref<108x1000xbf16, #tpu.memory_space<vmem>>, vector<4x1000xbf16>
    tpu.vector_store %arg8[%c12, %c0_12], %10 {strides = array<i32>} : memref<108x1000xbf16, #tpu.memory_space<vmem>>, vector<4x1000xbf16>,
    %c0_13 = arith.constant 0 : index
    %c0_14 = arith.constant 0 : index
    %c11 = arith.constant 11 : index
    %12 = vector.load %arg1[%c0_13, %c0_14, %c11] : memref<1x4x1222xbf16, #tpu.memory_space<vmem>>, vector<1x4x1000xbf16>
    %13 = vector.shape_cast %12 : vector<1x4x1000xbf16> to vector<4x1000xbf16>
    %c16 = arith.constant 16 : index
    %c0_15 = arith.constant 0 : index
    %14 = vector.load %arg8[%c16, %c0_15] : memref<108x1000xbf16, #tpu.memory_space<vmem>>, vector<4x1000xbf16>
    tpu.vector_store %arg8[%c16, %c0_15], %13 {strides = array<i32>} : memref<108x1000xbf16, #tpu.memory_space<vmem>>, vector<4x1000xbf16>,
    %c0_16 = arith.constant 0 : index
    %c0_17 = arith.constant 0 : index
    %c12_18 = arith.constant 12 : index
    %15 = vector.load %arg1[%c0_16, %c0_17, %c12_18] : memref<1x4x1222xbf16, #tpu.memory_space<vmem>>, vector<1x4x1000xbf16>
    %16 = vector.shape_cast %15 : vector<1x4x1000xbf16> to vector<4x1000xbf16>
    %c20 = arith.constant 20 : index
    %c0_19 = arith.constant 0 : index
    %17 = vector.load %arg8[%c20, %c0_19] : memref<108x1000xbf16, #tpu.memory_space<vmem>>, vector<4x1000xbf16>
    tpu.vector_store %arg8[%c20, %c0_19], %16 {strides = array<i32>} : memref<108x1000xbf16, #tpu.memory_space<vmem>>, vector<4x1000xbf16>,
    %c0_20 = arith.constant 0 : index
    %c0_21 = arith.constant 0 : index
    %c20_22 = arith.constant 20 : index
    %18 = vector.load %arg1[%c0_20, %c0_21, %c20_22] : memref<1x4x1222xbf16, #tpu.memory_space<vmem>>, vector<1x4x1000xbf16>
    %19 = vector.shape_cast %18 : vector<1x4x1000xbf16> to vector<4x1000xbf16>
    %c24 = arith.constant 24 : index
    %c0_23 = arith.constant 0 : index
    %20 = vector.load %arg8[%c24, %c0_23] : memref<108x1000xbf16, #tpu.memory_space<vmem>>, vector<4x1000xbf16>
    tpu.vector_store %arg8[%c24, %c0_23], %19 {strides = array<i32>} : memref<108x1000xbf16, #tpu.memory_space<vmem>>, vector<4x1000xbf16>,
    %c0_24 = arith.constant 0 : index
    %c0_25 = arith.constant 0 : index
    %c21 = arith.constant 21 : index
    %21 = vector.load %arg1[%c0_24, %c0_25, %c21] : memref<1x4x1222xbf16, #tpu.memory_space<vmem>>, vector<1x4x1000xbf16>
    %22 = vector.shape_cast %21 : vector<1x4x1000xbf16> to vector<4x1000xbf16>
    %c28 = arith.constant 28 : index
    %c0_26 = arith.constant 0 : index
    %23 = vector.load %arg8[%c28, %c0_26] : memref<108x1000xbf16, #tpu.memory_space<vmem>>, vector<4x1000xbf16>
    tpu.vector_store %arg8[%c28, %c0_26], %22 {strides = array<i32>} : memref<108x1000xbf16, #tpu.memory_space<vmem>>, vector<4x1000xbf16>,
    %c0_27 = arith.constant 0 : index
    %c0_28 = arith.constant 0 : index
    %c22 = arith.constant 22 : index
    %24 = vector.load %arg1[%c0_27, %c0_28, %c22] : memref<1x4x1222xbf16, #tpu.memory_space<vmem>>, vector<1x4x1000xbf16>
    %25 = vector.shape_cast %24 : vector<1x4x1000xbf16> to vector<4x1000xbf16>
    %c32 = arith.constant 32 : index
    %c0_29 = arith.constant 0 : index
    %26 = vector.load %arg8[%c32, %c0_29] : memref<108x1000xbf16, #tpu.memory_space<vmem>>, vector<4x1000xbf16>
    tpu.vector_store %arg8[%c32, %c0_29], %25 {strides = array<i32>} : memref<108x1000xbf16, #tpu.memory_space<vmem>>, vector<4x1000xbf16>,
    %c0_30 = arith.constant 0 : index
    %c0_31 = arith.constant 0 : index
    %c100 = arith.constant 100 : index
    %27 = vector.load %arg1[%c0_30, %c0_31, %c100] : memref<1x4x1222xbf16, #tpu.memory_space<vmem>>, vector<1x4x1000xbf16>
    %28 = vector.shape_cast %27 : vector<1x4x1000xbf16> to vector<4x1000xbf16>
    %c36 = arith.constant 36 : index
    %c0_32 = arith.constant 0 : index
    %29 = vector.load %arg8[%c36, %c0_32] : memref<108x1000xbf16, #tpu.memory_space<vmem>>, vector<4x1000xbf16>
    tpu.vector_store %arg8[%c36, %c0_32], %28 {strides = array<i32>} : memref<108x1000xbf16, #tpu.memory_space<vmem>>, vector<4x1000xbf16>,
    %c0_33 = arith.constant 0 : index
    %c0_34 = arith.constant 0 : index
    %c101 = arith.constant 101 : index
    %30 = vector.load %arg1[%c0_33, %c0_34, %c101] : memref<1x4x1222xbf16, #tpu.memory_space<vmem>>, vector<1x4x1000xbf16>
    %31 = vector.shape_cast %30 : vector<1x4x1000xbf16> to vector<4x1000xbf16>
    %c40 = arith.constant 40 : index
    %c0_35 = arith.constant 0 : index
    %32 = vector.load %arg8[%c40, %c0_35] : memref<108x1000xbf16, #tpu.memory_space<vmem>>, vector<4x1000xbf16>
    tpu.vector_store %arg8[%c40, %c0_35], %31 {strides = array<i32>} : memref<108x1000xbf16, #tpu.memory_space<vmem>>, vector<4x1000xbf16>,
    %c0_36 = arith.constant 0 : index
    %c0_37 = arith.constant 0 : index
    %c102 = arith.constant 102 : index
    %33 = vector.load %arg1[%c0_36, %c0_37, %c102] : memref<1x4x1222xbf16, #tpu.memory_space<vmem>>, vector<1x4x1000xbf16>
    %34 = vector.shape_cast %33 : vector<1x4x1000xbf16> to vector<4x1000xbf16>
    %c44 = arith.constant 44 : index
    %c0_38 = arith.constant 0 : index
    %35 = vector.load %arg8[%c44, %c0_38] : memref<108x1000xbf16, #tpu.memory_space<vmem>>, vector<4x1000xbf16>
    tpu.vector_store %arg8[%c44, %c0_38], %34 {strides = array<i32>} : memref<108x1000xbf16, #tpu.memory_space<vmem>>, vector<4x1000xbf16>,
    %c0_39 = arith.constant 0 : index
    %c0_40 = arith.constant 0 : index
    %c110 = arith.constant 110 : index
    %36 = vector.load %arg1[%c0_39, %c0_40, %c110] : memref<1x4x1222xbf16, #tpu.memory_space<vmem>>, vector<1x4x1000xbf16>
    %37 = vector.shape_cast %36 : vector<1x4x1000xbf16> to vector<4x1000xbf16>
    %c48 = arith.constant 48 : index
    %c0_41 = arith.constant 0 : index
    %38 = vector.load %arg8[%c48, %c0_41] : memref<108x1000xbf16, #tpu.memory_space<vmem>>, vector<4x1000xbf16>
    tpu.vector_store %arg8[%c48, %c0_41], %37 {strides = array<i32>} : memref<108x1000xbf16, #tpu.memory_space<vmem>>, vector<4x1000xbf16>,
    %c0_42 = arith.constant 0 : index
    %c0_43 = arith.constant 0 : index
    %c111 = arith.constant 111 : index
    %39 = vector.load %arg1[%c0_42, %c0_43, %c111] : memref<1x4x1222xbf16, #tpu.memory_space<vmem>>, vector<1x4x1000xbf16>
    %40 = vector.shape_cast %39 : vector<1x4x1000xbf16> to vector<4x1000xbf16>
    %c52 = arith.constant 52 : index
    %c0_44 = arith.constant 0 : index
    %41 = vector.load %arg8[%c52, %c0_44] : memref<108x1000xbf16, #tpu.memory_space<vmem>>, vector<4x1000xbf16>
    tpu.vector_store %arg8[%c52, %c0_44], %40 {strides = array<i32>} : memref<108x1000xbf16, #tpu.memory_space<vmem>>, vector<4x1000xbf16>,
    %c0_45 = arith.constant 0 : index
    %c0_46 = arith.constant 0 : index
    %c112 = arith.constant 112 : index
    %42 = vector.load %arg1[%c0_45, %c0_46, %c112] : memref<1x4x1222xbf16, #tpu.memory_space<vmem>>, vector<1x4x1000xbf16>
    %43 = vector.shape_cast %42 : vector<1x4x1000xbf16> to vector<4x1000xbf16>
    %c56 = arith.constant 56 : index
    %c0_47 = arith.constant 0 : index
    %44 = vector.load %arg8[%c56, %c0_47] : memref<108x1000xbf16, #tpu.memory_space<vmem>>, vector<4x1000xbf16>
    tpu.vector_store %arg8[%c56, %c0_47], %43 {strides = array<i32>} : memref<108x1000xbf16, #tpu.memory_space<vmem>>, vector<4x1000xbf16>,
    %c0_48 = arith.constant 0 : index
    %c0_49 = arith.constant 0 : index
    %c120 = arith.constant 120 : index
    %45 = vector.load %arg1[%c0_48, %c0_49, %c120] : memref<1x4x1222xbf16, #tpu.memory_space<vmem>>, vector<1x4x1000xbf16>
    %46 = vector.shape_cast %45 : vector<1x4x1000xbf16> to vector<4x1000xbf16>
    %c60 = arith.constant 60 : index
    %c0_50 = arith.constant 0 : index
    %47 = vector.load %arg8[%c60, %c0_50] : memref<108x1000xbf16, #tpu.memory_space<vmem>>, vector<4x1000xbf16>
    tpu.vector_store %arg8[%c60, %c0_50], %46 {strides = array<i32>} : memref<108x1000xbf16, #tpu.memory_space<vmem>>, vector<4x1000xbf16>,
    %c0_51 = arith.constant 0 : index
    %c0_52 = arith.constant 0 : index
    %c121 = arith.constant 121 : index
    %48 = vector.load %arg1[%c0_51, %c0_52, %c121] : memref<1x4x1222xbf16, #tpu.memory_space<vmem>>, vector<1x4x1000xbf16>
    %49 = vector.shape_cast %48 : vector<1x4x1000xbf16> to vector<4x1000xbf16>
    %c64 = arith.constant 64 : index
    %c0_53 = arith.constant 0 : index
    %50 = vector.load %arg8[%c64, %c0_53] : memref<108x1000xbf16, #tpu.memory_space<vmem>>, vector<4x1000xbf16>
    tpu.vector_store %arg8[%c64, %c0_53], %49 {strides = array<i32>} : memref<108x1000xbf16, #tpu.memory_space<vmem>>, vector<4x1000xbf16>,
    %c0_54 = arith.constant 0 : index
    %c0_55 = arith.constant 0 : index
    %c122 = arith.constant 122 : index
    %51 = vector.load %arg1[%c0_54, %c0_55, %c122] : memref<1x4x1222xbf16, #tpu.memory_space<vmem>>, vector<1x4x1000xbf16>
    %52 = vector.shape_cast %51 : vector<1x4x1000xbf16> to vector<4x1000xbf16>
    %c68 = arith.constant 68 : index
    %c0_56 = arith.constant 0 : index
    %53 = vector.load %arg8[%c68, %c0_56] : memref<108x1000xbf16, #tpu.memory_space<vmem>>, vector<4x1000xbf16>
    tpu.vector_store %arg8[%c68, %c0_56], %52 {strides = array<i32>} : memref<108x1000xbf16, #tpu.memory_space<vmem>>, vector<4x1000xbf16>,
    %c0_57 = arith.constant 0 : index
    %c0_58 = arith.constant 0 : index
    %c200 = arith.constant 200 : index
    %54 = vector.load %arg1[%c0_57, %c0_58, %c200] : memref<1x4x1222xbf16, #tpu.memory_space<vmem>>, vector<1x4x1000xbf16>
    %55 = vector.shape_cast %54 : vector<1x4x1000xbf16> to vector<4x1000xbf16>
    %c72 = arith.constant 72 : index
    %c0_59 = arith.constant 0 : index
    %56 = vector.load %arg8[%c72, %c0_59] : memref<108x1000xbf16, #tpu.memory_space<vmem>>, vector<4x1000xbf16>
    tpu.vector_store %arg8[%c72, %c0_59], %55 {strides = array<i32>} : memref<108x1000xbf16, #tpu.memory_space<vmem>>, vector<4x1000xbf16>,
    %c0_60 = arith.constant 0 : index
    %c0_61 = arith.constant 0 : index
    %c201 = arith.constant 201 : index
    %57 = vector.load %arg1[%c0_60, %c0_61, %c201] : memref<1x4x1222xbf16, #tpu.memory_space<vmem>>, vector<1x4x1000xbf16>
    %58 = vector.shape_cast %57 : vector<1x4x1000xbf16> to vector<4x1000xbf16>
    %c76 = arith.constant 76 : index
    %c0_62 = arith.constant 0 : index
    %59 = vector.load %arg8[%c76, %c0_62] : memref<108x1000xbf16, #tpu.memory_space<vmem>>, vector<4x1000xbf16>
    tpu.vector_store %arg8[%c76, %c0_62], %58 {strides = array<i32>} : memref<108x1000xbf16, #tpu.memory_space<vmem>>, vector<4x1000xbf16>,
    %c0_63 = arith.constant 0 : index
    %c0_64 = arith.constant 0 : index
    %c202 = arith.constant 202 : index
    %60 = vector.load %arg1[%c0_63, %c0_64, %c202] : memref<1x4x1222xbf16, #tpu.memory_space<vmem>>, vector<1x4x1000xbf16>
    %61 = vector.shape_cast %60 : vector<1x4x1000xbf16> to vector<4x1000xbf16>
    %c80 = arith.constant 80 : index
    %c0_65 = arith.constant 0 : index
    %62 = vector.load %arg8[%c80, %c0_65] : memref<108x1000xbf16, #tpu.memory_space<vmem>>, vector<4x1000xbf16>
    tpu.vector_store %arg8[%c80, %c0_65], %61 {strides = array<i32>} : memref<108x1000xbf16, #tpu.memory_space<vmem>>, vector<4x1000xbf16>,
    %c0_66 = arith.constant 0 : index
    %c0_67 = arith.constant 0 : index
    %c210 = arith.constant 210 : index
    %63 = vector.load %arg1[%c0_66, %c0_67, %c210] : memref<1x4x1222xbf16, #tpu.memory_space<vmem>>, vector<1x4x1000xbf16>
    %64 = vector.shape_cast %63 : vector<1x4x1000xbf16> to vector<4x1000xbf16>
    %c84 = arith.constant 84 : index
    %c0_68 = arith.constant 0 : index
    %65 = vector.load %arg8[%c84, %c0_68] : memref<108x1000xbf16, #tpu.memory_space<vmem>>, vector<4x1000xbf16>
    tpu.vector_store %arg8[%c84, %c0_68], %64 {strides = array<i32>} : memref<108x1000xbf16, #tpu.memory_space<vmem>>, vector<4x1000xbf16>,
    %c0_69 = arith.constant 0 : index
    %c0_70 = arith.constant 0 : index
    %c211 = arith.constant 211 : index
    %66 = vector.load %arg1[%c0_69, %c0_70, %c211] : memref<1x4x1222xbf16, #tpu.memory_space<vmem>>, vector<1x4x1000xbf16>
    %67 = vector.shape_cast %66 : vector<1x4x1000xbf16> to vector<4x1000xbf16>
    %c88 = arith.constant 88 : index
    %c0_71 = arith.constant 0 : index
    %68 = vector.load %arg8[%c88, %c0_71] : memref<108x1000xbf16, #tpu.memory_space<vmem>>, vector<4x1000xbf16>
    tpu.vector_store %arg8[%c88, %c0_71], %67 {strides = array<i32>} : memref<108x1000xbf16, #tpu.memory_space<vmem>>, vector<4x1000xbf16>,
    %c0_72 = arith.constant 0 : index
    %c0_73 = arith.constant 0 : index
    %c212 = arith.constant 212 : index
    %69 = vector.load %arg1[%c0_72, %c0_73, %c212] : memref<1x4x1222xbf16, #tpu.memory_space<vmem>>, vector<1x4x1000xbf16>
    %70 = vector.shape_cast %69 : vector<1x4x1000xbf16> to vector<4x1000xbf16>
    %c92 = arith.constant 92 : index
    %c0_74 = arith.constant 0 : index
    %71 = vector.load %arg8[%c92, %c0_74] : memref<108x1000xbf16, #tpu.memory_space<vmem>>, vector<4x1000xbf16>
    tpu.vector_store %arg8[%c92, %c0_74], %70 {strides = array<i32>} : memref<108x1000xbf16, #tpu.memory_space<vmem>>, vector<4x1000xbf16>,
    %c0_75 = arith.constant 0 : index
    %c0_76 = arith.constant 0 : index
    %c220 = arith.constant 220 : index
    %72 = vector.load %arg1[%c0_75, %c0_76, %c220] : memref<1x4x1222xbf16, #tpu.memory_space<vmem>>, vector<1x4x1000xbf16>
    %73 = vector.shape_cast %72 : vector<1x4x1000xbf16> to vector<4x1000xbf16>
    %c96 = arith.constant 96 : index
    %c0_77 = arith.constant 0 : index
    %74 = vector.load %arg8[%c96, %c0_77] : memref<108x1000xbf16, #tpu.memory_space<vmem>>, vector<4x1000xbf16>
    tpu.vector_store %arg8[%c96, %c0_77], %73 {strides = array<i32>} : memref<108x1000xbf16, #tpu.memory_space<vmem>>, vector<4x1000xbf16>,
    %c0_78 = arith.constant 0 : index
    %c0_79 = arith.constant 0 : index
    %c221 = arith.constant 221 : index
    %75 = vector.load %arg1[%c0_78, %c0_79, %c221] : memref<1x4x1222xbf16, #tpu.memory_space<vmem>>, vector<1x4x1000xbf16>
    %76 = vector.shape_cast %75 : vector<1x4x1000xbf16> to vector<4x1000xbf16>
    %c100_80 = arith.constant 100 : index
    %c0_81 = arith.constant 0 : index
    %77 = vector.load %arg8[%c100_80, %c0_81] : memref<108x1000xbf16, #tpu.memory_space<vmem>>, vector<4x1000xbf16>
    tpu.vector_store %arg8[%c100_80, %c0_81], %76 {strides = array<i32>} : memref<108x1000xbf16, #tpu.memory_space<vmem>>, vector<4x1000xbf16>,
    %c0_82 = arith.constant 0 : index
    %c0_83 = arith.constant 0 : index
    %c222 = arith.constant 222 : index
    %78 = vector.load %arg1[%c0_82, %c0_83, %c222] : memref<1x4x1222xbf16, #tpu.memory_space<vmem>>, vector<1x4x1000xbf16>
    %79 = vector.shape_cast %78 : vector<1x4x1000xbf16> to vector<4x1000xbf16>
    %c104 = arith.constant 104 : index
    %c0_84 = arith.constant 0 : index
    %80 = vector.load %arg8[%c104, %c0_84] : memref<108x1000xbf16, #tpu.memory_space<vmem>>, vector<4x1000xbf16>
    tpu.vector_store %arg8[%c104, %c0_84], %79 {strides = array<i32>} : memref<108x1000xbf16, #tpu.memory_space<vmem>>, vector<4x1000xbf16>,
    %c0_85 = arith.constant 0 : index
    %c0_86 = arith.constant 0 : index
    %81 = vector.load %arg2[%c0_85, %c0_86] : memref<8x108xbf16, #tpu.memory_space<vmem>>, vector<8x108xbf16>
    %c0_87 = arith.constant 0 : index
    %c0_88 = arith.constant 0 : index
    %82 = vector.load %arg8[%c0_87, %c0_88] : memref<108x1000xbf16, #tpu.memory_space<vmem>>, vector<108x1000xbf16>
    %cst = arith.constant dense<0.000000e+00> : vector<8x1000xf32>
    %83 = tpu.matmul %81, %82, %cst {dimension_numbers = #tpu.dot_dimension_numbers<[1], [0], [0], [1], [0, 0, 1, 1], [], []>} : vector<8x108xbf16>, vector<108x1000xbf16>, vector<8x1000xf32> -> vector<8x1000xf32>
    %c0_89 = arith.constant 0 : index
    %c0_90 = arith.constant 0 : index
    %84 = vector.load %arg3[%c0_89, %c0_90] : memref<8x1xf32, #tpu.memory_space<vmem>>, vector<8x1xf32>
    %85 = vector.broadcast %84 : vector<8x1xf32> to vector<8x1000xf32>
    %86 = arith.addf %83, %85 : vector<8x1000xf32>
    %cst_91 = arith.constant 0.000000e+00 : f32
    %87 = vector.broadcast %cst_91 : f32 to vector<8x1000xf32>
    %88 = arith.cmpf ogt, %86, %87 : vector<8x1000xf32>
    %cst_92 = arith.constant 2.000000e-01 : f32
    %89 = vector.broadcast %cst_92 : f32 to vector<8x1000xf32>
    %90 = arith.mulf %89, %86 : vector<8x1000xf32>
    %91 = arith.select %88, %86, %90 : vector<8x1000xi1>, vector<8x1000xf32>
    %c0_93 = arith.constant 0 : index
    %c0_94 = arith.constant 0 : index
    %92 = vector.load %arg6[%c0_93, %c0_94] : memref<1x1000xf32, #tpu.memory_space<vmem>>, vector<1x1000xf32>
    %93 = vector.broadcast %92 : vector<1x1000xf32> to vector<8x1000xf32>
    %94 = arith.mulf %91, %93 : vector<8x1000xf32>
    %cst_95 = arith.constant 0.000000e+00 : bf16
    %95 = vector.broadcast %cst_95 : bf16 to vector<8x1222xbf16>
    %c0_96 = arith.constant 0 : index
    %c0_97 = arith.constant 0 : index
    %96 = vector.load %arg9[%c0_96, %c0_97] : memref<8x1222xbf16, #tpu.memory_space<vmem>>, vector<8x1222xbf16>
    tpu.vector_store %arg9[%c0_96, %c0_97], %95 {strides = array<i32>} : memref<8x1222xbf16, #tpu.memory_space<vmem>>, vector<8x1222xbf16>,
    %97 = arith.truncf %94 : vector<8x1000xf32> to vector<8x1000xbf16>
    %c0_98 = arith.constant 0 : index
    %c111_99 = arith.constant 111 : index
    %98 = vector.load %arg9[%c0_98, %c111_99] : memref<8x1222xbf16, #tpu.memory_space<vmem>>, vector<8x1000xbf16>
    tpu.vector_store %arg9[%c0_98, %c111_99], %97 {strides = array<i32>} : memref<8x1222xbf16, #tpu.memory_space<vmem>>, vector<8x1000xbf16>,
    %c0_100 = arith.constant 0 : index
    %c0_101 = arith.constant 0 : index
    %99 = vector.load %arg9[%c0_100, %c0_101] : memref<8x1222xbf16, #tpu.memory_space<vmem>>, vector<8x1000xbf16>
    %c0_102 = arith.constant 0 : index
    %c0_103 = arith.constant 0 : index
    %100 = vector.load %arg10[%c0_102, %c0_103] : memref<216x1000xbf16, #tpu.memory_space<vmem>>, vector<8x1000xbf16>
    tpu.vector_store %arg10[%c0_102, %c0_103], %99 {strides = array<i32>} : memref<216x1000xbf16, #tpu.memory_space<vmem>>, vector<8x1000xbf16>,
    %c0_104 = arith.constant 0 : index
    %c1_105 = arith.constant 1 : index
    %101 = vector.load %arg9[%c0_104, %c1_105] : memref<8x1222xbf16, #tpu.memory_space<vmem>>, vector<8x1000xbf16>
    %c8_106 = arith.constant 8 : index
    %c0_107 = arith.constant 0 : index
    %102 = vector.load %arg10[%c8_106, %c0_107] : memref<216x1000xbf16, #tpu.memory_space<vmem>>, vector<8x1000xbf16>
    tpu.vector_store %arg10[%c8_106, %c0_107], %101 {strides = array<i32>} : memref<216x1000xbf16, #tpu.memory_space<vmem>>, vector<8x1000xbf16>,
    %c0_108 = arith.constant 0 : index
    %c2_109 = arith.constant 2 : index
    %103 = vector.load %arg9[%c0_108, %c2_109] : memref<8x1222xbf16, #tpu.memory_space<vmem>>, vector<8x1000xbf16>
    %c16_110 = arith.constant 16 : index
    %c0_111 = arith.constant 0 : index
    %104 = vector.load %arg10[%c16_110, %c0_111] : memref<216x1000xbf16, #tpu.memory_space<vmem>>, vector<8x1000xbf16>
    tpu.vector_store %arg10[%c16_110, %c0_111], %103 {strides = array<i32>} : memref<216x1000xbf16, #tpu.memory_space<vmem>>, vector<8x1000xbf16>,
    %c0_112 = arith.constant 0 : index
    %c10_113 = arith.constant 10 : index
    %105 = vector.load %arg9[%c0_112, %c10_113] : memref<8x1222xbf16, #tpu.memory_space<vmem>>, vector<8x1000xbf16>
    %c24_114 = arith.constant 24 : index
    %c0_115 = arith.constant 0 : index
    %106 = vector.load %arg10[%c24_114, %c0_115] : memref<216x1000xbf16, #tpu.memory_space<vmem>>, vector<8x1000xbf16>
    tpu.vector_store %arg10[%c24_114, %c0_115], %105 {strides = array<i32>} : memref<216x1000xbf16, #tpu.memory_space<vmem>>, vector<8x1000xbf16>,
    %c0_116 = arith.constant 0 : index
    %c11_117 = arith.constant 11 : index
    %107 = vector.load %arg9[%c0_116, %c11_117] : memref<8x1222xbf16, #tpu.memory_space<vmem>>, vector<8x1000xbf16>
    %c32_118 = arith.constant 32 : index
    %c0_119 = arith.constant 0 : index
    %108 = vector.load %arg10[%c32_118, %c0_119] : memref<216x1000xbf16, #tpu.memory_space<vmem>>, vector<8x1000xbf16>
    tpu.vector_store %arg10[%c32_118, %c0_119], %107 {strides = array<i32>} : memref<216x1000xbf16, #tpu.memory_space<vmem>>, vector<8x1000xbf16>,
    %c0_120 = arith.constant 0 : index
    %c12_121 = arith.constant 12 : index
    %109 = vector.load %arg9[%c0_120, %c12_121] : memref<8x1222xbf16, #tpu.memory_space<vmem>>, vector<8x1000xbf16>
    %c40_122 = arith.constant 40 : index
    %c0_123 = arith.constant 0 : index
    %110 = vector.load %arg10[%c40_122, %c0_123] : memref<216x1000xbf16, #tpu.memory_space<vmem>>, vector<8x1000xbf16>
    tpu.vector_store %arg10[%c40_122, %c0_123], %109 {strides = array<i32>} : memref<216x1000xbf16, #tpu.memory_space<vmem>>, vector<8x1000xbf16>,
    %c0_124 = arith.constant 0 : index
    %c20_125 = arith.constant 20 : index
    %111 = vector.load %arg9[%c0_124, %c20_125] : memref<8x1222xbf16, #tpu.memory_space<vmem>>, vector<8x1000xbf16>
    %c48_126 = arith.constant 48 : index
    %c0_127 = arith.constant 0 : index
    %112 = vector.load %arg10[%c48_126, %c0_127] : memref<216x1000xbf16, #tpu.memory_space<vmem>>, vector<8x1000xbf16>
    tpu.vector_store %arg10[%c48_126, %c0_127], %111 {strides = array<i32>} : memref<216x1000xbf16, #tpu.memory_space<vmem>>, vector<8x1000xbf16>,
    %c0_128 = arith.constant 0 : index
    %c21_129 = arith.constant 21 : index
    %113 = vector.load %arg9[%c0_128, %c21_129] : memref<8x1222xbf16, #tpu.memory_space<vmem>>, vector<8x1000xbf16>
    %c56_130 = arith.constant 56 : index
    %c0_131 = arith.constant 0 : index
    %114 = vector.load %arg10[%c56_130, %c0_131] : memref<216x1000xbf16, #tpu.memory_space<vmem>>, vector<8x1000xbf16>
    tpu.vector_store %arg10[%c56_130, %c0_131], %113 {strides = array<i32>} : memref<216x1000xbf16, #tpu.memory_space<vmem>>, vector<8x1000xbf16>,
    %c0_132 = arith.constant 0 : index
    %c22_133 = arith.constant 22 : index
    %115 = vector.load %arg9[%c0_132, %c22_133] : memref<8x1222xbf16, #tpu.memory_space<vmem>>, vector<8x1000xbf16>
    %c64_134 = arith.constant 64 : index
    %c0_135 = arith.constant 0 : index
    %116 = vector.load %arg10[%c64_134, %c0_135] : memref<216x1000xbf16, #tpu.memory_space<vmem>>, vector<8x1000xbf16>
    tpu.vector_store %arg10[%c64_134, %c0_135], %115 {strides = array<i32>} : memref<216x1000xbf16, #tpu.memory_space<vmem>>, vector<8x1000xbf16>,
    %c0_136 = arith.constant 0 : index
    %c100_137 = arith.constant 100 : index
    %117 = vector.load %arg9[%c0_136, %c100_137] : memref<8x1222xbf16, #tpu.memory_space<vmem>>, vector<8x1000xbf16>
    %c72_138 = arith.constant 72 : index
    %c0_139 = arith.constant 0 : index
    %118 = vector.load %arg10[%c72_138, %c0_139] : memref<216x1000xbf16, #tpu.memory_space<vmem>>, vector<8x1000xbf16>
    tpu.vector_store %arg10[%c72_138, %c0_139], %117 {strides = array<i32>} : memref<216x1000xbf16, #tpu.memory_space<vmem>>, vector<8x1000xbf16>,
    %c0_140 = arith.constant 0 : index
    %c101_141 = arith.constant 101 : index
    %119 = vector.load %arg9[%c0_140, %c101_141] : memref<8x1222xbf16, #tpu.memory_space<vmem>>, vector<8x1000xbf16>
    %c80_142 = arith.constant 80 : index
    %c0_143 = arith.constant 0 : index
    %120 = vector.load %arg10[%c80_142, %c0_143] : memref<216x1000xbf16, #tpu.memory_space<vmem>>, vector<8x1000xbf16>
    tpu.vector_store %arg10[%c80_142, %c0_143], %119 {strides = array<i32>} : memref<216x1000xbf16, #tpu.memory_space<vmem>>, vector<8x1000xbf16>,
    %c0_144 = arith.constant 0 : index
    %c102_145 = arith.constant 102 : index
    %121 = vector.load %arg9[%c0_144, %c102_145] : memref<8x1222xbf16, #tpu.memory_space<vmem>>, vector<8x1000xbf16>
    %c88_146 = arith.constant 88 : index
    %c0_147 = arith.constant 0 : index
    %122 = vector.load %arg10[%c88_146, %c0_147] : memref<216x1000xbf16, #tpu.memory_space<vmem>>, vector<8x1000xbf16>
    tpu.vector_store %arg10[%c88_146, %c0_147], %121 {strides = array<i32>} : memref<216x1000xbf16, #tpu.memory_space<vmem>>, vector<8x1000xbf16>,
    %c0_148 = arith.constant 0 : index
    %c110_149 = arith.constant 110 : index
    %123 = vector.load %arg9[%c0_148, %c110_149] : memref<8x1222xbf16, #tpu.memory_space<vmem>>, vector<8x1000xbf16>
    %c96_150 = arith.constant 96 : index
    %c0_151 = arith.constant 0 : index
    %124 = vector.load %arg10[%c96_150, %c0_151] : memref<216x1000xbf16, #tpu.memory_space<vmem>>, vector<8x1000xbf16>
    tpu.vector_store %arg10[%c96_150, %c0_151], %123 {strides = array<i32>} : memref<216x1000xbf16, #tpu.memory_space<vmem>>, vector<8x1000xbf16>,
    %c0_152 = arith.constant 0 : index
    %c111_153 = arith.constant 111 : index
    %125 = vector.load %arg9[%c0_152, %c111_153] : memref<8x1222xbf16, #tpu.memory_space<vmem>>, vector<8x1000xbf16>
    %c104_154 = arith.constant 104 : index
    %c0_155 = arith.constant 0 : index
    %126 = vector.load %arg10[%c104_154, %c0_155] : memref<216x1000xbf16, #tpu.memory_space<vmem>>, vector<8x1000xbf16>
    tpu.vector_store %arg10[%c104_154, %c0_155], %125 {strides = array<i32>} : memref<216x1000xbf16, #tpu.memory_space<vmem>>, vector<8x1000xbf16>,
    %c0_156 = arith.constant 0 : index
    %c112_157 = arith.constant 112 : index
    %127 = vector.load %arg9[%c0_156, %c112_157] : memref<8x1222xbf16, #tpu.memory_space<vmem>>, vector<8x1000xbf16>
    %c112_158 = arith.constant 112 : index
    %c0_159 = arith.constant 0 : index
    %128 = vector.load %arg10[%c112_158, %c0_159] : memref<216x1000xbf16, #tpu.memory_space<vmem>>, vector<8x1000xbf16>
    tpu.vector_store %arg10[%c112_158, %c0_159], %127 {strides = array<i32>} : memref<216x1000xbf16, #tpu.memory_space<vmem>>, vector<8x1000xbf16>,
    %c0_160 = arith.constant 0 : index
    %c120_161 = arith.constant 120 : index
    %129 = vector.load %arg9[%c0_160, %c120_161] : memref<8x1222xbf16, #tpu.memory_space<vmem>>, vector<8x1000xbf16>
    %c120_162 = arith.constant 120 : index
    %c0_163 = arith.constant 0 : index
    %130 = vector.load %arg10[%c120_162, %c0_163] : memref<216x1000xbf16, #tpu.memory_space<vmem>>, vector<8x1000xbf16>
    tpu.vector_store %arg10[%c120_162, %c0_163], %129 {strides = array<i32>} : memref<216x1000xbf16, #tpu.memory_space<vmem>>, vector<8x1000xbf16>,
    %c0_164 = arith.constant 0 : index
    %c121_165 = arith.constant 121 : index
    %131 = vector.load %arg9[%c0_164, %c121_165] : memref<8x1222xbf16, #tpu.memory_space<vmem>>, vector<8x1000xbf16>
    %c128 = arith.constant 128 : index
    %c0_166 = arith.constant 0 : index
    %132 = vector.load %arg10[%c128, %c0_166] : memref<216x1000xbf16, #tpu.memory_space<vmem>>, vector<8x1000xbf16>
    tpu.vector_store %arg10[%c128, %c0_166], %131 {strides = array<i32>} : memref<216x1000xbf16, #tpu.memory_space<vmem>>, vector<8x1000xbf16>,
    %c0_167 = arith.constant 0 : index
    %c122_168 = arith.constant 122 : index
    %133 = vector.load %arg9[%c0_167, %c122_168] : memref<8x1222xbf16, #tpu.memory_space<vmem>>, vector<8x1000xbf16>
    %c136 = arith.constant 136 : index
    %c0_169 = arith.constant 0 : index
    %134 = vector.load %arg10[%c136, %c0_169] : memref<216x1000xbf16, #tpu.memory_space<vmem>>, vector<8x1000xbf16>
    tpu.vector_store %arg10[%c136, %c0_169], %133 {strides = array<i32>} : memref<216x1000xbf16, #tpu.memory_space<vmem>>, vector<8x1000xbf16>,
    %c0_170 = arith.constant 0 : index
    %c200_171 = arith.constant 200 : index
    %135 = vector.load %arg9[%c0_170, %c200_171] : memref<8x1222xbf16, #tpu.memory_space<vmem>>, vector<8x1000xbf16>
    %c144 = arith.constant 144 : index
    %c0_172 = arith.constant 0 : index
    %136 = vector.load %arg10[%c144, %c0_172] : memref<216x1000xbf16, #tpu.memory_space<vmem>>, vector<8x1000xbf16>
    tpu.vector_store %arg10[%c144, %c0_172], %135 {strides = array<i32>} : memref<216x1000xbf16, #tpu.memory_space<vmem>>, vector<8x1000xbf16>,
    %c0_173 = arith.constant 0 : index
    %c201_174 = arith.constant 201 : index
    %137 = vector.load %arg9[%c0_173, %c201_174] : memref<8x1222xbf16, #tpu.memory_space<vmem>>, vector<8x1000xbf16>
    %c152 = arith.constant 152 : index
    %c0_175 = arith.constant 0 : index
    %138 = vector.load %arg10[%c152, %c0_175] : memref<216x1000xbf16, #tpu.memory_space<vmem>>, vector<8x1000xbf16>
    tpu.vector_store %arg10[%c152, %c0_175], %137 {strides = array<i32>} : memref<216x1000xbf16, #tpu.memory_space<vmem>>, vector<8x1000xbf16>,
    %c0_176 = arith.constant 0 : index
    %c202_177 = arith.constant 202 : index
    %139 = vector.load %arg9[%c0_176, %c202_177] : memref<8x1222xbf16, #tpu.memory_space<vmem>>, vector<8x1000xbf16>
    %c160 = arith.constant 160 : index
    %c0_178 = arith.constant 0 : index
    %140 = vector.load %arg10[%c160, %c0_178] : memref<216x1000xbf16, #tpu.memory_space<vmem>>, vector<8x1000xbf16>
    tpu.vector_store %arg10[%c160, %c0_178], %139 {strides = array<i32>} : memref<216x1000xbf16, #tpu.memory_space<vmem>>, vector<8x1000xbf16>,
    %c0_179 = arith.constant 0 : index
    %c210_180 = arith.constant 210 : index
    %141 = vector.load %arg9[%c0_179, %c210_180] : memref<8x1222xbf16, #tpu.memory_space<vmem>>, vector<8x1000xbf16>
    %c168 = arith.constant 168 : index
    %c0_181 = arith.constant 0 : index
    %142 = vector.load %arg10[%c168, %c0_181] : memref<216x1000xbf16, #tpu.memory_space<vmem>>, vector<8x1000xbf16>
    tpu.vector_store %arg10[%c168, %c0_181], %141 {strides = array<i32>} : memref<216x1000xbf16, #tpu.memory_space<vmem>>, vector<8x1000xbf16>,
    %c0_182 = arith.constant 0 : index
    %c211_183 = arith.constant 211 : index
    %143 = vector.load %arg9[%c0_182, %c211_183] : memref<8x1222xbf16, #tpu.memory_space<vmem>>, vector<8x1000xbf16>
    %c176 = arith.constant 176 : index
    %c0_184 = arith.constant 0 : index
    %144 = vector.load %arg10[%c176, %c0_184] : memref<216x1000xbf16, #tpu.memory_space<vmem>>, vector<8x1000xbf16>
    tpu.vector_store %arg10[%c176, %c0_184], %143 {strides = array<i32>} : memref<216x1000xbf16, #tpu.memory_space<vmem>>, vector<8x1000xbf16>,
    %c0_185 = arith.constant 0 : index
    %c212_186 = arith.constant 212 : index
    %145 = vector.load %arg9[%c0_185, %c212_186] : memref<8x1222xbf16, #tpu.memory_space<vmem>>, vector<8x1000xbf16>
    %c184 = arith.constant 184 : index
    %c0_187 = arith.constant 0 : index
    %146 = vector.load %arg10[%c184, %c0_187] : memref<216x1000xbf16, #tpu.memory_space<vmem>>, vector<8x1000xbf16>
    tpu.vector_store %arg10[%c184, %c0_187], %145 {strides = array<i32>} : memref<216x1000xbf16, #tpu.memory_space<vmem>>, vector<8x1000xbf16>,
    %c0_188 = arith.constant 0 : index
    %c220_189 = arith.constant 220 : index
    %147 = vector.load %arg9[%c0_188, %c220_189] : memref<8x1222xbf16, #tpu.memory_space<vmem>>, vector<8x1000xbf16>
    %c192 = arith.constant 192 : index
    %c0_190 = arith.constant 0 : index
    %148 = vector.load %arg10[%c192, %c0_190] : memref<216x1000xbf16, #tpu.memory_space<vmem>>, vector<8x1000xbf16>
    tpu.vector_store %arg10[%c192, %c0_190], %147 {strides = array<i32>} : memref<216x1000xbf16, #tpu.memory_space<vmem>>, vector<8x1000xbf16>,
    %c0_191 = arith.constant 0 : index
    %c221_192 = arith.constant 221 : index
    %149 = vector.load %arg9[%c0_191, %c221_192] : memref<8x1222xbf16, #tpu.memory_space<vmem>>, vector<8x1000xbf16>
    %c200_193 = arith.constant 200 : index
    %c0_194 = arith.constant 0 : index
    %150 = vector.load %arg10[%c200_193, %c0_194] : memref<216x1000xbf16, #tpu.memory_space<vmem>>, vector<8x1000xbf16>
    tpu.vector_store %arg10[%c200_193, %c0_194], %149 {strides = array<i32>} : memref<216x1000xbf16, #tpu.memory_space<vmem>>, vector<8x1000xbf16>,
    %c0_195 = arith.constant 0 : index
    %c222_196 = arith.constant 222 : index
    %151 = vector.load %arg9[%c0_195, %c222_196] : memref<8x1222xbf16, #tpu.memory_space<vmem>>, vector<8x1000xbf16>
    %c208 = arith.constant 208 : index
    %c0_197 = arith.constant 0 : index
    %152 = vector.load %arg10[%c208, %c0_197] : memref<216x1000xbf16, #tpu.memory_space<vmem>>, vector<8x1000xbf16>
    tpu.vector_store %arg10[%c208, %c0_197], %151 {strides = array<i32>} : memref<216x1000xbf16, #tpu.memory_space<vmem>>, vector<8x1000xbf16>,
    %c0_198 = arith.constant 0 : index
    %c0_199 = arith.constant 0 : index
    %153 = vector.load %arg4[%c0_198, %c0_199] : memref<8x216xbf16, #tpu.memory_space<vmem>>, vector<8x216xbf16>
    %c0_200 = arith.constant 0 : index
    %c0_201 = arith.constant 0 : index
    %154 = vector.load %arg10[%c0_200, %c0_201] : memref<216x1000xbf16, #tpu.memory_space<vmem>>, vector<216x1000xbf16>
    %cst_202 = arith.constant dense<0.000000e+00> : vector<8x1000xf32>
    %155 = tpu.matmul %153, %154, %cst_202 {dimension_numbers = #tpu.dot_dimension_numbers<[1], [0], [0], [1], [0, 0, 1, 1], [], []>} : vector<8x216xbf16>, vector<216x1000xbf16>, vector<8x1000xf32> -> vector<8x1000xf32>
    %c0_203 = arith.constant 0 : index
    %c0_204 = arith.constant 0 : index
    %156 = vector.load %arg5[%c0_203, %c0_204] : memref<8x1xf32, #tpu.memory_space<vmem>>, vector<8x1xf32>
    %157 = vector.broadcast %156 : vector<8x1xf32> to vector<8x1000xf32>
    %158 = arith.addf %155, %157 : vector<8x1000xf32>
    %cst_205 = arith.constant 0.000000e+00 : f32
    %159 = vector.broadcast %cst_205 : f32 to vector<8x1000xf32>
    %160 = arith.cmpf ogt, %158, %159 : vector<8x1000xf32>
    %cst_206 = arith.constant 2.000000e-01 : f32
    %161 = vector.broadcast %cst_206 : f32 to vector<8x1000xf32>
    %162 = arith.mulf %161, %158 : vector<8x1000xf32>
    %163 = arith.select %160, %158, %162 : vector<8x1000xi1>, vector<8x1000xf32>
    %c0_207 = arith.constant 0 : index
    %c0_208 = arith.constant 0 : index
    %c0_209 = arith.constant 0 : index
    %164 = vector.load %arg7[%c0_207, %c0_208, %c0_209] : memref<1x8x1000xf32, #tpu.memory_space<vmem>>, vector<1x8x1000xf32>
    %165 = vector.shape_cast %164 : vector<1x8x1000xf32> to vector<8x1000xf32>
    %166 = vector.shape_cast %163 : vector<8x1000xf32> to vector<1x8x1000xf32>
    tpu.vector_store %arg7[%c0_207, %c0_208, %c0_209], %166 {strides = array<i32>} : memref<1x8x1000xf32, #tpu.memory_space<vmem>>, vector<1x8x1000xf32>,
    return
  }
  func.func @transform_0(%arg0: i32) -> (i32, i32, i32) {
    %c0_i32 = arith.constant 0 : i32
    %c0_i32_0 = arith.constant 0 : i32
    %c0_i32_1 = arith.constant 0 : i32
    return %arg0, %c0_i32, %c0_i32_0 : i32, i32, i32
  }
  func.func @transform_1(%arg0: i32) -> (i32, i32) {
    %c0_i32 = arith.constant 0 : i32
    %c0_i32_0 = arith.constant 0 : i32
    %c0_i32_1 = arith.constant 0 : i32
    return %c0_i32, %c0_i32_0 : i32, i32
  }
  func.func @transform_2(%arg0: i32) -> (i32, i32) {
    %c0_i32 = arith.constant 0 : i32
    %c0_i32_0 = arith.constant 0 : i32
    %c0_i32_1 = arith.constant 0 : i32
    return %c0_i32, %c0_i32_0 : i32, i32
  }
  func.func @transform_3(%arg0: i32) -> (i32, i32) {
    %c0_i32 = arith.constant 0 : i32
    %c0_i32_0 = arith.constant 0 : i32
    %c0_i32_1 = arith.constant 0 : i32
    return %c0_i32, %c0_i32_0 : i32, i32
  }
  func.func @transform_4(%arg0: i32) -> (i32, i32) {
    %c0_i32 = arith.constant 0 : i32
    %c0_i32_0 = arith.constant 0 : i32
    %c0_i32_1 = arith.constant 0 : i32
    return %c0_i32, %c0_i32_0 : i32, i32
  }
  func.func @transform_5(%arg0: i32) -> (i32, i32) {
    %c0_i32 = arith.constant 0 : i32
    %c0_i32_0 = arith.constant 0 : i32
    %c0_i32_1 = arith.constant 0 : i32
    return %c0_i32, %c0_i32_0 : i32, i32
  }
  func.func @transform_6(%arg0: i32) -> (i32, i32, i32) {
    %c0_i32 = arith.constant 0 : i32
    %c0_i32_0 = arith.constant 0 : i32
    %c0_i32_1 = arith.constant 0 : i32
    return %arg0, %c0_i32, %c0_i32_0 : i32, i32, i32
  }
}

</mosaic_0001>

<bundles_post_ra>
// kernel: conv_block_forward.1
= control target key start
LH: loop header
LB: loop body
LE: loop exit
PB: predicated region body
PF: predicated region fallthrough
CT: control target
= control target key end

     0   :  { %s5150_s21 = smov 0   ;;  %s7287_s0 = inlined_call_operand.vmem [shape: bf16[2,4,1222], index: 0, kind: input, shape index: {}]   ;;  %s7288_s1 = inlined_call_operand.vmem [shape: bf16[8,108], index: 1, kind: input, shape index: {}]   ;;  %s7289_s2 = inlined_call_operand.vmem [shape: f32[8,1], index: 2, kind: input, shape index: {}]   ;;  %s7290_s3 = inlined_call_operand.vmem [shape: bf16[8,216], index: 3, kind: input, shape index: {}]   ;;  %s7291_s4 = inlined_call_operand.vmem [shape: f32[8,1], index: 4, kind: input, shape index: {}]   ;;  %s7292_s5 = inlined_call_operand.vmem [shape: f32[1,1000], index: 5, kind: input, shape index: {}]   ;;  %s7293_s6 = inlined_call_operand.vmem [shape: f32[2,8,1000], index: 6, kind: output, shape index: {}]  }
   0x1 LB: > { %s4798_s22 = sadd.s32 4294967295, %s5084_s21   ;;  %p4802_p0 = scmp.ge.s32.totalorder %s5084_s21, 1  ;;  %s5084_s21 = sphi %s5150_s21, %s16_s21  }
   0x2   : > { %p212_p1 = scmp.lt.s32.totalorder %s5084_s21, 3 }
   0x4   : > { %p213_p2 = pnand %p4802_p0, %p212_p1 }
   0x5   : > { %p242_p3 = scmp.lt.s32.totalorder (!%p213_p2), %s4798_s22, 1  ;;  %v283_v0 = vlaneseq (!%p213_p2)  ;;  %v5086_v1 = vmov (!%p213_p2), 1983009808   ;;  %s7314_s27 = smov (!%p213_p2), 126   ;;  %vm294_vm0 = vcmask (!%p213_p2), 1041408   ;;  %vm295_vm1 = vcmask (!%p213_p2), 848900  }
   0x6   : > { %216 = sbr.rel (%p213_p2) target bundleno = 1260 (0x4ec), region = 44  ;;  %v281_v2 = vunpack.c.l.s4 (!%p213_p2), %v5086_v1  ;;  %s5088_s28 = smov (!%p213_p2), 127   ;;  %vm5250_vm2 = vmor (!%p213_p2), %vm295_vm1, %vm294_vm0  ;;  %v5113_v28 = vmov (!%p213_p2), 0   ;;  %vm344_vm3 = vcmask (!%p213_p2), 1043456   ;;  %vm411_vm4 = vcmask (!%p213_p2), 1031168  }
   0x7   : > { %v5160_v3 = vshrl.u32 (!%p213_p2), %v283_v0, 7  ;;  %s7360_s29 = smov (!%p213_p2), 118   ;;  %s7310_s30 = smov (!%p213_p2), 117   ;;  %2553 = vmatprep.mubr.bf16.mxu0 (!%p213_p2), %v5113_v28  ;;  %2759 = vst [vmem:[#allocation3] sm:$0xff] (!%p213_p2), %v5113_v28  ;;  %2594 = vmatprep.mubr.bf16.mxu1 (!%p213_p2), %v5113_v28  ;;  %vm346_vm5 = vcmask (!%p213_p2), 1039360   ;;  %vm535_vm6 = vcmask (!%p213_p2), 957440  }
   0x8   : > { %v282_v4 = vunpack.c.0.s8 (!%p213_p2), %v281_v2  ;;  %s7358_s7 = smov (!%p213_p2), 116   ;;  %s7307_s8 = smov (!%p213_p2), 108   ;;  %5053 = vset.pattern.permute.xlu0 (!%p213_p2), %v5113_v28  ;;  %vm473_vm7 = vcmask (!%p213_p2), 965632   ;;  %vm597_vm8 = vcmask (!%p213_p2), 949248   ;;  %vm659_vm9 = vcmask (!%p213_p2), 883712  }
   0x9   : > { %s7317_s9 = smov (!%p213_p2), 107   ;;  %s7304_s10 = smov (!%p213_p2), 106   ;;  %vm7341_vm10 = vcmask (!%p213_p2), 875520   ;;  %vm783_vm11 = vcmask (!%p213_p2), 867328   ;;  %vm7343_vm12 = vcmask (!%p213_p2), 228352   ;;  %vm933_vm13 = vcmask (!%p213_p2), 220160  }
   0xa   : > { %v5164_v5 = vsub.s32 (!%p213_p2), %v282_v4, %v5160_v3  ;;  %s7359_s11 = smov (!%p213_p2), 28   ;;  %s5096_s12 = smov (!%p213_p2), 27   ;;  %vm7332_vm14 = vcmask (!%p213_p2), 211968   ;;  %vm7331_vm15 = vcmask (!%p213_p2), 146432   ;;  %vm7306_vm0 = vcmask (!%p213_p2), 138240  }
   0xb   : > { %s7361_s13 = smov (!%p213_p2), 26   ;;  %s5098_s14 = smov (!%p213_p2), 18   ;;  %vm7309_vm1 = vcmask (!%p213_p2), 130048  }
   0xc   : > { %s7354_s15 = smov (!%p213_p2), 17   ;;  %s7350_s16 = smov (!%p213_p2), 16  }
   0xd   : > { %s7567_s22 = smov (!%p242_p3, %s4798_s22), 1  ;;  %s7352_s17 = smov 8  }
   0xe   : > { %s5015_s23 = smul.u32 20, %s7567_s22  ;;  %s7339_s18 = smov 7  }
   0xf   : > { %s7296_s19 = smov 6   ;;  %s7294_s20 = smov 56  }
  0x10   : > { %s5169_s26 = scalar_lea.vmem %s7287_s0, %s5015_s23  ;;  %s7298_s23 = smov 55  }
  0x11   : > { %v364_v6 = vld [vmem:[%s5169_s26] sm:$0xff]  ;;  %s7337_s24 = smov 54   ;;  %s7300_s25 = smov 46   ;;  %v299_v18 = vld [vmem:[%s5169_s26 + $0x8] sm:$0xff] }
  0x12   : > { %v375_v7 = vrot.slane %v364_v6, %v5164_v5  ;;  %4806 = vst.sshfl [vmem:[#allocation2] sm:$0xf pattern:$0x76325410] %v364_v6  ;;  %v5174_v8 = vcombine.high %v364_v6, %v364_v6  ;;  %v302_v9 = vcombine.low %v364_v6, %v364_v6  ;;  %v1478_v12 = vld [vmem:[%s5169_s26 + $0x2] sm:$0xff]  ;;  %v317_v20 = vcombine.low %v299_v18, %v299_v18 }
  0x13   : > { %v1484_v13 = vcombine.high %v1478_v12, %v1478_v12  ;;  %v1491_v15 = vrot.slane %v1478_v12, %v5164_v5  ;;  %v1559_v16 = vcombine.low %v1478_v12, %v1478_v12  ;;  %v254_v19 = vld [vmem:[%s5169_s26 + $0x8] sm:$0xff]  ;;  %v5238_v21 = vrot.slane %v299_v18, %v5164_v5 }
  0x14   : > { %398 = vrot.lane.b32.xlu1 %v375_v7, %s7314_s27  ;;  %334 = vrot.lane.b32.xlu0 %v375_v7, %s5088_s28  ;;  %v382_v10 = vrot.slane %v5174_v8, %v5164_v5  ;;  %v309_v11 = vrot.slane %v302_v9, %v5164_v5  ;;  %4807 = vst.sshfl [vmem:[#allocation2 + $0x8] sm:$0xf pattern:$0x76325410] %v5174_v8 }
  0x15   : > { %v1498_v14 = vrot.slane %v1484_v13, %v5164_v5  ;;  %v1566_v17 = vrot.slane %v1559_v16, %v5164_v5  ;;  %4808 = vst.sshfl [vmem:[#allocation2 + $0x10] sm:$0xf pattern:$0x76325410] %v254_v19  ;;  %v5241_v22 = vrot.slane %v317_v20, %v5164_v5  ;;  %v383_v23 = vcombine.high %v299_v18, %v299_v18 }
  0x16   : > { %v272_v24 = vcombine.high %v254_v19, %v254_v19 }
  0x17   : > { %v5248_v25 = vrot.slane %v383_v23, %v5164_v5 }
  0x18   : > { %462 = vrot.lane.b32.xlu1 %v375_v7, %s7360_s29  ;;  %522 = vrot.lane.b32.xlu0 %v375_v7, %s7310_s30  ;;  %v286_v27 = vrot.slane %v272_v24, %v5164_v5 }
  0x1a   : > { %297 = vst.msk [vmem:[#allocation2 + $0x18] sm:$0x33] %vm5250_vm2, %v286_v27 }
  0x1c   : > { %400 = vrot.lane.b32.xlu1 %v382_v10, %s7314_s27  ;;  %332 = vrot.lane.b32.xlu0 %v309_v11, %s5088_s28 }
  0x20   : > { %524 = vrot.lane.b32.xlu1 %v382_v10, %s7310_s30  ;;  %460 = vrot.lane.b32.xlu0 %v309_v11, %s7360_s29 }
  0x24   : > { %586 = vrot.lane.b32.xlu1 %v375_v7, %s7358_s7  ;;  %584 = vrot.lane.b32.xlu0 %v309_v11, %s7358_s7 }
  0x28   : > { %648 = vrot.lane.b32.xlu1 %v382_v10, %s7307_s8  ;;  %646 = vrot.lane.b32.xlu0 %v375_v7, %s7307_s8 }
  0x2c   : > { %710 = vrot.lane.b32.xlu1 %v375_v7, %s7317_s9  ;;  %708 = vrot.lane.b32.xlu0 %v309_v11, %s7317_s9 }
  0x30   : > { %772 = vrot.lane.b32.xlu1 %v382_v10, %s7304_s10  ;;  %770 = vrot.lane.b32.xlu0 %v375_v7, %s7304_s10 }
  0x34   : > { %844 = vrot.lane.b32.xlu1 %v375_v7, %s7359_s11  ;;  %842 = vrot.lane.b32.xlu0 %v309_v11, %s7359_s11 }
  0x38   : > { %919 = vrot.lane.b32.xlu1 %v382_v10, %s5096_s12  ;;  %917 = vrot.lane.b32.xlu0 %v375_v7, %s5096_s12 }
  0x3c   : > { %995 = vrot.lane.b32.xlu1 %v375_v7, %s7361_s13  ;;  %993 = vrot.lane.b32.xlu0 %v309_v11, %s7361_s13 }
  0x40   : > { %1070 = vrot.lane.b32.xlu1 %v382_v10, %s5098_s14  ;;  %1068 = vrot.lane.b32.xlu0 %v375_v7, %s5098_s14 }
  0x44   : > { %1146 = vrot.lane.b32.xlu1 %v375_v7, %s7354_s15  ;;  %1144 = vrot.lane.b32.xlu0 %v309_v11, %s7354_s15 }
  0x48   : > { %1221 = vrot.lane.b32.xlu1 %v382_v10, %s7350_s16  ;;  %1219 = vrot.lane.b32.xlu0 %v375_v7, %s7350_s16 }
  0x4c   : > { %1297 = vrot.lane.b32.xlu1 %v375_v7, %s7352_s17  ;;  %1295 = vrot.lane.b32.xlu0 %v309_v11, %s7352_s17 }
  0x50   : > { %1372 = vrot.lane.b32.xlu1 %v382_v10, %s7339_s18  ;;  %1370 = vrot.lane.b32.xlu0 %v375_v7, %s7339_s18 }
  0x54   : > { %1448 = vrot.lane.b32.xlu1 %v375_v7, %s7296_s19  ;;  %1446 = vrot.lane.b32.xlu0 %v309_v11, %s7296_s19  ;;  %s7356_s19 = smov 44  }
  0x58   : > { %1523 = vrot.lane.b32.xlu1 %v1498_v14, %s7294_s20  ;;  %1521 = vrot.lane.b32.xlu0 %v1491_v15, %s7294_s20  ;;  %s7302_s20 = smov 45  }
  0x5c   : > { %1599 = vrot.lane.b32.xlu1 %v1491_v15, %s7298_s23  ;;  %1597 = vrot.lane.b32.xlu0 %v1566_v17, %s7298_s23  ;;  %s7346_s23 = smov 36  }
  0x60   : > { %1674 = vrot.lane.b32.xlu1 %v1498_v14, %s7337_s24  ;;  %1672 = vrot.lane.b32.xlu0 %v1491_v15, %s7337_s24 }
  0x64   : > { %1750 = vrot.lane.b32.xlu1 %v1491_v15, %s7300_s25  ;;  %1748 = vrot.lane.b32.xlu0 %v1566_v17, %s7300_s25  ;;  %s7348_s25 = smov 35  }
  0x68   : > { %1825 = vrot.lane.b32.xlu1 %v1498_v14, %s7302_s20  ;;  %1823 = vrot.lane.b32.xlu0 %v1491_v15, %s7302_s20  ;;  %s7344_s20 = smov 34  }
  0x6c   : > { %1901 = vrot.lane.b32.xlu1 %v1491_v15, %s7356_s19  ;;  %1899 = vrot.lane.b32.xlu0 %v1566_v17, %s7356_s19 }
  0x70   : > { %1976 = vrot.lane.b32.xlu1 %v1498_v14, %s7346_s23  ;;  %1974 = vrot.lane.b32.xlu0 %v1491_v15, %s7346_s23 }
  0x74   : > { %2052 = vrot.lane.b32.xlu1 %v1491_v15, %s7348_s25  ;;  %2050 = vrot.lane.b32.xlu0 %v1566_v17, %s7348_s25 }
  0x78   : > { %2127 = vrot.lane.b32.xlu1 %v1498_v14, %s7344_s20  ;;  %2125 = vrot.lane.b32.xlu0 %v1491_v15, %s7344_s20 }
  0x7c   : > { %338 = vrot.lane.b32.xlu1 %v5238_v21, %s5088_s28  ;;  %336 = vrot.lane.b32.xlu0 %v5241_v22, %s5088_s28 }
  0x80   : > { %404 = vrot.lane.b32.xlu1 %v5248_v25, %s7314_s27  ;;  %402 = vrot.lane.b32.xlu0 %v5238_v21, %s7314_s27  ;;  %s7392_s27 = smov 46  }
  0x84   : > { %466 = vrot.lane.b32.xlu1 %v5238_v21, %s7360_s29  ;;  %464 = vrot.lane.b32.xlu0 %v5241_v22, %s7360_s29 }
  0x86   : > { %v399_v29 = vpop.permute.xlu1 %398  ;;  %v5268_v30 = vpop.permute.xlu0 %334 }
  0x87   : > { %v406_v33 = vrot.slane %v399_v29, 4  ;;  %v341_v36 = vrot.slane %v5268_v30, 4 }
  0x88   : > { %528 = vrot.lane.b32.xlu1 %v5248_v25, %s7310_s30  ;;  %526 = vrot.lane.b32.xlu0 %v5238_v21, %s7310_s30  ;;  %s7391_s30 = smov 55  }
  0x8a   : > { %v5275_v31 = vpop.permute.xlu1 %462  ;;  %v523_v32 = vpop.permute.xlu0 %522 }
  0x8b   : > { %v469_v39 = vrot.slane %v5275_v31, 4  ;;  %v530_v46 = vrot.slane %v523_v32, 4 }
  0x8c   : > { %590 = vrot.lane.b32.xlu1 %v5238_v21, %s7358_s7  ;;  %588 = vrot.lane.b32.xlu0 %v5241_v22, %s7358_s7 }
  0x8e   : > { %v5281_v34 = vpop.permute.xlu1 %400  ;;  %v333_v35 = vpop.permute.xlu0 %332 }
  0x8f   : > { %v407_v37 = vrot.slane %v5281_v34, 4  ;;  %v340_v38 = vrot.slane %v333_v35, 4 }
  0x90   : > { %652 = vrot.lane.b32.xlu1 %v5248_v25, %s7307_s8  ;;  %650 = vrot.lane.b32.xlu0 %v5238_v21, %s7307_s8  ;;  %s7390_s8 = smov 56  }
  0x91   : > { %v410_v40 = vsel %vm344_vm3, %v406_v33, %v407_v37  ;;  %v345_v41 = vsel %vm344_vm3, %v340_v38, %v341_v36 }
  0x92   : > { %v412_v42 = vsel %vm411_vm4, %v399_v29, %v410_v40  ;;  %v347_v43 = vsel %vm346_vm5, %v333_v35, %v345_v41  ;;  %v5298_v44 = vpop.permute.xlu1 %524  ;;  %v461_v45 = vpop.permute.xlu0 %460 }
  0x93   : > { %422 = vst [vmem:[#allocation2 + $0x20] sm:$0x33] %v412_v42  ;;  %357 = vst [vmem:[#allocation2] sm:$0xcc] %v347_v43  ;;  %v531_v47 = vrot.slane %v5298_v44, 4  ;;  %v468_v48 = vrot.slane %v461_v45, 4 }
  0x94   : > { %714 = vrot.lane.b32.xlu1 %v5238_v21, %s7317_s9  ;;  %712 = vrot.lane.b32.xlu0 %v5241_v22, %s7317_s9  ;;  %s7393_s9 = smov 45  }
  0x95   : > { %v534_v49 = vsel %vm344_vm3, %v530_v46, %v531_v47  ;;  %v472_v50 = vsel %vm344_vm3, %v468_v48, %v469_v39 }
  0x96   : > { %v536_v51 = vsel %vm535_vm6, %v523_v32, %v534_v49  ;;  %v474_v52 = vsel %vm473_vm7, %v461_v45, %v472_v50  ;;  %v5313_v53 = vpop.permute.xlu1 %586  ;;  %v585_v54 = vpop.permute.xlu0 %584 }
  0x97   : > { %546 = vst [vmem:[#allocation2 + $0x40] sm:$0x33] %v536_v51  ;;  %484 = vst [vmem:[#allocation2 + $0x20] sm:$0xcc] %v474_v52  ;;  %v593_v55 = vrot.slane %v5313_v53, 4  ;;  %v592_v56 = vrot.slane %v585_v54, 4 }
  0x98   : > { %776 = vrot.lane.b32.xlu1 %v5248_v25, %s7304_s10  ;;  %774 = vrot.lane.b32.xlu0 %v5238_v21, %s7304_s10  ;;  %s7389_s10 = smov 6  }
  0x99   : > { %v596_v57 = vsel %vm344_vm3, %v592_v56, %v593_v55 }
  0x9a   : > { %v598_v58 = vsel %vm597_vm8, %v585_v54, %v596_v57  ;;  %v5324_v59 = vpop.permute.xlu1 %648  ;;  %v647_v60 = vpop.permute.xlu0 %646  ;;  %v2158_v4 = vld [vmem:[#allocation2] sm:$0xff] }
  0x9b   : > { %608 = vst [vmem:[#allocation2 + $0x40] sm:$0xcc] %v598_v58  ;;  %v655_v61 = vrot.slane %v5324_v59, 4  ;;  %v654_v62 = vrot.slane %v647_v60, 4 }
  0x9c   : > { %848 = vrot.lane.b32.xlu1 %v5238_v21, %s7359_s11  ;;  %846 = vrot.lane.b32.xlu0 %v5241_v22, %s7359_s11 }
  0x9d   : > { %v658_v63 = vsel %vm344_vm3, %v654_v62, %v655_v61 }
  0x9e   : > { %v660_v0 = vsel %vm659_vm9, %v647_v60, %v658_v63  ;;  %v5335_v1 = vpop.permute.xlu1 %710  ;;  %v709_v2 = vpop.permute.xlu0 %708  ;;  %v2162_v6 = vld [vmem:[#allocation2 + $0x20] sm:$0xff]  ;;  %v1479_v63 = vld [vmem:[%s5169_s26 + $0xa] sm:$0xff] }
  0x9f   : > { %670 = vst [vmem:[#allocation2 + $0x60] sm:$0x33] %v660_v0  ;;  %v717_v7 = vrot.slane %v5335_v1, 4  ;;  %v716_v8 = vrot.slane %v709_v2, 4  ;;  %v4819_v9 = vcombine.high %v2158_v4, %v2162_v6  ;;  %v4818_v10 = vcombine.low %v2158_v4, %v2162_v6 }
  0xa0   : > { %923 = vrot.lane.b32.xlu1 %v5248_v25, %s5096_s12  ;;  %921 = vrot.lane.b32.xlu0 %v5238_v21, %s5096_s12 }
  0xa1   : > { %v720_v11 = vsel %vm344_vm3, %v716_v8, %v717_v7  ;;  %2521 = vmatprep.subr.bf16.mxu0 %v4819_v9  ;;  %v1499_v9 = vcombine.high %v1479_v63, %v1479_v63 }
  0xa2   : > { %v722_v12 = vsel %vm7341_vm10, %v709_v2, %v720_v11  ;;  %v5346_v13 = vpop.permute.xlu1 %772  ;;  %v771_v14 = vpop.permute.xlu0 %770  ;;  %2522 = vmatpush1.bf16.msra.mxu0 %v4818_v10  ;;  %v2166_v35 = vld [vmem:[#allocation2 + $0x40] sm:$0xff] }
  0xa3   : > { %732 = vst [vmem:[#allocation2 + $0x60] sm:$0xcc] %v722_v12  ;;  %v779_v15 = vrot.slane %v5346_v13, 4  ;;  %v778_v16 = vrot.slane %v771_v14, 4 }
  0xa4   : > { %999 = vrot.lane.b32.xlu1 %v5238_v21, %s7361_s13  ;;  %997 = vrot.lane.b32.xlu0 %v5241_v22, %s7361_s13 }
  0xa5   : > { %v782_v17 = vsel %vm344_vm3, %v778_v16, %v779_v15 }
  0xa6   : > { %v784_v18 = vsel %vm783_vm11, %v771_v14, %v782_v17  ;;  %v5357_v19 = vpop.permute.xlu1 %844  ;;  %v843_v20 = vpop.permute.xlu0 %842 }
  0xa7   : > { %794 = vst [vmem:[#allocation2 + $0x80] sm:$0x33] %v784_v18  ;;  %v853_v23 = vrot.slane %v5357_v19, 4  ;;  %v852_v24 = vrot.slane %v843_v20, 4 }
  0xa8   : > { %1074 = vrot.lane.b32.xlu1 %v5248_v25, %s5098_s14  ;;  %1072 = vrot.lane.b32.xlu0 %v5238_v21, %s5098_s14 }
  0xa9   : > { %v857_v27 = vsel %vm344_vm3, %v852_v24, %v853_v23 }
  0xaa   : > { %v859_v29 = vsel %vm7343_vm12, %v843_v20, %v857_v27  ;;  %v5368_v32 = vpop.permute.xlu1 %919  ;;  %v918_v33 = vpop.permute.xlu0 %917  ;;  %v2170_v38 = vld [vmem:[#allocation2 + $0x60] sm:$0xff]  ;;  %v5421_v27 = vrot.slane %v1499_v9, %v5164_v5 }
  0xab   : > { %870 = vst [vmem:[#allocation2 + $0x80] sm:$0xcc] %v859_v29  ;;  %v928_v40 = vrot.slane %v5368_v32, 4  ;;  %v927_v41 = vrot.slane %v918_v33, 4  ;;  %v4827_v42 = vcombine.high %v2166_v35, %v2170_v38  ;;  %v4826_v43 = vcombine.low %v2166_v35, %v2170_v38 }
  0xac   : > { %1150 = vrot.lane.b32.xlu1 %v5238_v21, %s7354_s15  ;;  %1148 = vrot.lane.b32.xlu0 %v5241_v22, %s7354_s15  ;;  %v5424_v29 = vrot.slane %v1479_v63, %v5164_v5 }
  0xad   : > { %v932_v45 = vsel %vm344_vm3, %v927_v41, %v928_v40  ;;  %2523 = vmatprep.subr.bf16.mxu0 %v4827_v42 }
  0xae   : > { %v934_v46 = vsel %vm933_vm13, %v918_v33, %v932_v45  ;;  %v5379_v48 = vpop.permute.xlu1 %995  ;;  %v994_v49 = vpop.permute.xlu0 %993  ;;  %2524 = vmatpush1.bf16.msra.mxu0 %v4826_v43  ;;  %v1574_v33 = vcombine.low %v1479_v63, %v1479_v63 }
  0xaf   : > { %945 = vst [vmem:[#allocation2 + $0xa0] sm:$0x33] %v934_v46  ;;  %v1004_v50 = vrot.slane %v5379_v48, 4  ;;  %v1003_v51 = vrot.slane %v994_v49, 4 }
  0xb0   : > { %1225 = vrot.lane.b32.xlu1 %v5248_v25, %s7350_s16  ;;  %1223 = vrot.lane.b32.xlu0 %v5238_v21, %s7350_s16  ;;  %v5438_v43 = vrot.slane %v1574_v33, %v5164_v5 }
  0xb1   : > { %v1008_v52 = vsel %vm344_vm3, %v1003_v51, %v1004_v50 }
  0xb2   : > { %v1010_v54 = vsel %vm7332_vm14, %v994_v49, %v1008_v52  ;;  %v5390_v56 = vpop.permute.xlu1 %1070  ;;  %v1069_v57 = vpop.permute.xlu0 %1068  ;;  %v2174_v16 = vld [vmem:[#allocation2 + $0x80] sm:$0xff]  ;;  %vm361_vm14 = vcmask 850950  }
  0xb3   : > { %1021 = vst [vmem:[#allocation2 + $0xa0] sm:$0xcc] %v1010_v54  ;;  %v1079_v58 = vrot.slane %v5390_v56, 4  ;;  %v1078_v60 = vrot.slane %v1069_v57, 4 }
  0xb4   : > { %1301 = vrot.lane.b32.xlu1 %v5238_v21, %s7352_s17  ;;  %1299 = vrot.lane.b32.xlu0 %v5241_v22, %s7352_s17 }
  0xb5   : > { %v1083_v62 = vsel %vm344_vm3, %v1078_v60, %v1079_v58 }
  0xb6   : > { %v1085_v0 = vsel %vm7331_vm15, %v1069_v57, %v1083_v62  ;;  %v5402_v2 = vpop.permute.xlu1 %1146  ;;  %v1145_v4 = vpop.permute.xlu0 %1144  ;;  %vm360_vm15 = vcmask 1043458  }
  0xb7   : > { %1096 = vst [vmem:[#allocation2 + $0xc0] sm:$0x33] %v1085_v0  ;;  %v1155_v6 = vrot.slane %v5402_v2, 4  ;;  %v1154_v8 = vrot.slane %v1145_v4, 4 }
  0xb8   : > { %1376 = vrot.lane.b32.xlu1 %v5248_v25, %s7339_s18  ;;  %1374 = vrot.lane.b32.xlu0 %v5238_v21, %s7339_s18 }
  0xb9   : > { %v1159_v10 = vsel %vm344_vm3, %v1154_v8, %v1155_v6 }
  0xba   : > { %v1161_v11 = vsel %vm7306_vm0, %v1145_v4, %v1159_v10  ;;  %v5413_v12 = vpop.permute.xlu1 %1221  ;;  %v1220_v14 = vpop.permute.xlu0 %1219  ;;  %v2178_v17 = vld [vmem:[#allocation2 + $0xa0] sm:$0xff]  ;;  %vm7312_vm0 = vcmask 64512  }
  0xbb   : > { %1172 = vst [vmem:[#allocation2 + $0xc0] sm:$0xcc] %v1161_v11  ;;  %v1230_v18 = vrot.slane %v5413_v12, 4  ;;  %v1229_v25 = vrot.slane %v1220_v14, 4  ;;  %v4835_v20 = vcombine.high %v2174_v16, %v2178_v17  ;;  %v4834_v24 = vcombine.low %v2174_v16, %v2178_v17 }
  0xbc   : > { %1452 = vrot.lane.b32.xlu1 %v5238_v21, %s7389_s10  ;;  %1450 = vrot.lane.b32.xlu0 %v5241_v22, %s7389_s10 }
  0xbd   : > { %v1234_v35 = vsel %vm344_vm3, %v1229_v25, %v1230_v18  ;;  %2525 = vmatprep.subr.bf16.mxu0 %v4835_v20 }
  0xbe   : > { %v1236_v38 = vsel %vm7309_vm1, %v1220_v14, %v1234_v35  ;;  %v5430_v41 = vpop.permute.xlu1 %1297  ;;  %v1296_v21 = vpop.permute.xlu0 %1295  ;;  %2526 = vmatpush1.bf16.msra.mxu0 %v4834_v24  ;;  %vm7313_vm1 = vcmask 56320  }
  0xbf   : > { %1247 = vst [vmem:[#allocation2 + $0xe0] sm:$0x33] %v1236_v38  ;;  %v1306_v22 = vrot.slane %v5430_v41, 4  ;;  %v1305_v42 = vrot.slane %v1296_v21, 4 }
  0xc0   : > { %1527 = vrot.lane.b32.xlu1 %v5421_v27, %s7390_s8  ;;  %1525 = vrot.lane.b32.xlu0 %v5424_v29, %s7390_s8 }
  0xc1   : > { %v1310_v45 = vsel %vm344_vm3, %v1305_v42, %v1306_v22 }
  0xc2   : > { %v1312_v46 = vsel %vm7312_vm0, %v1296_v21, %v1310_v45  ;;  %v5444_v49 = vpop.permute.xlu1 %1372  ;;  %v1371_v51 = vpop.permute.xlu0 %1370  ;;  %vm7316_vm0 = vcmask 48128   ;;  %v2182_v14 = vld [vmem:[#allocation2 + $0xc0] sm:$0xff] }
  0xc3   : > { %1323 = vst [vmem:[#allocation2 + $0xe0] sm:$0xcc] %v1312_v46  ;;  %v1381_v52 = vrot.slane %v5444_v49, 4  ;;  %v1380_v54 = vrot.slane %v1371_v51, 4 }
  0xc4   : > { %1603 = vrot.lane.b32.xlu1 %v5424_v29, %s7391_s30  ;;  %1601 = vrot.lane.b32.xlu0 %v5438_v43, %s7391_s30 }
  0xc5   : > { %v1385_v57 = vsel %vm344_vm3, %v1380_v54, %v1381_v52 }
  0xc6   : > { %v1387_v60 = vsel %vm7313_vm1, %v1371_v51, %v1385_v57  ;;  %v5455_v62 = vpop.permute.xlu1 %1448  ;;  %v1447_v63 = vpop.permute.xlu0 %1446  ;;  %vm7319_vm1 = vcmask 457728  }
  0xc7   : > { %1398 = vst [vmem:[#allocation2 + $0x100] sm:$0x33] %v1387_v60  ;;  %v1457_v0 = vrot.slane %v5455_v62, 4  ;;  %v1456_v4 = vrot.slane %v1447_v63, 4 }
  0xc8   : > { %1678 = vrot.lane.b32.xlu1 %v5421_v27, %s7337_s24  ;;  %1676 = vrot.lane.b32.xlu0 %v5424_v29, %s7337_s24 }
  0xc9   : > { %v1461_v8 = vsel %vm344_vm3, %v1456_v4, %v1457_v0 }
  0xca   : > { %v1463_v9 = vsel %vm7316_vm0, %v1447_v63, %v1461_v8  ;;  %v5466_v10 = vpop.permute.xlu1 %1523  ;;  %v1522_v11 = vpop.permute.xlu0 %1521  ;;  %v2186_v16 = vld [vmem:[#allocation2 + $0xe0] sm:$0xff]  ;;  %vm7320_vm0 = vcmask 449536  }
  0xcb   : > { %1474 = vst [vmem:[#allocation2 + $0x100] sm:$0xcc] %v1463_v9  ;;  %v1532_v17 = vrot.slane %v5466_v10, 4  ;;  %v1531_v25 = vrot.slane %v1522_v11, 4  ;;  %v4843_v20 = vcombine.high %v2182_v14, %v2186_v16  ;;  %v4842_v24 = vcombine.low %v2182_v14, %v2186_v16 }
  0xcc   : > { %1754 = vrot.lane.b32.xlu1 %v5424_v29, %s7392_s27  ;;  %1752 = vrot.lane.b32.xlu0 %v5438_v43, %s7392_s27 }
  0xcd   : > { %v1536_v33 = vsel %vm344_vm3, %v1531_v25, %v1532_v17  ;;  %2527 = vmatprep.subr.bf16.mxu0 %v4843_v20 }
  0xce   : > { %v1538_v35 = vsel %vm7319_vm1, %v1522_v11, %v1536_v33  ;;  %v5477_v38 = vpop.permute.xlu1 %1599  ;;  %v1598_v21 = vpop.permute.xlu0 %1597  ;;  %2528 = vmatpush1.bf16.msra.mxu0 %v4842_v24  ;;  %vm7321_vm1 = vcmask 441344  }
  0xcf   : > { %1549 = vst [vmem:[#allocation2 + $0x120] sm:$0x33] %v1538_v35  ;;  %v7335_v42 = vrot.slane %v5477_v38, 4  ;;  %v1607_v45 = vrot.slane %v1598_v21, 4 }
  0xd0   : > { %1829 = vrot.lane.b32.xlu1 %v5421_v27, %s7393_s9  ;;  %1827 = vrot.lane.b32.xlu0 %v5424_v29, %s7393_s9 }
  0xd1   : > { %v1612_v46 = vsel %vm344_vm3, %v1607_v45, %v7335_v42 }
  0xd2   : > { %v1614_v51 = vsel %vm7320_vm0, %v1598_v21, %v1612_v46  ;;  %v5488_v54 = vpop.permute.xlu1 %1674  ;;  %v1673_v57 = vpop.permute.xlu0 %1672  ;;  %vm7322_vm0 = vcmask 375808   ;;  %v2190_v35 = vld [vmem:[#allocation2 + $0x100] sm:$0xff] }
  0xd3   : > { %1625 = vst [vmem:[#allocation2 + $0x120] sm:$0xcc] %v1614_v51  ;;  %v7330_v60 = vrot.slane %v5488_v54, 4  ;;  %v1682_v63 = vrot.slane %v1673_v57, 4 }
  0xd4   : > { %1905 = vrot.lane.b32.xlu1 %v5424_v29, %s7356_s19  ;;  %1903 = vrot.lane.b32.xlu0 %v5438_v43, %s7356_s19 }
  0xd5   : > { %v1687_v4 = vsel %vm344_vm3, %v1682_v63, %v7330_v60  ;;  %v5062_v63 = vld [vmem:[%s5169_s26 + $0x10] ss:$0 sps:$4 sm:$0x33]  }
  0xd6   : > { %v1689_v8 = vsel %vm7321_vm1, %v1673_v57, %v1687_v4  ;;  %v5499_v9 = vpop.permute.xlu1 %1750  ;;  %v1749_v11 = vpop.permute.xlu0 %1748  ;;  %vm7323_vm1 = vcmask 367616  }
  0xd7   : > { %1700 = vst [vmem:[#allocation2 + $0x140] sm:$0x33] %v1689_v8  ;;  %v7329_v14 = vrot.slane %v5499_v9, 4  ;;  %v1758_v16 = vrot.slane %v1749_v11, 4 }
  0xd8   : > { %1980 = vrot.lane.b32.xlu1 %v5421_v27, %s7346_s23  ;;  %1978 = vrot.lane.b32.xlu0 %v5424_v29, %s7346_s23 }
  0xd9   : > { %v1763_v25 = vsel %vm344_vm3, %v1758_v16, %v7329_v14 }
  0xda   : > { %v1765_v20 = vsel %vm7322_vm0, %v1749_v11, %v1763_v25  ;;  %v5510_v24 = vpop.permute.xlu1 %1825  ;;  %v1824_v33 = vpop.permute.xlu0 %1823  ;;  %v2194_v21 = vld [vmem:[#allocation2 + $0x120] sm:$0xff]  ;;  %vm7324_vm0 = vcmask 359424  }
  0xdb   : > { %1776 = vst [vmem:[#allocation2 + $0x140] sm:$0xcc] %v1765_v20  ;;  %v7328_v45 = vrot.slane %v5510_v24, 4  ;;  %v1833_v46 = vrot.slane %v1824_v33, 4  ;;  %v4851_v51 = vcombine.high %v2190_v35, %v2194_v21  ;;  %v4850_v57 = vcombine.low %v2190_v35, %v2194_v21 }
  0xdc   : > { %2056 = vrot.lane.b32.xlu1 %v5424_v29, %s7348_s25  ;;  %2054 = vrot.lane.b32.xlu0 %v5438_v43, %s7348_s25  ;;  %v841_v43 = vrot.slane %v5062_v63, %v5164_v5  ;;  %v5063_v35 = vld [vmem:[%s5169_s26 + $0x10] ss:$0 sps:$4 sm:$0x33]  }
  0xdd   : > { %v1838_v4 = vsel %vm344_vm3, %v1833_v46, %v7328_v45  ;;  %2529 = vmatprep.subr.bf16.mxu0 %v4851_v51  ;;  %v4809_v21 = vld.sshfl [vmem:[%s5169_s26 + $0x10] sm:$0x3 pattern:$0x76325410] }
  0xde   : > { %v1840_v8 = vsel %vm7323_vm1, %v1824_v33, %v1838_v4  ;;  %v5522_v11 = vpop.permute.xlu1 %1901  ;;  %v1900_v16 = vpop.permute.xlu0 %1899  ;;  %2530 = vmatpush1.bf16.msra.mxu0 %v4850_v57  ;;  %vm7326_vm1 = vcmask 293888   ;;  %v5064_v63 = vld [vmem:[%s5169_s26 + $0x10] ss:$0 sps:$4 sm:$0x33]  }
  0xdf   : > { %1851 = vst [vmem:[#allocation2 + $0x160] sm:$0x33] %v1840_v8  ;;  %v7325_v25 = vrot.slane %v5522_v11, 4  ;;  %v1909_v20 = vrot.slane %v1900_v16, 4 }
  0xe0   : > { %2131 = vrot.lane.b32.xlu1 %v5421_v27, %s7344_s20  ;;  %2129 = vrot.lane.b32.xlu0 %v5424_v29, %s7344_s20  ;;  %v992_v29 = vrot.slane %v5063_v35, %v5164_v5  ;;  %v5065_v35 = vld [vmem:[%s5169_s26 + $0x10] ss:$0 sps:$4 sm:$0x33]  }
  0xe1   : > { %v1914_v33 = vsel %vm344_vm3, %v1909_v20, %v7325_v25 }
  0xe2   : > { %v1916_v46 = vsel %vm7324_vm0, %v1900_v16, %v1914_v33  ;;  %v5536_v51 = vpop.permute.xlu1 %1976  ;;  %v1975_v57 = vpop.permute.xlu0 %1974  ;;  %vm7334_vm0 = vcmask 285696  }
  0xe3   : > { %1927 = vst [vmem:[#allocation2 + $0x160] sm:$0xcc] %v1916_v46  ;;  %v7327_v27 = vrot.slane %v5536_v51, 4  ;;  %v1984_v4 = vrot.slane %v1975_v57, 4 }
  0xe4   : > { %925 = vrot.lane.b32.xlu1 %v4809_v21, %s5096_s12  ;;  %850 = vrot.lane.b32.xlu0 %v841_v43, %s7359_s11  ;;  %v1143_v43 = vrot.slane %v5064_v63, %v5164_v5 }
  0xe5   : > { %v1989_v8 = vsel %vm344_vm3, %v1984_v4, %v7327_v27  ;;  %v2198_v27 = vld [vmem:[#allocation2 + $0x140] sm:$0xff] }
  0xe6   : > { %v1991_v16 = vsel %vm7326_vm1, %v1975_v57, %v1989_v8  ;;  %v5547_v20 = vpop.permute.xlu1 %2052  ;;  %v2051_v33 = vpop.permute.xlu0 %2050  ;;  %vm7342_vm1 = vcmask 277504  }
  0xe7   : > { %2002 = vst [vmem:[#allocation2 + $0x180] sm:$0x33] %v1991_v16  ;;  %v7333_v46 = vrot.slane %v5547_v20, 4  ;;  %v2060_v25 = vrot.slane %v2051_v33, 4 }
  0xe8   : > { %1076 = vrot.lane.b32.xlu1 %v4809_v21, %s5098_s14  ;;  %1001 = vrot.lane.b32.xlu0 %v992_v29, %s7361_s13 }
  0xe9   : > { %v2065_v4 = vsel %vm344_vm3, %v2060_v25, %v7333_v46  ;;  %v1294_v25 = vrot.slane %v5065_v35, %v5164_v5 }
  0xea   : > { %v2067_v57 = vsel %vm7334_vm0, %v2051_v33, %v2065_v4  ;;  %v5558_v8 = vpop.permute.xlu1 %2127  ;;  %v2126_v16 = vpop.permute.xlu0 %2125  ;;  %v2202_v45 = vld [vmem:[#allocation2 + $0x160] sm:$0xff]  ;;  %v5066_v33 = vld [vmem:[%s5169_s26 + $0x10] ss:$0 sps:$4 sm:$0x33]   ;;  %vm5569_vm0 = vmor %vm361_vm14, %vm360_vm15  ;;  %vm2496_vm14 = vcmask 1045504   ;;  %vm7396_vm15 = vcmask 211968  }
  0xeb   : > { %2078 = vst [vmem:[#allocation2 + $0x180] sm:$0xcc] %v2067_v57  ;;  %v7336_v14 = vrot.slane %v5558_v8, 4  ;;  %v2135_v29 = vrot.slane %v2126_v16, 4  ;;  %v4859_v60 = vcombine.high %v2198_v27, %v2202_v45  ;;  %v4858_v63 = vcombine.low %v2198_v27, %v2202_v45 }
  0xec   : > { %1227 = vrot.lane.b32.xlu1 %v4809_v21, %s7350_s16  ;;  %1152 = vrot.lane.b32.xlu0 %v1143_v43, %s7354_s15  ;;  %v1445_v35 = vrot.slane %v5066_v33, %v5164_v5  ;;  %v2713_v27 = vsub.s32 0, %v5160_v3 }
  0xed   : > { %v2140_v4 = vsel %vm344_vm3, %v2135_v29, %v7336_v14  ;;  %2531 = vmatprep.subr.bf16.mxu0 %v4859_v60  ;;  %v5067_v60 = vld [vmem:[%s5169_s26 + $0x12] ss:$0 sps:$4 sm:$0x33]  }
  0xee   : > { %v2142_v57 = vsel %vm7342_vm1, %v2126_v16, %v2140_v4  ;;  %v339_v46 = vpop.permute.xlu1 %338  ;;  %v337_v45 = vpop.permute.xlu0 %336  ;;  %2532 = vmatpush1.bf16.msra.mxu0 %v4858_v63  ;;  %v5583_v4 = vld.sshfl [vmem:[%s5169_s26 + $0x12] sm:$0x3 pattern:$0x76325410] }
  0xef   : > { %2153 = vst [vmem:[#allocation2 + $0x1a0] sm:$0x33] %v2142_v57  ;;  %v343_v43 = vrot.slane %v339_v46, 4  ;;  %v342_v42 = vrot.slane %v337_v45, 4 }
  0xf0   : > { %1378 = vrot.lane.b32.xlu1 %v4809_v21, %s7339_s18  ;;  %1303 = vrot.lane.b32.xlu0 %v1294_v25, %s7352_s17  ;;  %s5114_s18 = smov 111  }
  0xf1   : > { %v352_v29 = vsel %vm346_vm5, %v339_v46, %v343_v43  ;;  %v348_v16 = vsel %vm344_vm3, %v341_v36, %v342_v42  ;;  %v350_v63 = vsel %vm344_vm3, %v342_v42, %v343_v43  ;;  %v1596_v36 = vrot.slane %v5067_v60, %v5164_v5  ;;  %v5068_v42 = vld [vmem:[%s5169_s26 + $0x12] ss:$0 sps:$4 sm:$0x33]  }
  0xf2   : > { %363 = vst.msk [vmem:[#allocation2 + $0x18] sm:$0xcc] %vm5569_vm0, %v352_v29  ;;  %v349_v21 = vsel %vm346_vm5, %v5268_v30, %v348_v16  ;;  %v351_v25 = vsel %vm346_vm5, %v337_v45, %v350_v63  ;;  %v405_v33 = vpop.permute.xlu1 %404  ;;  %v403_v57 = vpop.permute.xlu0 %402  ;;  %v2206_v63 = vld [vmem:[#allocation2 + $0x180] sm:$0xff] }
  0xf3   : > { %358 = vst [vmem:[#allocation2 + $0x8] sm:$0xcc] %v349_v21  ;;  %359 = vst [vmem:[#allocation2 + $0x10] sm:$0xcc] %v351_v25  ;;  %v409_v46 = vrot.slane %v405_v33, 4  ;;  %v408_v14 = vrot.slane %v403_v57, 4 }
  0xf4   : > { %1529 = vrot.lane.b32.xlu1 %v5583_v4, %s7390_s8  ;;  %1454 = vrot.lane.b32.xlu0 %v1445_v35, %s7389_s10 }
  0xf5   : > { %v417_v43 = vsel %vm411_vm4, %v405_v33, %v409_v46  ;;  %v413_v30 = vsel %vm344_vm3, %v407_v37, %v408_v14  ;;  %v415_v45 = vsel %vm344_vm3, %v408_v14, %v409_v46  ;;  %v5069_v46 = vld [vmem:[%s5169_s26 + $0x12] ss:$0 sps:$4 sm:$0x33]  }
  0xf6   : > { %425 = vst.msk [vmem:[#allocation2 + $0x38] sm:$0x33] %vm5250_vm2, %v417_v43  ;;  %v414_v29 = vsel %vm411_vm4, %v5281_v34, %v413_v30  ;;  %v416_v35 = vsel %vm411_vm4, %v403_v57, %v415_v45  ;;  %v467_v16 = vpop.permute.xlu1 %466  ;;  %v465_v60 = vpop.permute.xlu0 %464  ;;  %v2210_v21 = vld [vmem:[#allocation2 + $0x1a0] sm:$0x33]  ;;  %v1747_v34 = vrot.slane %v5068_v42, %v5164_v5 }
  0xf7   : > { %423 = vst [vmem:[#allocation2 + $0x28] sm:$0x33] %v414_v29  ;;  %424 = vst [vmem:[#allocation2 + $0x30] sm:$0x33] %v416_v35  ;;  %v471_v25 = vrot.slane %v467_v16, 4  ;;  %v470_v37 = vrot.slane %v465_v60, 4  ;;  %v4867_v33 = vcombine.high %v2206_v63, %v2210_v21  ;;  %v4866_v14 = vcombine.low %v2206_v63, %v2210_v21 }
  0xf8   : > { %1680 = vrot.lane.b32.xlu1 %v5583_v4, %s7337_s24  ;;  %1605 = vrot.lane.b32.xlu0 %v1596_v36, %s7391_s30  ;;  %s7449_s24 = smov 107  }
  0xf9   : > { %v479_v57 = vsel %vm473_vm7, %v467_v16, %v471_v25  ;;  %v475_v43 = vsel %vm344_vm3, %v469_v39, %v470_v37  ;;  %v477_v30 = vsel %vm344_vm3, %v470_v37, %v471_v25  ;;  %4874 = vmatprep.subr.msk.bf16.mxu0 %vm2496_vm14, %v4867_v33  ;;  %v2498_v45 = vsel %vm2496_vm14, %v4866_v14, 0  ;;  %v5625_v39 = vld [vmem:[%s7288_s1] sm:$0xf] }
  0xfa   : > { %487 = vst.msk [vmem:[#allocation2 + $0x38] sm:$0xcc] %vm5569_vm0, %v479_v57  ;;  %v476_v36 = vsel %vm473_vm7, %v5275_v31, %v475_v43  ;;  %v478_v42 = vsel %vm473_vm7, %v465_v60, %v477_v30  ;;  %v529_v29 = vpop.permute.xlu1 %528  ;;  %v527_v35 = vpop.permute.xlu0 %526  ;;  %2534 = vmatpush1.bf16.msra.mxu0 %v2498_v45  ;;  %v1898_v31 = vrot.slane %v5069_v46, %v5164_v5  ;;  %v5070_v60 = vld [vmem:[%s5169_s26 + $0x12] ss:$0 sps:$4 sm:$0x33]   ;;  %s7450_s26 = smov 126  }
  0xfb   : > { %485 = vst [vmem:[#allocation2 + $0x28] sm:$0xcc] %v476_v36  ;;  %486 = vst [vmem:[#allocation2 + $0x30] sm:$0xcc] %v478_v42  ;;  %v533_v16 = vrot.slane %v529_v29, 4  ;;  %v532_v63 = vrot.slane %v527_v35, 4  ;;  %v2049_v43 = vrot.slane %v5070_v60, %v5164_v5 }
  0xfc   : > { %1831 = vrot.lane.b32.xlu1 %v5583_v4, %s7393_s9  ;;  %1756 = vrot.lane.b32.xlu0 %v1747_v34, %s7392_s27 }
  0xfd   : > { %v541_v21 = vsel %vm535_vm6, %v529_v29, %v533_v16  ;;  %v537_v25 = vsel %vm344_vm3, %v531_v47, %v532_v63  ;;  %v539_v37 = vsel %vm344_vm3, %v532_v63, %v533_v16  ;;  %4875 = vmatmul.mubr.msk.bf16.vlgmr.msra.gmra.mrb[0].mxu0 %vm659_vm9, %v5625_v39  ;;  %v2160_v16 = vld [vmem:[#allocation2 + $0x10] sm:$0xff] }
  0xfe   : > { %549 = vst.msk [vmem:[#allocation2 + $0x58] sm:$0x33] %vm5250_vm2, %v541_v21  ;;  %v538_v33 = vsel %vm535_vm6, %v5298_v44, %v537_v25  ;;  %v540_v14 = vsel %vm535_vm6, %v527_v35, %v539_v37  ;;  %v591_v34 = vpop.permute.xlu1 %590  ;;  %v589_v46 = vpop.permute.xlu0 %588  ;;  %2635 = vmatprep.mubr.bf16.mxu0 %v5113_v28  ;;  %v2159_v28 = vld [vmem:[#allocation2 + $0x8] sm:$0xff] }
  0xff   : > { %547 = vst [vmem:[#allocation2 + $0x48] sm:$0x33] %v538_v33  ;;  %548 = vst [vmem:[#allocation2 + $0x50] sm:$0x33] %v540_v14  ;;  %v595_v47 = vrot.slane %v591_v34, 4  ;;  %v594_v57 = vrot.slane %v589_v46, 4 }
 0x100   : > { %1982 = vrot.lane.b32.xlu1 %v5583_v4, %s7346_s23  ;;  %1907 = vrot.lane.b32.xlu0 %v1898_v31, %s7356_s19  ;;  %s7452_s23 = smov 108  }
 0x101   : > { %v603_v30 = vsel %vm597_vm8, %v591_v34, %v595_v47  ;;  %v599_v44 = vsel %vm344_vm3, %v593_v55, %v594_v57  ;;  %v601_v45 = vsel %vm344_vm3, %v594_v57, %v595_v47  ;;  %v2214_v34 = vld [vmem:[%s7289_s2] sm:$0xff] }
 0x102   : > { %611 = vst.msk [vmem:[#allocation2 + $0x58] sm:$0xcc] %vm5569_vm0, %v603_v30  ;;  %v600_v36 = vsel %vm597_vm8, %v5313_v53, %v599_v44  ;;  %v602_v42 = vsel %vm597_vm8, %v589_v46, %v601_v45  ;;  %v653_v29 = vpop.permute.xlu1 %652  ;;  %v651_v35 = vpop.permute.xlu0 %650  ;;  %v2163_v5 = vld [vmem:[#allocation2 + $0x28] sm:$0xff]  ;;  %v2164_v63 = vld [vmem:[#allocation2 + $0x30] sm:$0xff] }
 0x103   : > { %609 = vst [vmem:[#allocation2 + $0x48] sm:$0xcc] %v600_v36  ;;  %610 = vst [vmem:[#allocation2 + $0x50] sm:$0xcc] %v602_v42  ;;  %v657_v31 = vrot.slane %v653_v29, 4  ;;  %v656_v55 = vrot.slane %v651_v35, 4  ;;  %v4821_v60 = vcombine.high %v2159_v28, %v2163_v5  ;;  %v4822_v21 = vcombine.low %v2160_v16, %v2164_v63 }
 0x104   : > { %2133 = vrot.lane.b32.xlu1 %v5583_v4, %s7344_s20  ;;  %2058 = vrot.lane.b32.xlu0 %v2049_v43, %s7348_s25  ;;  %v4823_v25 = vcombine.high %v2160_v16, %v2164_v63  ;;  %v4820_v53 = vcombine.low %v2159_v28, %v2163_v5  ;;  %s7451_s20 = smov 117   ;;  %s7454_s25 = smov 7  }
 0x105   : > { %v665_v37 = vsel %vm659_vm9, %v653_v29, %v657_v31  ;;  %v661_v33 = vsel %vm344_vm3, %v655_v61, %v656_v55  ;;  %v663_v14 = vsel %vm344_vm3, %v656_v55, %v657_v31  ;;  %2562 = vmatprep.subr.bf16.mxu1 %v4821_v60 }
 0x106   : > { %673 = vst.msk [vmem:[#allocation2 + $0x78] sm:$0x33] %vm5250_vm2, %v665_v37  ;;  %v662_v4 = vsel %vm659_vm9, %v5324_v59, %v661_v33  ;;  %v664_v46 = vsel %vm659_vm9, %v651_v35, %v663_v14  ;;  %2603 = vmatprep.subr.bf16.mxu0 %v4823_v25  ;;  %v715_v47 = vpop.permute.xlu1 %714  ;;  %v713_v57 = vpop.permute.xlu0 %712  ;;  %2563 = vmatpush1.bf16.msra.mxu1 %v4820_v53 }
 0x107   : > { %671 = vst [vmem:[#allocation2 + $0x68] sm:$0x33] %v662_v4  ;;  %672 = vst [vmem:[#allocation2 + $0x70] sm:$0x33] %v664_v46  ;;  %v719_v61 = vrot.slane %v715_v47, 4  ;;  %v718_v43 = vrot.slane %v713_v57, 4  ;;  %2604 = vmatpush1.bf16.msra.mxu0 %v4822_v21 }
 0x108   : > { %2217 = vperm.xlu0 %5053, %v2214_v34  }
 0x109   : > { %v727_v30 = vsel %vm7341_vm10, %v715_v47, %v719_v61  ;;  %v723_v44 = vsel %vm344_vm3, %v717_v7, %v718_v43  ;;  %v725_v59 = vsel %vm344_vm3, %v718_v43, %v719_v61 }
 0x10a   : > { %735 = vst.msk [vmem:[#allocation2 + $0x78] sm:$0xcc] %vm5569_vm0, %v727_v30  ;;  %v724_v45 = vsel %vm7341_vm10, %v5335_v1, %v723_v44  ;;  %v726_v28 = vsel %vm7341_vm10, %v713_v57, %v725_v59  ;;  %v777_v36 = vpop.permute.xlu1 %776  ;;  %v775_v42 = vpop.permute.xlu0 %774  ;;  %v2167_v53 = vld [vmem:[#allocation2 + $0x48] sm:$0xff]  ;;  %v2168_v4 = vld [vmem:[#allocation2 + $0x50] sm:$0xff]  ;;  %vm7397_vm10 = vmmov %vm7396_vm15 }
 0x10b   : > { %733 = vst [vmem:[#allocation2 + $0x68] sm:$0xcc] %v724_v45  ;;  %734 = vst [vmem:[#allocation2 + $0x70] sm:$0xcc] %v726_v28  ;;  %v781_v29 = vrot.slane %v777_v36, 4  ;;  %v780_v35 = vrot.slane %v775_v42, 4 }
 0x10d   : > { %v789_v5 = vsel %vm783_vm11, %v777_v36, %v781_v29  ;;  %v785_v7 = vsel %vm344_vm3, %v779_v15, %v780_v35  ;;  %v787_v16 = vsel %vm344_vm3, %v780_v35, %v781_v29 }
 0x10e   : > { %797 = vst.msk [vmem:[#allocation2 + $0x98] sm:$0x33] %vm5250_vm2, %v789_v5  ;;  %v786_v1 = vsel %vm783_vm11, %v5346_v13, %v785_v7  ;;  %v788_v63 = vsel %vm783_vm11, %v775_v42, %v787_v16  ;;  %v5695_v31 = vpop.permute.xlu1 %848  ;;  %v847_v55 = vpop.permute.xlu0 %846 }
 0x10f   : > { %795 = vst [vmem:[#allocation2 + $0x88] sm:$0x33] %v786_v1  ;;  %796 = vst [vmem:[#allocation2 + $0x90] sm:$0x33] %v788_v63  ;;  %v855_v60 = vrot.slane %v5695_v31, 4  ;;  %v854_v21 = vrot.slane %v847_v55, 4 }
 0x111   : > { %v860_v15 = vsel %vm344_vm3, %v853_v23, %v854_v21  ;;  %v862_v25 = vsel %vm344_vm3, %v854_v21, %v855_v60 }
 0x112   : > { %v861_v13 = vsel %vm7343_vm12, %v5357_v19, %v860_v15  ;;  %v863_v37 = vsel %vm7343_vm12, %v847_v55, %v862_v25  ;;  %v5707_v33 = vpop.permute.xlu1 %923  ;;  %v922_v14 = vpop.permute.xlu0 %921  ;;  %v2171_v34 = vld [vmem:[#allocation2 + $0x68] sm:$0xff]  ;;  %v2172_v46 = vld [vmem:[#allocation2 + $0x70] sm:$0xff] }
 0x113   : > { %871 = vst [vmem:[#allocation2 + $0x88] sm:$0xcc] %v861_v13  ;;  %872 = vst [vmem:[#allocation2 + $0x90] sm:$0xcc] %v863_v37  ;;  %v930_v23 = vrot.slane %v5707_v33, 4  ;;  %v929_v47 = vrot.slane %v922_v14, 4  ;;  %v4829_v57 = vcombine.high %v2167_v53, %v2171_v34  ;;  %v4830_v61 = vcombine.low %v2168_v4, %v2172_v46 }
 0x114   : > { %v4831_v43 = vcombine.high %v2168_v4, %v2172_v46  ;;  %v4828_v30 = vcombine.low %v2167_v53, %v2171_v34 }
 0x115   : > { %v935_v19 = vsel %vm344_vm3, %v928_v40, %v929_v47  ;;  %v937_v44 = vsel %vm344_vm3, %v929_v47, %v930_v23  ;;  %2564 = vmatprep.subr.bf16.mxu1 %v4829_v57 }
 0x116   : > { %v936_v59 = vsel %vm933_vm13, %v5368_v32, %v935_v19  ;;  %v938_v45 = vsel %vm933_vm13, %v922_v14, %v937_v44  ;;  %2605 = vmatprep.subr.bf16.mxu0 %v4831_v43  ;;  %v5719_v28 = vpop.permute.xlu1 %999  ;;  %v998_v36 = vpop.permute.xlu0 %997  ;;  %2565 = vmatpush1.bf16.msra.mxu1 %v4828_v30 }
 0x117   : > { %946 = vst [vmem:[#allocation2 + $0xa8] sm:$0x33] %v936_v59  ;;  %947 = vst [vmem:[#allocation2 + $0xb0] sm:$0x33] %v938_v45  ;;  %v1006_v42 = vrot.slane %v5719_v28, 4  ;;  %v1005_v40 = vrot.slane %v998_v36, 4  ;;  %2606 = vmatpush1.bf16.msra.mxu0 %v4830_v61 }
 0x119   : > { %v1011_v29 = vsel %vm344_vm3, %v1004_v50, %v1005_v40  ;;  %v1013_v32 = vsel %vm344_vm3, %v1005_v40, %v1006_v42 }
 0x11a   : > { %v1012_v35 = vsel %vm7396_vm15, %v5379_v48, %v1011_v29  ;;  %v1014_v5 = vsel %vm7397_vm10, %v998_v36, %v1013_v32  ;;  %v5731_v7 = vpop.permute.xlu1 %1074  ;;  %v1073_v16 = vpop.permute.xlu0 %1072  ;;  %vm7398_vm15 = vcmask 146432   ;;  %v2175_v14 = vld [vmem:[#allocation2 + $0x88] sm:$0xff]  ;;  %v2176_v57 = vld [vmem:[#allocation2 + $0x90] sm:$0xff] }
 0x11b   : > { %1022 = vst [vmem:[#allocation2 + $0xa8] sm:$0xcc] %v1012_v35  ;;  %1023 = vst [vmem:[#allocation2 + $0xb0] sm:$0xcc] %v1014_v5  ;;  %v1081_v1 = vrot.slane %v5731_v7, 4  ;;  %v1080_v63 = vrot.slane %v1073_v16, 4 }
 0x11c   : > { %vm7399_vm10 = vmmov %vm7398_vm15 }
 0x11d   : > { %v1086_v50 = vsel %vm344_vm3, %v1079_v58, %v1080_v63  ;;  %v1088_v55 = vsel %vm344_vm3, %v1080_v63, %v1081_v1 }
 0x11e   : > { %v1087_v48 = vsel %vm7398_vm15, %v5390_v56, %v1086_v50  ;;  %v1089_v21 = vsel %vm7399_vm10, %v1073_v16, %v1088_v55  ;;  %v5743_v15 = vpop.permute.xlu1 %1150  ;;  %v1149_v25 = vpop.permute.xlu0 %1148  ;;  %vm7400_vm15 = vcmask 138240  }
 0x11f   : > { %1097 = vst [vmem:[#allocation2 + $0xc8] sm:$0x33] %v1087_v48  ;;  %1098 = vst [vmem:[#allocation2 + $0xd0] sm:$0x33] %v1089_v21  ;;  %v1157_v53 = vrot.slane %v5743_v15, 4  ;;  %v1156_v13 = vrot.slane %v1149_v25, 4 }
 0x120   : > { %vm7401_vm10 = vmmov %vm7400_vm15 }
 0x121   : > { %v1162_v58 = vsel %vm344_vm3, %v1155_v6, %v1156_v13  ;;  %v1164_v37 = vsel %vm344_vm3, %v1156_v13, %v1157_v53 }
 0x122   : > { %v1163_v56 = vsel %vm7400_vm15, %v5402_v2, %v1162_v58  ;;  %v1165_v34 = vsel %vm7401_vm10, %v1149_v25, %v1164_v37  ;;  %v5755_v4 = vpop.permute.xlu1 %1225  ;;  %v1224_v46 = vpop.permute.xlu0 %1223  ;;  %v2179_v47 = vld [vmem:[#allocation2 + $0xa8] sm:$0xff]  ;;  %v2180_v61 = vld [vmem:[#allocation2 + $0xb0] sm:$0xff]  ;;  %vm7402_vm15 = vcmask 130048  }
 0x123   : > { %1173 = vst [vmem:[#allocation2 + $0xc8] sm:$0xcc] %v1163_v56  ;;  %1174 = vst [vmem:[#allocation2 + $0xd0] sm:$0xcc] %v1165_v34  ;;  %v1232_v6 = vrot.slane %v5755_v4, 4  ;;  %v1231_v43 = vrot.slane %v1224_v46, 4  ;;  %v4837_v30 = vcombine.high %v2175_v14, %v2179_v47  ;;  %v4838_v19 = vcombine.low %v2176_v57, %v2180_v61 }
 0x124   : > { %v4839_v44 = vcombine.high %v2176_v57, %v2180_v61  ;;  %v4836_v59 = vcombine.low %v2175_v14, %v2179_v47  ;;  %vm7403_vm10 = vmmov %vm7402_vm15 }
 0x125   : > { %v1237_v2 = vsel %vm344_vm3, %v1230_v18, %v1231_v43  ;;  %v1239_v45 = vsel %vm344_vm3, %v1231_v43, %v1232_v6  ;;  %2566 = vmatprep.subr.bf16.mxu1 %v4837_v30 }
 0x126   : > { %v1238_v36 = vsel %vm7402_vm15, %v5413_v12, %v1237_v2  ;;  %v1240_v40 = vsel %vm7403_vm10, %v1224_v46, %v1239_v45  ;;  %2607 = vmatprep.subr.bf16.mxu0 %v4839_v44  ;;  %v5767_v29 = vpop.permute.xlu1 %1301  ;;  %v1300_v32 = vpop.permute.xlu0 %1299  ;;  %2567 = vmatpush1.bf16.msra.mxu1 %v4836_v59  ;;  %vm7404_vm15 = vcmask 64512  }
 0x127   : > { %1248 = vst [vmem:[#allocation2 + $0xe8] sm:$0x33] %v1238_v36  ;;  %1249 = vst [vmem:[#allocation2 + $0xf0] sm:$0x33] %v1240_v40  ;;  %v1308_v35 = vrot.slane %v5767_v29, 4  ;;  %v1307_v18 = vrot.slane %v1300_v32, 4  ;;  %2608 = vmatpush1.bf16.msra.mxu0 %v4838_v19 }
 0x128   : > { %vm7405_vm10 = vmmov %vm7404_vm15 }
 0x129   : > { %v1313_v5 = vsel %vm344_vm3, %v1306_v22, %v1307_v18  ;;  %v1315_v12 = vsel %vm344_vm3, %v1307_v18, %v1308_v35 }
 0x12a   : > { %v1314_v16 = vsel %vm7404_vm15, %v5430_v41, %v1313_v5  ;;  %v1316_v63 = vsel %vm7405_vm10, %v1300_v32, %v1315_v12  ;;  %v5779_v50 = vpop.permute.xlu1 %1376  ;;  %v1375_v55 = vpop.permute.xlu0 %1374  ;;  %vm7406_vm15 = vcmask 56320   ;;  %v2183_v46 = vld [vmem:[#allocation2 + $0xc8] sm:$0xff]  ;;  %v2184_v30 = vld [vmem:[#allocation2 + $0xd0] sm:$0xff] }
 0x12b   : > { %1324 = vst [vmem:[#allocation2 + $0xe8] sm:$0xcc] %v1314_v16  ;;  %1325 = vst [vmem:[#allocation2 + $0xf0] sm:$0xcc] %v1316_v63  ;;  %v1383_v48 = vrot.slane %v5779_v50, 4  ;;  %v1382_v21 = vrot.slane %v1375_v55, 4 }
 0x12c   : > { %vm7407_vm10 = vmmov %vm7406_vm15  ;;  %v7412_v63 = vrot.slane %v5477_v38, 4 }
 0x12d   : > { %v1388_v22 = vsel %vm344_vm3, %v1381_v52, %v1382_v21  ;;  %v1390_v25 = vsel %vm344_vm3, %v1382_v21, %v1383_v48 }
 0x12e   : > { %v1389_v41 = vsel %vm7406_vm15, %v5444_v49, %v1388_v22  ;;  %v1391_v13 = vsel %vm7407_vm10, %v1375_v55, %v1390_v25  ;;  %v5791_v58 = vpop.permute.xlu1 %1452  ;;  %v1451_v37 = vpop.permute.xlu0 %1450  ;;  %vm7408_vm15 = vcmask 48128  }
 0x12f   : > { %1399 = vst [vmem:[#allocation2 + $0x108] sm:$0x33] %v1389_v41  ;;  %1400 = vst [vmem:[#allocation2 + $0x110] sm:$0x33] %v1391_v13  ;;  %v1459_v14 = vrot.slane %v5791_v58, 4  ;;  %v1458_v56 = vrot.slane %v1451_v37, 4 }
 0x130   : > { %vm7409_vm10 = vmmov %vm7408_vm15 }
 0x131   : > { %v1464_v52 = vsel %vm344_vm3, %v1457_v0, %v1458_v56  ;;  %v1466_v34 = vsel %vm344_vm3, %v1458_v56, %v1459_v14  ;;  %v7415_v56 = vrot.slane %v5488_v54, 4 }
 0x132   : > { %v1465_v49 = vsel %vm7408_vm15, %v5455_v62, %v1464_v52  ;;  %v1467_v47 = vsel %vm7409_vm10, %v1451_v37, %v1466_v34  ;;  %v5803_v57 = vpop.permute.xlu1 %1527  ;;  %v1526_v61 = vpop.permute.xlu0 %1525  ;;  %v2187_v43 = vld [vmem:[#allocation2 + $0xe8] sm:$0xff]  ;;  %v2188_v19 = vld [vmem:[#allocation2 + $0xf0] sm:$0xff]  ;;  %vm7410_vm15 = vcmask 457728  }
 0x133   : > { %1475 = vst [vmem:[#allocation2 + $0x108] sm:$0xcc] %v1465_v49  ;;  %1476 = vst [vmem:[#allocation2 + $0x110] sm:$0xcc] %v1467_v47  ;;  %v1534_v0 = vrot.slane %v5803_v57, 4  ;;  %v1533_v44 = vrot.slane %v1526_v61, 4  ;;  %v4845_v59 = vcombine.high %v2183_v46, %v2187_v43  ;;  %v4846_v2 = vcombine.low %v2184_v30, %v2188_v19 }
 0x134   : > { %v4847_v45 = vcombine.high %v2184_v30, %v2188_v19  ;;  %v4844_v36 = vcombine.low %v2183_v46, %v2187_v43  ;;  %vm7411_vm10 = vmmov %vm7410_vm15  ;;  %v7418_v30 = vrot.slane %v5499_v9, 4 }
 0x135   : > { %v1539_v62 = vsel %vm344_vm3, %v1532_v17, %v1533_v44  ;;  %v1541_v40 = vsel %vm344_vm3, %v1533_v44, %v1534_v0  ;;  %2568 = vmatprep.subr.bf16.mxu1 %v4845_v59 }
 0x136   : > { %v1540_v32 = vsel %vm7410_vm15, %v5466_v10, %v1539_v62  ;;  %v1542_v18 = vsel %vm7411_vm10, %v1526_v61, %v1541_v40  ;;  %2609 = vmatprep.subr.bf16.mxu0 %v4847_v45  ;;  %v5815_v5 = vpop.permute.xlu1 %1603  ;;  %v1602_v12 = vpop.permute.xlu0 %1601  ;;  %2569 = vmatpush1.bf16.msra.mxu1 %v4844_v36  ;;  %vm7413_vm15 = vcmask 449536  }
 0x137   : > { %1550 = vst [vmem:[#allocation2 + $0x128] sm:$0x33] %v1540_v32  ;;  %1551 = vst [vmem:[#allocation2 + $0x130] sm:$0x33] %v1542_v18  ;;  %v1610_v16 = vrot.slane %v5815_v5, 4  ;;  %v1609_v17 = vrot.slane %v1602_v12, 4  ;;  %2610 = vmatpush1.bf16.msra.mxu0 %v4846_v2 }
 0x138   : > { %vm7414_vm10 = vmmov %vm7413_vm15 }
 0x139   : > { %v1615_v55 = vsel %vm344_vm3, %v7412_v63, %v1609_v17  ;;  %v1617_v10 = vsel %vm344_vm3, %v1609_v17, %v1610_v16 }
 0x13a   : > { %v1616_v21 = vsel %vm7413_vm15, %v5477_v38, %v1615_v55  ;;  %v1618_v22 = vsel %vm7414_vm10, %v1602_v12, %v1617_v10  ;;  %v5827_v25 = vpop.permute.xlu1 %1678  ;;  %v1677_v41 = vpop.permute.xlu0 %1676  ;;  %vm7416_vm15 = vcmask 441344   ;;  %v2191_v59 = vld [vmem:[#allocation2 + $0x108] sm:$0xff]  ;;  %v2192_v40 = vld [vmem:[#allocation2 + $0x110] sm:$0xff] }
 0x13b   : > { %1626 = vst [vmem:[#allocation2 + $0x128] sm:$0xcc] %v1616_v21  ;;  %1627 = vst [vmem:[#allocation2 + $0x130] sm:$0xcc] %v1618_v22  ;;  %v1685_v13 = vrot.slane %v5827_v25, 4  ;;  %v1684_v37 = vrot.slane %v1677_v41, 4 }
 0x13c   : > { %vm7417_vm10 = vmmov %vm7416_vm15  ;;  %v7421_v21 = vrot.slane %v5510_v24, 4 }
 0x13d   : > { %v1690_v52 = vsel %vm344_vm3, %v7415_v56, %v1684_v37  ;;  %v1692_v34 = vsel %vm344_vm3, %v1684_v37, %v1685_v13 }
 0x13e   : > { %v1691_v38 = vsel %vm7416_vm15, %v5488_v54, %v1690_v52  ;;  %v1693_v46 = vsel %vm7417_vm10, %v1677_v41, %v1692_v34  ;;  %v5839_v49 = vpop.permute.xlu1 %1754  ;;  %v1753_v47 = vpop.permute.xlu0 %1752  ;;  %vm7419_vm15 = vcmask 375808  }
 0x13f   : > { %1701 = vst [vmem:[#allocation2 + $0x148] sm:$0x33] %v1691_v38  ;;  %1702 = vst [vmem:[#allocation2 + $0x150] sm:$0x33] %v1693_v46  ;;  %v1761_v61 = vrot.slane %v5839_v49, 4  ;;  %v1760_v43 = vrot.slane %v1753_v47, 4 }
 0x140   : > { %vm7420_vm10 = vmmov %vm7419_vm15  ;;  %v7424_v46 = vrot.slane %v5522_v11, 4 }
 0x141   : > { %v1766_v19 = vsel %vm344_vm3, %v7418_v30, %v1760_v43  ;;  %v1768_v44 = vsel %vm344_vm3, %v1760_v43, %v1761_v61 }
 0x142   : > { %v1767_v54 = vsel %vm7419_vm15, %v5499_v9, %v1766_v19  ;;  %v1769_v2 = vsel %vm7420_vm10, %v1753_v47, %v1768_v44  ;;  %v5851_v45 = vpop.permute.xlu1 %1829  ;;  %v1828_v36 = vpop.permute.xlu0 %1827  ;;  %v2195_v62 = vld [vmem:[#allocation2 + $0x128] sm:$0xff]  ;;  %v2196_v32 = vld [vmem:[#allocation2 + $0x130] sm:$0xff]  ;;  %vm7422_vm15 = vcmask 367616  }
 0x143   : > { %1777 = vst [vmem:[#allocation2 + $0x148] sm:$0xcc] %v1767_v54  ;;  %1778 = vst [vmem:[#allocation2 + $0x150] sm:$0xcc] %v1769_v2  ;;  %v1836_v18 = vrot.slane %v5851_v45, 4  ;;  %v1835_v12 = vrot.slane %v1828_v36, 4  ;;  %v4853_v17 = vcombine.high %v2191_v59, %v2195_v62  ;;  %v4854_v63 = vcombine.low %v2192_v40, %v2196_v32 }
 0x144   : > { %v4855_v55 = vcombine.high %v2192_v40, %v2196_v32  ;;  %v4852_v10 = vcombine.low %v2191_v59, %v2195_v62  ;;  %vm7423_vm10 = vmmov %vm7422_vm15  ;;  %v7427_v2 = vrot.slane %v5536_v51, 4 }
 0x145   : > { %v1841_v9 = vsel %vm344_vm3, %v7421_v21, %v1835_v12  ;;  %v1843_v22 = vsel %vm344_vm3, %v1835_v12, %v1836_v18  ;;  %2570 = vmatprep.subr.bf16.mxu1 %v4853_v17 }
 0x146   : > { %v1842_v41 = vsel %vm7422_vm15, %v5510_v24, %v1841_v9  ;;  %v1844_v37 = vsel %vm7423_vm10, %v1828_v36, %v1843_v22  ;;  %2611 = vmatprep.subr.bf16.mxu0 %v4855_v55  ;;  %v5863_v56 = vpop.permute.xlu1 %1905  ;;  %v1904_v52 = vpop.permute.xlu0 %1903  ;;  %2571 = vmatpush1.bf16.msra.mxu1 %v4852_v10  ;;  %vm7425_vm15 = vcmask 359424   ;;  %v7430_v55 = vrot.slane %v5547_v20, 4 }
 0x147   : > { %1852 = vst [vmem:[#allocation2 + $0x168] sm:$0x33] %v1842_v41  ;;  %1853 = vst [vmem:[#allocation2 + $0x170] sm:$0x33] %v1844_v37  ;;  %v1912_v34 = vrot.slane %v5863_v56, 4  ;;  %v1911_v38 = vrot.slane %v1904_v52, 4  ;;  %2612 = vmatpush1.bf16.msra.mxu0 %v4854_v63 }
 0x148   : > { %vm7426_vm10 = vmmov %vm7425_vm15 }
 0x149   : > { %v1917_v47 = vsel %vm344_vm3, %v7424_v46, %v1911_v38  ;;  %v1919_v24 = vsel %vm344_vm3, %v1911_v38, %v1912_v34 }
 0x14a   : > { %v1918_v43 = vsel %vm7425_vm15, %v5522_v11, %v1917_v47  ;;  %v1920_v30 = vsel %vm7426_vm10, %v1904_v52, %v1919_v24  ;;  %v5875_v19 = vpop.permute.xlu1 %1980  ;;  %v1979_v44 = vpop.permute.xlu0 %1978  ;;  %vm7428_vm15 = vcmask 293888   ;;  %v2199_v9 = vld [vmem:[#allocation2 + $0x148] sm:$0xff]  ;;  %v2200_v38 = vld [vmem:[#allocation2 + $0x150] sm:$0xff] }
 0x14b   : > { %1928 = vst [vmem:[#allocation2 + $0x168] sm:$0xcc] %v1918_v43  ;;  %1929 = vst [vmem:[#allocation2 + $0x170] sm:$0xcc] %v1920_v30  ;;  %v1987_v59 = vrot.slane %v5875_v19, 4  ;;  %v1986_v54 = vrot.slane %v1979_v44, 4 }
 0x14c   : > { %vm7429_vm10 = vmmov %vm7428_vm15 }
 0x14d   : > { %v1992_v36 = vsel %vm344_vm3, %v7427_v2, %v1986_v54  ;;  %v1994_v62 = vsel %vm344_vm3, %v1986_v54, %v1987_v59  ;;  %v7433_v2 = vrot.slane %v5558_v8, 4 }
 0x14e   : > { %v1993_v11 = vsel %vm7428_vm15, %v5536_v51, %v1992_v36  ;;  %v1995_v40 = vsel %vm7429_vm10, %v1979_v44, %v1994_v62  ;;  %v5887_v32 = vpop.permute.xlu1 %2056  ;;  %v2055_v12 = vpop.permute.xlu0 %2054  ;;  %vm7431_vm15 = vcmask 285696  }
 0x14f   : > { %2003 = vst [vmem:[#allocation2 + $0x188] sm:$0x33] %v1993_v11  ;;  %2004 = vst [vmem:[#allocation2 + $0x190] sm:$0x33] %v1995_v40  ;;  %v2063_v17 = vrot.slane %v5887_v32, 4  ;;  %v2062_v63 = vrot.slane %v2055_v12, 4 }
 0x150   : > { %vm7432_vm10 = vmmov %vm7431_vm15 }
 0x151   : > { %v2068_v10 = vsel %vm344_vm3, %v7430_v55, %v2062_v63  ;;  %v2070_v21 = vsel %vm344_vm3, %v2062_v63, %v2063_v17 }
 0x152   : > { %v2069_v51 = vsel %vm7431_vm15, %v5547_v20, %v2068_v10  ;;  %v2071_v22 = vsel %vm7432_vm10, %v2055_v12, %v2070_v21  ;;  %v5899_v41 = vpop.permute.xlu1 %2131  ;;  %v2130_v37 = vpop.permute.xlu0 %2129  ;;  %v2203_v52 = vld [vmem:[#allocation2 + $0x168] sm:$0xff]  ;;  %v2204_v46 = vld [vmem:[#allocation2 + $0x170] sm:$0xff]  ;;  %vm7434_vm15 = vcmask 146432   ;;  %vm7435_vm10 = vcmask 211968  }
 0x153   : > { %2079 = vst [vmem:[#allocation2 + $0x188] sm:$0xcc] %v2069_v51  ;;  %2080 = vst [vmem:[#allocation2 + $0x190] sm:$0xcc] %v2071_v22  ;;  %v2138_v47 = vrot.slane %v5899_v41, 4  ;;  %v2137_v24 = vrot.slane %v2130_v37, 4  ;;  %v4861_v43 = vcombine.high %v2199_v9, %v2203_v52  ;;  %v4862_v30 = vcombine.low %v2200_v38, %v2204_v46 }
 0x154   : > { %v4863_v44 = vcombine.high %v2200_v38, %v2204_v46  ;;  %v4860_v54 = vcombine.low %v2199_v9, %v2203_v52  ;;  %v2165_v38 = vld [vmem:[#allocation2 + $0x38] sm:$0xff] }
 0x155   : > { %v2143_v20 = vsel %vm344_vm3, %v7433_v2, %v2137_v24  ;;  %v2145_v36 = vsel %vm344_vm3, %v2137_v24, %v2138_v47  ;;  %2572 = vmatprep.subr.bf16.mxu1 %v4861_v43 }
 0x156   : > { %v2144_v62 = vsel %vm7342_vm1, %v5558_v8, %v2143_v20  ;;  %v2146_v11 = vsel %vm7342_vm1, %v2130_v37, %v2145_v36  ;;  %2613 = vmatprep.subr.bf16.mxu0 %v4863_v44  ;;  %v926_v40 = vpop.permute.xlu1 %925  ;;  %v851_v12 = vpop.permute.xlu0 %850  ;;  %2573 = vmatpush1.bf16.msra.mxu1 %v4860_v54 }
 0x157   : > { %2154 = vst [vmem:[#allocation2 + $0x1a8] sm:$0x33] %v2144_v62  ;;  %2155 = vst [vmem:[#allocation2 + $0x1b0] sm:$0x33] %v2146_v11  ;;  %v931_v63 = vrot.slane %v926_v40, 4  ;;  %v856_v55 = vrot.slane %v851_v12, 4  ;;  %2614 = vmatpush1.bf16.msra.mxu0 %v4862_v30 }
 0x159   : > { %v939_v10 = vsel %vm344_vm3, %v930_v23, %v931_v63  ;;  %v864_v21 = vsel %vm344_vm3, %v855_v60, %v856_v55 }
 0x15a   : > { %v940_v8 = vsel %vm933_vm13, %v5707_v33, %v939_v10  ;;  %v865_v9 = vsel %vm7343_vm12, %v5695_v31, %v864_v21  ;;  %v1077_v51 = vpop.permute.xlu1 %1076  ;;  %v1002_v22 = vpop.permute.xlu0 %1001  ;;  %v2207_v52 = vld [vmem:[#allocation2 + $0x188] sm:$0xff]  ;;  %v2161_v31 = vld [vmem:[#allocation2 + $0x18] sm:$0xff]  ;;  %v2208_v54 = vld [vmem:[#allocation2 + $0x190] sm:$0xff]  ;;  %vm2807_vm12 = vcmask 908288  }
 0x15b   : > { %948 = vst.msk [vmem:[#allocation2 + $0xb8] sm:$0x33] %vm5250_vm2, %v940_v8  ;;  %v1082_v37 = vrot.slane %v1077_v51, 4  ;;  %v1007_v23 = vrot.slane %v1002_v22, 4  ;;  %v4825_v40 = vcombine.high %v2161_v31, %v2165_v38  ;;  %v4824_v22 = vcombine.low %v2161_v31, %v2165_v38 }
 0x15c   : > { %873 = vst.msk [vmem:[#allocation2 + $0x98] sm:$0xcc] %vm5569_vm0, %v865_v9  ;;  %v2173_v9 = vld [vmem:[#allocation2 + $0x78] sm:$0xff] }
 0x15d   : > { %v1090_v60 = vsel %vm344_vm3, %v1081_v1, %v1082_v37  ;;  %v1015_v33 = vsel %vm344_vm3, %v1006_v42, %v1007_v23 }
 0x15e   : > { %v1091_v46 = vsel %vm7434_vm15, %v5731_v7, %v1090_v60  ;;  %v1016_v24 = vsel %vm7435_vm10, %v5719_v28, %v1015_v33  ;;  %v1228_v43 = vpop.permute.xlu1 %1227  ;;  %v1153_v30 = vpop.permute.xlu0 %1152  ;;  %v2211_v44 = vld [vmem:[#allocation2 + $0x1a8] sm:$0x33]  ;;  %v2212_v2 = vld [vmem:[#allocation2 + $0x1b0] sm:$0x33]  ;;  %vm7436_vm15 = vcmask 130048   ;;  %vm7437_vm10 = vcmask 138240  }
 0x15f   : > { %1099 = vst.msk [vmem:[#allocation2 + $0xd8] sm:$0x33] %vm5250_vm2, %v1091_v46  ;;  %v1233_v42 = vrot.slane %v1228_v43, 4  ;;  %v1158_v1 = vrot.slane %v1153_v30, 4  ;;  %v4869_v20 = vcombine.high %v2207_v52, %v2211_v44  ;;  %v4871_v36 = vcombine.high %v2208_v54, %v2212_v2 }
 0x160   : > { %1024 = vst.msk [vmem:[#allocation2 + $0xb8] sm:$0xcc] %vm5569_vm0, %v1016_v24  ;;  %v4868_v62 = vcombine.low %v2207_v52, %v2211_v44  ;;  %v4870_v7 = vcombine.low %v2208_v54, %v2212_v2 }
 0x161   : > { %v1241_v28 = vsel %vm344_vm3, %v1232_v6, %v1233_v42  ;;  %v1166_v11 = vsel %vm344_vm3, %v1157_v53, %v1158_v1  ;;  %4876 = vmatprep.subr.msk.bf16.mxu1 %vm2496_vm14, %v4869_v20  ;;  %4878 = vmatprep.subr.msk.bf16.mxu0 %vm2496_vm14, %v4871_v36 }
 0x162   : > { %v1242_v12 = vsel %vm7436_vm15, %v5755_v4, %v1241_v28  ;;  %v1167_v63 = vsel %vm7437_vm10, %v5743_v15, %v1166_v11  ;;  %v1379_v55 = vpop.permute.xlu1 %1378  ;;  %v1304_v10 = vpop.permute.xlu0 %1303  ;;  %v2504_v21 = vsel %vm2496_vm14, %v4868_v62, 0  ;;  %v2510_v6 = vsel %vm2496_vm14, %v4870_v7, 0  ;;  %v2169_v4 = vld [vmem:[#allocation2 + $0x58] sm:$0xff] }
 0x163   : > { %1250 = vst.msk [vmem:[#allocation2 + $0xf8] sm:$0x33] %vm5250_vm2, %v1242_v12  ;;  %v1384_v53 = vrot.slane %v1379_v55, 4  ;;  %v1309_v8 = vrot.slane %v1304_v10, 4  ;;  %2575 = vmatpush1.bf16.msra.mxu1 %v2504_v21  ;;  %2616 = vmatpush1.bf16.msra.mxu0 %v2510_v6  ;;  %vm7438_vm15 = vcmask 56320   ;;  %vm7439_vm10 = vcmask 64512  }
 0x164   : > { %1175 = vst.msk [vmem:[#allocation2 + $0xd8] sm:$0xcc] %vm5569_vm0, %v1167_v63  ;;  %2644 = vmatprep.subr.bf16.mxu1 %v4825_v40  ;;  %v4832_v46 = vcombine.low %v2169_v4, %v2173_v9  ;;  %v2177_v24 = vld [vmem:[#allocation2 + $0x98] sm:$0xff] }
 0x165   : > { %v1392_v15 = vsel %vm344_vm3, %v1383_v48, %v1384_v53  ;;  %v1317_v51 = vsel %vm344_vm3, %v1308_v35, %v1309_v8  ;;  %v4833_v48 = vcombine.high %v2169_v4, %v2173_v9 }
 0x166   : > { %v1393_v37 = vsel %vm7438_vm15, %v5779_v50, %v1392_v15  ;;  %v1318_v23 = vsel %vm7439_vm10, %v5767_v29, %v1317_v51  ;;  %4877 = vmatmul.mubr.msk.bf16.vlgmr.msra.gmra.mrb[0].mxu1 %vm659_vm9, %v5625_v39  ;;  %4879 = vmatmul.mubr.msk.bf16.vlgmr.msra.gmra.mrb[4].mxu0 %vm659_vm9, %v5625_v39  ;;  %v1530_v60 = vpop.permute.xlu1 %1529  ;;  %v1455_v33 = vpop.permute.xlu0 %1454  ;;  %v5975_v29 = vld [vmem:[#allocation3] sm:$0xff]  ;;  %vm7440_vm15 = vcmask 457728   ;;  %vm7441_vm10 = vcmask 48128  }
 0x167   : > { %1401 = vst.msk [vmem:[#allocation2 + $0x118] sm:$0x33] %vm5250_vm2, %v1393_v37  ;;  %v1535_v35 = vrot.slane %v1530_v60, 4  ;;  %v1460_v50 = vrot.slane %v1455_v33, 4  ;;  %2645 = vmatpush1.bf16.msra.mxu1 %v4824_v22  ;;  %v2181_v52 = vld [vmem:[#allocation2 + $0xb8] sm:$0xff]  ;;  %2676 = vmatprep.mubr.bf16.mxu1 %v5975_v29 }
 0x168   : > { %1326 = vst.msk [vmem:[#allocation2 + $0xf8] sm:$0xcc] %vm5569_vm0, %v1318_v23  ;;  %2646 = vmatprep.subr.bf16.mxu1 %v4833_v48  ;;  %v4841_v2 = vcombine.high %v2177_v24, %v2181_v52 }
 0x169   : > { %v1543_v31 = vsel %vm344_vm3, %v1534_v0, %v1535_v35  ;;  %v1468_v38 = vsel %vm344_vm3, %v1459_v14, %v1460_v50  ;;  %v6058_v50 = vld [vmem:[%s7292_s5] sm:$0xff] }
 0x16a   : > { %v1544_v43 = vsel %vm7440_vm15, %v5803_v57, %v1543_v31  ;;  %v1469_v30 = vsel %vm7441_vm10, %v5791_v58, %v1468_v38  ;;  %v1681_v44 = vpop.permute.xlu1 %1680  ;;  %v1606_v54 = vpop.permute.xlu0 %1605  ;;  %v4840_v57 = vcombine.low %v2177_v24, %v2181_v52  ;;  %vm7442_vm15 = vcmask 441344  }
 0x16b   : > { %1552 = vst.msk [vmem:[#allocation2 + $0x138] sm:$0x33] %vm5250_vm2, %v1544_v43  ;;  %v1686_v0 = vrot.slane %v1681_v44, 4  ;;  %v1611_v42 = vrot.slane %v1606_v54, 4  ;;  %2647 = vmatpush1.bf16.msra.mxu1 %v4832_v46  ;;  %vm7443_vm10 = vcmask 449536   ;;  %v2185_v7 = vld [vmem:[#allocation2 + $0xd8] sm:$0xff]  ;;  %v2714_v43 = vrot.slane %v6058_v50, %v2713_v27 }
 0x16c   : > { %1477 = vst.msk [vmem:[#allocation2 + $0x118] sm:$0xcc] %vm5569_vm0, %v1469_v30  ;;  %2648 = vmatprep.subr.bf16.mxu1 %v4841_v2  ;;  %v2717_v52 = vsub.s32 1, %v5160_v3 }
 0x16d   : > { %v1694_v14 = vsel %vm344_vm3, %v1685_v13, %v1686_v0  ;;  %v1619_v58 = vsel %vm344_vm3, %v1610_v16, %v1611_v42 }
 0x16e   : > { %v1695_v1 = vsel %vm7442_vm15, %v5827_v25, %v1694_v14  ;;  %v1620_v20 = vsel %vm7443_vm10, %v5815_v5, %v1619_v58  ;;  %v1832_v36 = vpop.permute.xlu1 %1831  ;;  %v1757_v62 = vpop.permute.xlu0 %1756  ;;  %vm7444_vm15 = vcmask 367616   ;;  %vm7445_vm10 = vcmask 375808  }
 0x16f   : > { %v2189_v28 = vld [vmem:[#allocation2 + $0xf8] sm:$0xff]  ;;  %1703 = vst.msk [vmem:[#allocation2 + $0x158] sm:$0x33] %vm5250_vm2, %v1695_v1  ;;  %v1837_v13 = vrot.slane %v1832_v36, 4  ;;  %v1762_v11 = vrot.slane %v1757_v62, 4  ;;  %2649 = vmatpush1.bf16.msra.mxu1 %v4840_v57  ;;  %v2718_v30 = vrot.slane %v6058_v50, %v2717_v52  ;;  %v2721_v1 = vsub.s32 2, %v5160_v3 }
 0x170   : > { %1628 = vst.msk [vmem:[#allocation2 + $0x138] sm:$0xcc] %vm5569_vm0, %v1620_v20  ;;  %v4848_v16 = vcombine.low %v2185_v7, %v2189_v28  ;;  %v4849_v40 = vcombine.high %v2185_v7, %v2189_v28  ;;  %v2729_v20 = vsub.s32 4, %v5160_v3  ;;  %v2725_v36 = vsub.s32 3, %v5160_v3 }
 0x171   : > { %v1845_v25 = vsel %vm344_vm3, %v1836_v18, %v1837_v13  ;;  %v1770_v5 = vsel %vm344_vm3, %v1761_v61, %v1762_v11  ;;  %v2733_v62 = vsub.s32 5, %v5160_v3  ;;  %v2722_v11 = vrot.slane %v6058_v50, %v2721_v1 }
 0x172   : > { %2650 = vmatprep.subr.bf16.mxu1 %v4849_v40  ;;  %v1846_v12 = vsel %vm7444_vm15, %v5851_v45, %v1845_v25  ;;  %v1771_v63 = vsel %vm7445_vm10, %v5839_v49, %v1770_v5  ;;  %v1983_v55 = vpop.permute.xlu1 %1982  ;;  %v1908_v10 = vpop.permute.xlu0 %1907  ;;  %vm7446_vm15 = vcmask 293888   ;;  %vm7447_vm10 = vcmask 359424  }
 0x173   : > { %1854 = vst.msk [vmem:[#allocation2 + $0x178] sm:$0x33] %vm5250_vm2, %v1846_v12  ;;  %v1988_v18 = vrot.slane %v1983_v55, 4  ;;  %v1913_v21 = vrot.slane %v1908_v10, 4  ;;  %2651 = vmatpush1.bf16.msra.mxu1 %v4848_v16  ;;  %v2193_v4 = vld [vmem:[#allocation2 + $0x118] sm:$0xff]  ;;  %v2730_v40 = vrot.slane %v6058_v50, %v2729_v20  ;;  %v2734_v10 = vrot.slane %v6058_v50, %v2733_v62 }
 0x174   : > { %1779 = vst.msk [vmem:[#allocation2 + $0x158] sm:$0xcc] %vm5569_vm0, %v1771_v63  ;;  %v2726_v63 = vrot.slane %v6058_v50, %v2725_v36 }
 0x175   : > { %v1996_v61 = vsel %vm344_vm3, %v1987_v59, %v1988_v18  ;;  %v1921_v45 = vsel %vm344_vm3, %v1912_v34, %v1913_v21 }
 0x176   : > { %v1997_v49 = vsel %vm7446_vm15, %v5875_v19, %v1996_v61  ;;  %v1922_v6 = vsel %vm7447_vm10, %v5863_v56, %v1921_v45  ;;  %v2134_v53 = vpop.permute.xlu1 %2133  ;;  %v2059_v8 = vpop.permute.xlu0 %2058  ;;  %vm7448_vm15 = vcmask 285696  }
 0x177   : > { %v2197_v9 = vld [vmem:[#allocation2 + $0x138] sm:$0xff]  ;;  %2005 = vst.msk [vmem:[#allocation2 + $0x198] sm:$0x33] %vm5250_vm2, %v1997_v49  ;;  %v2139_v59 = vrot.slane %v2134_v53, 4  ;;  %v2064_v15 = vrot.slane %v2059_v8, 4 }
 0x178   : > { %1930 = vst.msk [vmem:[#allocation2 + $0x178] sm:$0xcc] %vm5569_vm0, %v1922_v6  ;;  %v4856_v51 = vcombine.low %v2193_v4, %v2197_v9  ;;  %v4857_v34 = vcombine.high %v2193_v4, %v2197_v9 }
 0x179   : > { %v2147_v19 = vsel %vm344_vm3, %v2138_v47, %v2139_v59  ;;  %v2072_v56 = vsel %vm344_vm3, %v2063_v17, %v2064_v15 }
 0x17a   : > { %2652 = vmatprep.subr.bf16.mxu1 %v4857_v34  ;;  %v2148_v22 = vsel %vm7342_vm1, %v5899_v41, %v2147_v19  ;;  %v2073_v37 = vsel %vm7448_vm15, %v5887_v32, %v2072_v56  ;;  %vm2821_vm1 = vcmask 1047556  }
 0x17b   : > { %2653 = vmatpush1.bf16.msra.mxu1 %v4856_v51  ;;  %2156 = vst.msk [vmem:[#allocation2 + $0x1b8] sm:$0x33] %vm5250_vm2, %v2148_v22  ;;  %v2201_v23 = vld [vmem:[#allocation2 + $0x158] sm:$0xff] }
 0x17c   : > { %2081 = vst.msk [vmem:[#allocation2 + $0x198] sm:$0xcc] %vm5569_vm0, %v2073_v37 }
 0x17f   : > { %v2205_v47 = vld [vmem:[#allocation2 + $0x178] sm:$0xff] }
 0x180   : > { %v4864_v60 = vcombine.low %v2201_v23, %v2205_v47  ;;  %v4865_v33 = vcombine.high %v2201_v23, %v2205_v47 }
 0x182   : > { %2654 = vmatprep.subr.bf16.mxu1 %v4865_v33  ;;  %v2213_v48 = vld [vmem:[#allocation2 + $0x1b8] sm:$0x33] }
 0x183   : > { %2655 = vmatpush1.bf16.msra.mxu1 %v4864_v60  ;;  %v2209_v17 = vld [vmem:[#allocation2 + $0x198] sm:$0xff] }
 0x184   : > { %v4873_v35 = vcombine.high %v2209_v17, %v2213_v48  ;;  %v4872_v41 = vcombine.low %v2209_v17, %v2213_v48  ;;  %v2737_v17 = vsub.s32 6, %v5160_v3  ;;  %v2741_v48 = vsub.s32 7, %v5160_v3 }
 0x186   : > { %4880 = vmatprep.subr.msk.bf16.mxu1 %vm2496_vm14, %v4873_v35  ;;  %v2516_v32 = vsel %vm2496_vm14, %v4872_v41, 0  ;;  %v2738_v27 = vrot.slane %v6058_v50, %v2737_v17 }
 0x187   : > { %2657 = vmatpush1.bf16.msra.mxu1 %v2516_v32  ;;  %v6052_v26 = vpop.permute.xlu0 %2217 }
 0x18a   : > { %4881 = vmatmul.mubr.msk.bf16.vlgmr.msra.gmra.mrb[4].mxu1 %vm659_vm9, %v5625_v39 }
 0x1d0   : > { %v2555_v31 = vpop.f32.mrb[0].mxu0 }
 0x1d1   : > { %v2557_v38 = vpop.f32.mrb[1].mxu0  ;;  %v2556_v46 = vadd.f32 %v2555_v31, %v6052_v26 }
 0x1d2   : > { %v2558_v24 = vadd.f32 %v2557_v38, %v6052_v26  ;;  %v2559_v39 = vpop.f32.mrb[2].mxu0  ;;  %v2742_v38 = vrot.slane %v6058_v50, %v2741_v48 }
 0x1d3   : > { %vm2685_vm2 = vcmp.gt.f32.partialorder %v2556_v46, 0.0  ;;  %v2693_v44 = vmul.f32 0.2, %v2556_v46  ;;  %v2560_v54 = vpop.f32.mrb[3].mxu0 }
 0x1d4   : > { %vm2686_vm0 = vcmp.gt.f32.partialorder %v2558_v24, 0.0  ;;  %v2694_v2 = vmul.f32 0.2, %v2558_v24 }
 0x1d5   : > { %v2701_v0 = vsel %vm2685_vm2, %v2556_v46, %v2693_v44 }
 0x1d6   : > { %v2702_v42 = vsel %vm2686_vm0, %v2558_v24, %v2694_v2  ;;  %v2751_v14 = vmul.f32 %v2714_v43, %v2701_v0  ;;  %vm2820_vm0 = vcmask 1044344  }
 0x1d7   : > { %v2752_v58 = vmul.f32 %v2718_v30, %v2702_v42 }
 0x1d9   : > { %v5011_v57 = vpack.c.bf16 %v2752_v58, %v2751_v14 }
 0x1db   : > { %2795 = vrot.lane.b32.xlu1 %v5011_v57, %s5114_s18 }
 0x239   : > { %v2596_v7 = vpop.f32.mrb[0].mxu1  ;;  %v2637_v28 = vpop.f32.mrb[4].mxu0 }
 0x23a   : > { %v2597_v13 = vadd.f32 %v2596_v7, %v6052_v26  ;;  %v2638_v16 = vadd.f32 %v2637_v28, %v6052_v26  ;;  %v2598_v25 = vpop.f32.mrb[1].mxu1  ;;  %v2639_v5 = vpop.f32.mrb[5].mxu0 }
 0x23b   : > { %v2599_v12 = vadd.f32 %v2598_v25, %v6052_v26  ;;  %v2640_v55 = vadd.f32 %v2639_v5, %v6052_v26  ;;  %v2600_v18 = vpop.f32.mrb[2].mxu1  ;;  %v2641_v21 = vpop.f32.mrb[6].mxu0 }
 0x23c   : > { %vm2687_vm14 = vcmp.gt.f32.partialorder %v2597_v13, 0.0  ;;  %v2695_v61 = vmul.f32 0.2, %v2597_v13  ;;  %vm2689_vm10 = vcmp.gt.f32.partialorder %v2638_v16, 0.0  ;;  %v2697_v45 = vmul.f32 0.2, %v2638_v16 }
 0x23d   : > { %vm2688_vm15 = vcmp.gt.f32.partialorder %v2599_v12, 0.0  ;;  %v2696_v49 = vmul.f32 0.2, %v2599_v12  ;;  %vm2690_vm2 = vcmp.gt.f32.partialorder %v2640_v55, 0.0  ;;  %v2698_v6 = vmul.f32 0.2, %v2640_v55 }
 0x23e   : > { %v2703_v53 = vsel %vm2687_vm14, %v2597_v13, %v2695_v61  ;;  %v2705_v8 = vsel %vm2689_vm10, %v2638_v16, %v2697_v45  ;;  %v2601_v4 = vpop.f32.mrb[3].mxu1  ;;  %v2642_v9 = vpop.f32.mrb[7].mxu0  ;;  %vm2822_vm14 = vmor %vm2821_vm1, %vm2820_vm0  ;;  %vm2764_vm10 = vcmask 572420   ;;  %vm2827_vm0 = vcmask 707584  }
 0x23f   : > { %v2753_v59 = vmul.f32 %v2722_v11, %v2703_v53  ;;  %v2755_v15 = vmul.f32 %v2730_v40, %v2705_v8  ;;  %v2704_v51 = vsel %vm2688_vm15, %v2599_v12, %v2696_v49  ;;  %v2706_v34 = vsel %vm2690_vm2, %v2640_v55, %v2698_v6  ;;  %vm2765_vm15 = vmor %vm2764_vm10, %vm344_vm3 }
 0x240   : > { %v2754_v19 = vmul.f32 %v2726_v63, %v2704_v51  ;;  %v2756_v56 = vmul.f32 %v2734_v10, %v2706_v34  ;;  %2766 = vst.msk [vmem:[#allocation3 + $0x20] sm:$0xff] %vm2765_vm15, %v5975_v29  ;;  %vm7468_vm15 = vcmask 228352  }
 0x242   : > { %v5013_v22 = vpack.c.bf16 %v2756_v56, %v2755_v15  ;;  %v5012_v37 = vpack.c.bf16 %v2754_v19, %v2753_v59 }
 0x244   : > { %2799 = vrot.lane.b32.xlu0 %v5013_v22, %s5114_s18  ;;  %2797 = vrot.lane.b32.xlu1 %v5012_v37, %s5114_s18 }
 0x24d   : > { %v2796_v23 = vpop.permute.xlu1 %2795 }
 0x24e   : > { %v2803_v47 = vrot.slane %v2796_v23, 4 }
 0x250   : > { %v2808_v60 = vsel %vm2807_vm12, %v2803_v47, %v2796_v23 }
 0x251   : > { %2823 = vst.msk [vmem:[#allocation3] sm:$0xff] %vm2822_vm14, %v2808_v60  ;;  %vm2836_vm14 = vcmask 850948  }
 0x252   : > { %vm6181_vm10 = vmor %vm2836_vm14, %vm344_vm3  ;;  %vm7473_vm14 = vcmask 138240  }
 0x258   : > { %v6083_v33 = vld [vmem:[#allocation3] sm:$0xff] }
 0x259   : > { %2847 = vrot.lane.b32.xlu0 %v6083_v33, %s5088_s28 }
 0x25d   : > { %v2678_v35 = vpop.f32.mrb[4].mxu1  ;;  %2917 = vrot.lane.b32.xlu0 %v6083_v33, %s7360_s29 }
 0x25e   : > { %v2679_v41 = vadd.f32 %v2678_v35, %v6052_v26  ;;  %v2680_v32 = vpop.f32.mrb[5].mxu1 }
 0x25f   : > { %v2681_v29 = vadd.f32 %v2680_v32, %v6052_v26  ;;  %v2682_v52 = vpop.f32.mrb[6].mxu1 }
 0x260   : > { %vm2691_vm1 = vcmp.gt.f32.partialorder %v2679_v41, 0.0  ;;  %v2699_v31 = vmul.f32 0.2, %v2679_v41  ;;  %v2683_v46 = vpop.f32.mrb[7].mxu1 }
 0x261   : > { %vm2692_vm2 = vcmp.gt.f32.partialorder %v2681_v29, 0.0  ;;  %v2700_v24 = vmul.f32 0.2, %v2681_v29  ;;  %2987 = vrot.lane.b32.xlu0 %v6083_v33, %s7358_s7 }
 0x262   : > { %v2707_v3 = vsel %vm2691_vm1, %v2679_v41, %v2699_v31  ;;  %vm7470_vm1 = vcmask 146432  }
 0x263   : > { %v2757_v43 = vmul.f32 %v2738_v27, %v2707_v3  ;;  %v2708_v39 = vsel %vm2692_vm2, %v2681_v29, %v2700_v24  ;;  %vm7471_vm2 = vcmask 211968  }
 0x264   : > { %v2758_v30 = vmul.f32 %v2742_v38, %v2708_v39 }
 0x265   : > { %3057 = vrot.lane.b32.xlu0 %v6083_v33, %s7449_s24 }
 0x266   : > { %v5014_v44 = vpack.c.bf16 %v2758_v30, %v2757_v43 }
 0x268   : > { %2801 = vrot.lane.b32.xlu1 %v5014_v44, %s5114_s18  ;;  %s7453_s18 = smov 106  }
 0x269   : > { %3129 = vrot.lane.b32.xlu0 %v6083_v33, %s7359_s11 }
 0x26c   : > { %2882 = vrot.lane.b32.xlu1 %v6083_v33, %s7450_s26 }
 0x26d   : > { %3211 = vrot.lane.b32.xlu0 %v6083_v33, %s7361_s13 }
 0x270   : > { %2952 = vrot.lane.b32.xlu1 %v6083_v33, %s7451_s20 }
 0x271   : > { %3293 = vrot.lane.b32.xlu0 %v6083_v33, %s7354_s15 }
 0x274   : > { %3022 = vrot.lane.b32.xlu1 %v6083_v33, %s7452_s23 }
 0x275   : > { %3375 = vrot.lane.b32.xlu0 %v6083_v33, %s7352_s17 }
 0x278   : > { %3092 = vrot.lane.b32.xlu1 %v6083_v33, %s7453_s18 }
 0x279   : > { %3457 = vrot.lane.b32.xlu0 %v6083_v33, %s7389_s10 }
 0x27c   : > { %3170 = vrot.lane.b32.xlu1 %v6083_v33, %s5096_s12 }
 0x280   : > { %3252 = vrot.lane.b32.xlu1 %v6083_v33, %s5098_s14 }
 0x284   : > { %3334 = vrot.lane.b32.xlu1 %v6083_v33, %s7350_s16 }
 0x288   : > { %3416 = vrot.lane.b32.xlu1 %v6083_v33, %s7454_s25 }
 0x2b6   : > { %v2800_v26 = vpop.permute.xlu0 %2799  ;;  %v2798_v50 = vpop.permute.xlu1 %2797 }
 0x2b7   : > { %v2805_v54 = vrot.slane %v2800_v26, 4  ;;  %v2804_v2 = vrot.slane %v2798_v50, 4 }
 0x2b9   : > { %v2809_v0 = vsel %vm344_vm3, %v2803_v47, %v2804_v2  ;;  %v2811_v42 = vsel %vm344_vm3, %v2804_v2, %v2805_v54 }
 0x2ba   : > { %v6129_v14 = vsel %vm2807_vm12, %v2809_v0, %v2798_v50  ;;  %v6132_v58 = vsel %vm2807_vm12, %v2811_v42, %v2800_v26 }
 0x2bb   : > { %2824 = vst [vmem:[#allocation3 + $0x8] sm:$0xff] %v6129_v14  ;;  %2825 = vst [vmem:[#allocation3 + $0x10] sm:$0xff] %v6132_v58  ;;  %2884 = vrot.lane.b32.xlu0 %v6129_v14, %s7450_s26  ;;  %2849 = vrot.lane.b32.xlu1 %v6129_v14, %s5088_s28 }
 0x2bf   : > { %2954 = vrot.lane.b32.xlu0 %v6129_v14, %s7451_s20  ;;  %2919 = vrot.lane.b32.xlu1 %v6129_v14, %s7360_s29 }
 0x2c2   : > { %v2831_v57 = vld [vmem:[#allocation3 + $0x10] sm:$0xff]  ;;  %v3529_v36 = vld [vmem:[#allocation3 + $0x4] sm:$0xff] }
 0x2c3   : > { %3024 = vrot.lane.b32.xlu0 %v6129_v14, %s7452_s23  ;;  %2989 = vrot.lane.b32.xlu1 %v6129_v14, %s7358_s7  ;;  %2835 = vst [vmem:[#allocation4 + $0x10] sm:$0xff] %v2831_v57  ;;  %v6228_v6 = vld [vmem:[#allocation3 + $0xc] sm:$0xff] }
 0x2c7   : > { %3094 = vrot.lane.b32.xlu0 %v6129_v14, %s7453_s18  ;;  %3059 = vrot.lane.b32.xlu1 %v6129_v14, %s7449_s24 }
 0x2cb   : > { %3172 = vrot.lane.b32.xlu0 %v6129_v14, %s5096_s12  ;;  %3131 = vrot.lane.b32.xlu1 %v6129_v14, %s7359_s11  ;;  %v6201_v40 = vpop.permute.xlu0 %2847 }
 0x2cc   : > { %v2855_v60 = vrot.slane %v6201_v40, 4 }
 0x2cf   : > { %3254 = vrot.lane.b32.xlu0 %v6129_v14, %s5098_s14  ;;  %3213 = vrot.lane.b32.xlu1 %v6129_v14, %s7361_s13  ;;  %v6206_v12 = vpop.permute.xlu0 %2917 }
 0x2d0   : > { %v2925_v27 = vrot.slane %v6206_v12, 4 }
 0x2d3   : > { %3336 = vrot.lane.b32.xlu0 %v6129_v14, %s7350_s16  ;;  %3295 = vrot.lane.b32.xlu1 %v6129_v14, %s7354_s15  ;;  %s7455_s16 = smov 54   ;;  %s7459_s15 = smov 36   ;;  %v6214_v10 = vpop.permute.xlu0 %2987 }
 0x2d4   : > { %v2995_v26 = vrot.slane %v6214_v10, 4 }
 0x2d7   : > { %3418 = vrot.lane.b32.xlu0 %v6129_v14, %s7454_s25  ;;  %3377 = vrot.lane.b32.xlu1 %v6129_v14, %s7352_s17  ;;  %s7458_s17 = smov 35   ;;  %v6221_v45 = vpop.permute.xlu0 %3057 }
 0x2da   : > { %v2802_v1 = vpop.permute.xlu1 %2801 }
 0x2db   : > { %v2806_v20 = vrot.slane %v2802_v1, 4  ;;  %3539 = vrot.lane.b32.xlu0 %v3529_v36, %s7391_s30  ;;  %3459 = vrot.lane.b32.xlu1 %v6129_v14, %s7389_s10  ;;  %v6233_v8 = vpop.permute.xlu0 %3129 }
 0x2dd   : > { %v2813_v62 = vsel %vm344_vm3, %v2805_v54, %v2806_v20  ;;  %2828 = vst.msk [vmem:[#allocation3 + $0x20] sm:$0xf] %vm2827_vm0, %v2806_v20  ;;  %vm7472_vm0 = vcmask 130048  }
 0x2de   : > { %v6173_v7 = vsel %vm2807_vm12, %v2813_v62, %v2802_v1  ;;  %v2883_v63 = vpop.permute.xlu1 %2882  ;;  %v3065_v62 = vrot.slane %v6221_v45, 4  ;;  %vm7467_vm12 = vcmask 875520  }
 0x2df   : > { %2826 = vst [vmem:[#allocation3 + $0x18] sm:$0xff] %v6173_v7  ;;  %3621 = vrot.lane.b32.xlu0 %v3529_v36, %s7392_s27  ;;  %3498 = vrot.lane.b32.xlu1 %v3529_v36, %s7390_s8  ;;  %v6243_v59 = vpop.permute.xlu0 %3211  ;;  %v2890_v17 = vrot.slane %v2883_v63, 4 }
 0x2e2   : > { %v6216_v18 = vpop.permute.xlu1 %2952 }
 0x2e3   : > { %3703 = vrot.lane.b32.xlu0 %v3529_v36, %s7356_s19  ;;  %3580 = vrot.lane.b32.xlu1 %v3529_v36, %s7455_s16  ;;  %s7460_s19 = smov 34   ;;  %v6255_v51 = vpop.permute.xlu0 %3293  ;;  %v2960_v29 = vrot.slane %v6216_v18, 4 }
 0x2e4   : > { %v3123_v11 = vld [vmem:[#allocation3 + $0x20] sm:$0xf] }
 0x2e5   : > { %v3164_v16 = vld [vmem:[#allocation3 + $0x20] sm:$0xf] }
 0x2e6   : > { %v2832_v13 = vld [vmem:[#allocation3 + $0x18] sm:$0xff]  ;;  %v3205_v25 = vld [vmem:[#allocation3 + $0x20] sm:$0xf]  ;;  %v6223_v49 = vpop.permute.xlu1 %3022 }
 0x2e7   : > { %3785 = vrot.lane.b32.xlu0 %v3529_v36, %s7458_s17  ;;  %3662 = vrot.lane.b32.xlu1 %v3529_v36, %s7393_s9  ;;  %2838 = vst.msk [vmem:[#allocation4 + $0x18] sm:$0xff] %vm6181_vm10, %v2832_v13  ;;  %v3246_v5 = vld [vmem:[#allocation3 + $0x20] sm:$0xf]  ;;  %v6237_v9 = vld [vmem:[#allocation3 + $0x14] sm:$0xff]  ;;  %v6263_v19 = vpop.permute.xlu0 %3375  ;;  %v3030_v50 = vrot.slane %v6223_v49, 4 }
 0x2e8   : > { %v3287_v55 = vld [vmem:[#allocation3 + $0x20] sm:$0xf] }
 0x2e9   : > { %v3328_v21 = vld [vmem:[#allocation3 + $0x20] sm:$0xf] }
 0x2ea   : > { %v3369_v61 = vld [vmem:[#allocation3 + $0x20] sm:$0xf]  ;;  %v6235_v4 = vpop.permute.xlu1 %3092 }
 0x2eb   : > { %2851 = vrot.lane.b32.xlu0 %v6132_v58, %s5088_s28  ;;  %3744 = vrot.lane.b32.xlu1 %v3529_v36, %s7459_s15  ;;  %v3410_v53 = vld [vmem:[#allocation3 + $0x20] sm:$0xf]  ;;  %v6275_v22 = vpop.permute.xlu0 %3457  ;;  %v3100_v13 = vrot.slane %v6235_v4, 4 }
 0x2ee   : > { %v6245_v15 = vpop.permute.xlu1 %3170 }
 0x2ef   : > { %2921 = vrot.lane.b32.xlu0 %v6132_v58, %s7360_s29  ;;  %3826 = vrot.lane.b32.xlu1 %v3529_v36, %s7460_s19  ;;  %s7463_s29 = smov 16  }
 0x2f2   : > { %v6257_v34 = vpop.permute.xlu1 %3252 }
 0x2f3   : > { %2991 = vrot.lane.b32.xlu0 %v6132_v58, %s7358_s7  ;;  %3137 = vrot.lane.b32.xlu1 %v3123_v11, %s7359_s11  ;;  %s7461_s7 = smov 17  }
 0x2f6   : > { %v6265_v56 = vpop.permute.xlu1 %3334 }
 0x2f7   : > { %3061 = vrot.lane.b32.xlu0 %v6132_v58, %s7449_s24  ;;  %3178 = vrot.lane.b32.xlu1 %v3164_v16, %s5096_s12 }
 0x2fa   : > { %v6277_v37 = vpop.permute.xlu1 %3416 }
 0x2fb   : > { %3133 = vrot.lane.b32.xlu0 %v6132_v58, %s7359_s11  ;;  %3219 = vrot.lane.b32.xlu1 %v3205_v25, %s7361_s13  ;;  %s7462_s11 = smov 8  }
 0x2ff   : > { %3215 = vrot.lane.b32.xlu0 %v6132_v58, %s7361_s13  ;;  %3260 = vrot.lane.b32.xlu1 %v3246_v5, %s5098_s14  ;;  %s7464_s13 = smov 44  }
 0x303   : > { %3297 = vrot.lane.b32.xlu0 %v6132_v58, %s7461_s7  ;;  %3301 = vrot.lane.b32.xlu1 %v3287_v55, %s7461_s7 }
 0x307   : > { %3379 = vrot.lane.b32.xlu0 %v6132_v58, %s7462_s11  ;;  %3342 = vrot.lane.b32.xlu1 %v3328_v21, %s7463_s29  ;;  %v3139_v21 = vrot.slane %v6233_v8, 4 }
 0x30b   : > { %3461 = vrot.lane.b32.xlu0 %v6132_v58, %s7389_s10  ;;  %3383 = vrot.lane.b32.xlu1 %v3369_v61, %s7462_s11  ;;  %v3180_v61 = vrot.slane %v6245_v15, 4 }
 0x30f   : > { %3500 = vrot.lane.b32.xlu0 %v6228_v6, %s7390_s8  ;;  %3424 = vrot.lane.b32.xlu1 %v3410_v53, %s7454_s25 }
 0x313   : > { %2886 = vrot.lane.b32.xlu1 %v6132_v58, %s7450_s26  ;;  %3543 = vrot.lane.b32.xlu0 %v6237_v9, %s7391_s30 }
 0x317   : > { %2956 = vrot.lane.b32.xlu1 %v6132_v58, %s7451_s20  ;;  %3582 = vrot.lane.b32.xlu0 %v6228_v6, %s7455_s16 }
 0x31b   : > { %3026 = vrot.lane.b32.xlu1 %v6132_v58, %s7452_s23  ;;  %3625 = vrot.lane.b32.xlu0 %v6237_v9, %s7392_s27 }
 0x31f   : > { %3096 = vrot.lane.b32.xlu1 %v6132_v58, %s7453_s18  ;;  %3664 = vrot.lane.b32.xlu0 %v6228_v6, %s7393_s9 }
 0x323   : > { %3174 = vrot.lane.b32.xlu1 %v6132_v58, %s5096_s12  ;;  %3707 = vrot.lane.b32.xlu0 %v6237_v9, %s7464_s13 }
 0x327   : > { %3256 = vrot.lane.b32.xlu1 %v6132_v58, %s5098_s14  ;;  %3746 = vrot.lane.b32.xlu0 %v6228_v6, %s7459_s15 }
 0x32b   : > { %3338 = vrot.lane.b32.xlu1 %v6132_v58, %s7463_s29  ;;  %3789 = vrot.lane.b32.xlu0 %v6237_v9, %s7458_s17 }
 0x32d   : > { %v6283_v23 = vpop.permute.xlu0 %2884  ;;  %v6285_v47 = vpop.permute.xlu1 %2849 }
 0x32e   : > { %v2891_v48 = vrot.slane %v6283_v23, 4  ;;  %v2856_v35 = vrot.slane %v6285_v47, 4 }
 0x32f   : > { %3420 = vrot.lane.b32.xlu1 %v6132_v58, %s7454_s25  ;;  %3828 = vrot.lane.b32.xlu0 %v6228_v6, %s7460_s19 }
 0x330   : > { %v2894_v41 = vsel %vm344_vm3, %v2890_v17, %v2891_v48  ;;  %v2859_v32 = vsel %vm344_vm3, %v2855_v60, %v2856_v35 }
 0x331   : > { %v2895_v52 = vsel %vm411_vm4, %v2883_v63, %v2894_v41  ;;  %v2860_v31 = vsel %vm346_vm5, %v6201_v40, %v2859_v32  ;;  %v6305_v38 = vpop.permute.xlu0 %2954  ;;  %v6307_v46 = vpop.permute.xlu1 %2919 }
 0x332   : > { %v2961_v24 = vrot.slane %v6305_v38, 4  ;;  %v2926_v3 = vrot.slane %v6307_v46, 4  ;;  %v4888_v43 = vcombine.low %v6083_v33, %v2860_v31  ;;  %v4889_v39 = vcombine.high %v6083_v33, %v2860_v31 }
 0x333   : > { %3502 = vrot.lane.b32.xlu1 %v6237_v9, %s7390_s8  ;;  %2853 = vrot.lane.b32.xlu0 %v6173_v7, %s5088_s28  ;;  %s7465_s28 = smov 118   ;;  %v3262_v31 = vrot.slane %v6257_v34, 4 }
 0x334   : > { %v2964_v30 = vsel %vm344_vm3, %v2960_v29, %v2961_v24  ;;  %v2929_v44 = vsel %vm344_vm3, %v2925_v27, %v2926_v3  ;;  %4546 = vmatprep.subr.bf16.mxu0 %v4889_v39 }
 0x335   : > { %v2965_v33 = vsel %vm535_vm6, %v6216_v18, %v2964_v30  ;;  %v2930_v54 = vsel %vm473_vm7, %v6206_v12, %v2929_v44  ;;  %v6329_v2 = vpop.permute.xlu0 %3024  ;;  %v6331_v0 = vpop.permute.xlu1 %2989  ;;  %4547 = vmatpush1.bf16.msra.mxu0 %v4888_v43 }
 0x336   : > { %v3031_v42 = vrot.slane %v6329_v2, 4  ;;  %v2996_v58 = vrot.slane %v6331_v0, 4  ;;  %v4896_v57 = vcombine.low %v2895_v52, %v2930_v54  ;;  %v4897_v1 = vcombine.high %v2895_v52, %v2930_v54 }
 0x337   : > { %3541 = vrot.lane.b32.xlu1 %v6228_v6, %s7391_s30  ;;  %2923 = vrot.lane.b32.xlu0 %v6173_v7, %s7465_s28  ;;  %s7466_s28 = smov 116   ;;  %v3221_v52 = vrot.slane %v6243_v59, 4 }
 0x338   : > { %v3034_v20 = vsel %vm344_vm3, %v3030_v50, %v3031_v42  ;;  %v2999_v36 = vsel %vm344_vm3, %v2995_v26, %v2996_v58  ;;  %4548 = vmatprep.subr.bf16.mxu0 %v4897_v1  ;;  %v3344_v1 = vrot.slane %v6265_v56, 4 }
 0x339   : > { %v3035_v11 = vsel %vm659_vm9, %v6223_v49, %v3034_v20  ;;  %v3000_v16 = vsel %vm597_vm8, %v6214_v10, %v2999_v36  ;;  %v6351_v40 = vpop.permute.xlu0 %3094  ;;  %v6353_v25 = vpop.permute.xlu1 %3059  ;;  %4549 = vmatpush1.bf16.msra.mxu0 %v4896_v57  ;;  %v3303_v57 = vrot.slane %v6255_v51, 4 }
 0x33a   : > { %v3101_v5 = vrot.slane %v6351_v40, 4  ;;  %v3066_v12 = vrot.slane %v6353_v25, 4  ;;  %v4904_v63 = vcombine.low %v2965_v33, %v3000_v16  ;;  %v4905_v55 = vcombine.high %v2965_v33, %v3000_v16 }
 0x33b   : > { %3584 = vrot.lane.b32.xlu1 %v6237_v9, %s7455_s16  ;;  %2993 = vrot.lane.b32.xlu0 %v6173_v7, %s7466_s28 }
 0x33c   : > { %v3104_v10 = vsel %vm344_vm3, %v3100_v13, %v3101_v5  ;;  %v3069_v18 = vsel %vm344_vm3, %v3065_v62, %v3066_v12  ;;  %4550 = vmatprep.subr.bf16.mxu0 %v4905_v55 }
 0x33d   : > { %v3105_v49 = vsel %vm783_vm11, %v6235_v4, %v3104_v10  ;;  %v3070_v53 = vsel %vm7467_vm12, %v6221_v45, %v3069_v18  ;;  %v6373_v60 = vpop.permute.xlu0 %3172  ;;  %v6375_v17 = vpop.permute.xlu1 %3131  ;;  %4551 = vmatpush1.bf16.msra.mxu0 %v4904_v63  ;;  %v3385_v10 = vrot.slane %v6263_v19, 4  ;;  %v3426_v18 = vrot.slane %v6277_v37, 4 }
 0x33e   : > { %v3181_v41 = vrot.slane %v6373_v60, 4  ;;  %v3140_v32 = vrot.slane %v6375_v17, 4  ;;  %v4912_v27 = vcombine.low %v3035_v11, %v3070_v53  ;;  %v4913_v29 = vcombine.high %v3035_v11, %v3070_v53 }
 0x33f   : > { %3623 = vrot.lane.b32.xlu1 %v6228_v6, %s7392_s27  ;;  %3063 = vrot.lane.b32.xlu0 %v6173_v7, %s7449_s24  ;;  %s7469_s24 = smov 28   ;;  %vm7475_vm12 = vcmask 56320  }
 0x340   : > { %v3185_v45 = vsel %vm344_vm3, %v3180_v61, %v3181_v41  ;;  %v3144_v4 = vsel %vm344_vm3, %v3139_v21, %v3140_v32  ;;  %4552 = vmatprep.subr.bf16.mxu0 %v4913_v29 }
 0x341   : > { %v3186_v43 = vsel %vm933_vm13, %v6245_v15, %v3185_v45  ;;  %v3145_v39 = vsel %vm7468_vm15, %v6233_v8, %v3144_v4  ;;  %v6395_v30 = vpop.permute.xlu0 %3254  ;;  %v6397_v44 = vpop.permute.xlu1 %3213  ;;  %4553 = vmatpush1.bf16.msra.mxu0 %v4912_v27  ;;  %vm7476_vm15 = vcmask 64512  }
 0x342   : > { %v7375_v26 = vrot.slane %v6395_v30, 4  ;;  %v3222_v50 = vrot.slane %v6397_v44, 4  ;;  %v4920_v33 = vcombine.low %v3105_v49, %v3145_v39  ;;  %v4921_v54 = vcombine.high %v3105_v49, %v3145_v39 }
 0x343   : > { %3666 = vrot.lane.b32.xlu1 %v6237_v9, %s7393_s9  ;;  %3135 = vrot.lane.b32.xlu0 %v6173_v7, %s7469_s24 }
 0x344   : > { %v3267_v8 = vsel %vm344_vm3, %v3262_v31, %v7375_v26  ;;  %v3226_v15 = vsel %vm344_vm3, %v3221_v52, %v3222_v50  ;;  %4554 = vmatprep.subr.bf16.mxu0 %v4921_v54 }
 0x345   : > { %v3268_v20 = vsel %vm7470_vm1, %v6257_v34, %v3267_v8  ;;  %v3227_v36 = vsel %vm7471_vm2, %v6243_v59, %v3226_v15  ;;  %v6417_v62 = vpop.permute.xlu0 %3336  ;;  %v6419_v13 = vpop.permute.xlu1 %3295  ;;  %4555 = vmatpush1.bf16.msra.mxu0 %v4920_v33  ;;  %v3467_v33 = vrot.slane %v6275_v22, 4  ;;  %vm4518_vm1 = vcmask 719872  }
 0x346   : > { %v7373_v11 = vrot.slane %v6417_v62, 4  ;;  %v3304_v16 = vrot.slane %v6419_v13, 4  ;;  %v4928_v63 = vcombine.low %v3186_v43, %v3227_v36  ;;  %v4929_v55 = vcombine.high %v3186_v43, %v3227_v36 }
 0x347   : > { %3705 = vrot.lane.b32.xlu1 %v6228_v6, %s7464_s13  ;;  %3176 = vrot.lane.b32.xlu0 %v6173_v7, %s5096_s12  ;;  %s7474_s12 = smov 26   ;;  %vm7477_vm2 = vcmask 48128  }
 0x348   : > { %v3349_v59 = vsel %vm344_vm3, %v3344_v1, %v7373_v11  ;;  %v3308_v34 = vsel %vm344_vm3, %v3303_v57, %v3304_v16  ;;  %4556 = vmatprep.subr.bf16.mxu0 %v4929_v55  ;;  %v6468_v57 = vld [vmem:[%s7290_s3] sm:$0xff] }
 0x349   : > { %v3350_v21 = vsel %vm7472_vm0, %v6265_v56, %v3349_v59  ;;  %v3309_v61 = vsel %vm7473_vm14, %v6255_v51, %v3308_v34  ;;  %v6439_v49 = vpop.permute.xlu0 %3418  ;;  %v6441_v53 = vpop.permute.xlu1 %3377  ;;  %4557 = vmatpush1.bf16.msra.mxu0 %v4928_v63  ;;  %v3451_v59 = vld [vmem:[#allocation3 + $0x20] sm:$0xf]  ;;  %vm7478_vm0 = vcmask 875520   ;;  %vm7479_vm14 = vcmask 228352  }
 0x34a   : > { %v7372_v27 = vrot.slane %v6439_v49, 4  ;;  %v3386_v29 = vrot.slane %v6441_v53, 4  ;;  %v4936_v45 = vcombine.low %v3268_v20, %v3309_v61  ;;  %v4937_v4 = vcombine.high %v3268_v20, %v3309_v61 }
 0x34b   : > { %3748 = vrot.lane.b32.xlu1 %v6237_v9, %s7459_s15  ;;  %3217 = vrot.lane.b32.xlu0 %v6173_v7, %s7474_s12 }
 0x34c   : > { %v3431_v51 = vsel %vm344_vm3, %v3426_v18, %v7372_v27  ;;  %v3390_v56 = vsel %vm344_vm3, %v3385_v10, %v3386_v29  ;;  %4558 = vmatprep.subr.bf16.mxu0 %v4937_v4 }
 0x34d   : > { %v3432_v52 = vsel %vm7475_vm12, %v6277_v37, %v3431_v51  ;;  %v3391_v31 = vsel %vm7476_vm15, %v6263_v19, %v3390_v56  ;;  %v6459_v43 = vpop.permute.xlu0 %3539  ;;  %v6461_v39 = vpop.permute.xlu1 %3459  ;;  %4559 = vmatpush1.bf16.msra.mxu0 %v4936_v45  ;;  %v6476_v19 = vcombine.high %v6468_v57, %v6468_v57  ;;  %vm7480_vm12 = vcmask 211968  }
 0x34e   : > { %v3468_v54 = vrot.slane %v6461_v39, 4  ;;  %v4944_v8 = vcombine.low %v3350_v21, %v3391_v31  ;;  %v4945_v15 = vcombine.high %v3350_v21, %v3391_v31  ;;  %vm7481_vm15 = vcmask 138240  }
 0x34f   : > { %3787 = vrot.lane.b32.xlu1 %v6228_v6, %s7458_s17  ;;  %3258 = vrot.lane.b32.xlu0 %v6173_v7, %s5098_s14 }
 0x350   : > { %v3472_v37 = vsel %vm344_vm3, %v3467_v33, %v3468_v54  ;;  %4560 = vmatprep.subr.bf16.mxu0 %v4945_v15  ;;  %5001 = vmatprep.mubr.msk.bf16.mxu0 %vm4518_vm1, %v6476_v19  ;;  %v6551_v15 = vld [vmem:[#allocation3 + $0x1c] sm:$0xff] }
 0x351   : > { %v3473_v1 = vsel %vm7477_vm2, %v6275_v22, %v3472_v37  ;;  %v6483_v20 = vpop.permute.xlu0 %3621  ;;  %v6485_v36 = vpop.permute.xlu1 %3498  ;;  %4561 = vmatpush1.bf16.msra.mxu0 %v4944_v8  ;;  %5003 = vmatprep.mubr.msk.bf16.mxu1 %vm4518_vm1, %v6476_v19  ;;  %vm7482_vm2 = vcmask 64512  }
 0x352   : > { %v4952_v6 = vcombine.low %v3432_v52, %v3473_v1  ;;  %v4953_v63 = vcombine.high %v3432_v52, %v3473_v1 }
 0x353   : > { %3830 = vrot.lane.b32.xlu1 %v6237_v9, %s7460_s19  ;;  %3299 = vrot.lane.b32.xlu0 %v6173_v7, %s7461_s7 }
 0x354   : > { %4562 = vmatprep.subr.bf16.mxu0 %v4953_v63 }
 0x355   : > { %v6495_v22 = vpop.permute.xlu0 %3703  ;;  %v6497_v55 = vpop.permute.xlu1 %3580  ;;  %4563 = vmatpush1.bf16.msra.mxu0 %v4952_v6 }
 0x357   : > { %3465 = vrot.lane.b32.xlu1 %v3451_v59, %s7389_s10  ;;  %3340 = vrot.lane.b32.xlu0 %v6173_v7, %s7463_s29 }
 0x359   : > { %v6502_v34 = vpop.permute.xlu0 %3785  ;;  %v6504_v10 = vpop.permute.xlu1 %3662 }
 0x35b   : > { %2888 = vrot.lane.b32.xlu1 %v6173_v7, %s7450_s26  ;;  %3381 = vrot.lane.b32.xlu0 %v6173_v7, %s7462_s11 }
 0x35d   : > { %v6510_v9 = vpop.permute.xlu0 %2851  ;;  %v6512_v18 = vpop.permute.xlu1 %3744 }
 0x35e   : > { %v7370_v21 = vrot.slane %v6510_v9, 4 }
 0x35f   : > { %3422 = vrot.lane.b32.xlu0 %v6173_v7, %s7454_s25  ;;  %2958 = vrot.lane.b32.xlu1 %v6173_v7, %s7451_s20 }
 0x360   : > { %v2861_v61 = vsel %vm344_vm3, %v2856_v35, %v7370_v21 }
 0x361   : > { %v2862_v45 = vsel %vm346_vm5, %v6285_v47, %v2861_v61  ;;  %v6526_v4 = vpop.permute.xlu0 %2921  ;;  %v6528_v51 = vpop.permute.xlu1 %3826 }
 0x362   : > { %v7368_v56 = vrot.slane %v6526_v4, 4  ;;  %v4890_v52 = vcombine.low %v6129_v14, %v2862_v45  ;;  %v4891_v31 = vcombine.high %v6129_v14, %v2862_v45 }
 0x363   : > { %3463 = vrot.lane.b32.xlu0 %v6173_v7, %s7389_s10  ;;  %3028 = vrot.lane.b32.xlu1 %v6173_v7, %s7452_s23 }
 0x364   : > { %v2931_v47 = vsel %vm344_vm3, %v2926_v3, %v7368_v56  ;;  %4587 = vmatprep.subr.bf16.mxu1 %v4891_v31  ;;  %v3492_v3 = vld [vmem:[#allocation3 + $0x24] sm:$0xf] }
 0x365   : > { %v6544_v35 = vsel %vm473_vm7, %v6307_v46, %v2931_v47  ;;  %v6546_v33 = vpop.permute.xlu0 %2991  ;;  %v6548_v14 = vpop.permute.xlu1 %3137  ;;  %4588 = vmatpush1.bf16.msra.mxu1 %v4890_v52  ;;  %v3574_v52 = vld [vmem:[#allocation3 + $0x24] sm:$0xf] }
 0x366   : > { %v7367_v8 = vrot.slane %v6546_v33, 4 }
 0x367   : > { %3504 = vrot.lane.b32.xlu0 %v6551_v15, %s7390_s8  ;;  %3098 = vrot.lane.b32.xlu1 %v6173_v7, %s7453_s18 }
 0x368   : > { %v3001_v46 = vsel %vm344_vm3, %v2996_v58, %v7367_v8  ;;  %v3533_v58 = vld [vmem:[#allocation3 + $0x24] sm:$0xf]  ;;  %v3508_v8 = vrot.slane %v6485_v36, 4 }
 0x369   : > { %v6564_v37 = vsel %vm597_vm8, %v6331_v0, %v3001_v46  ;;  %v6566_v1 = vpop.permute.xlu0 %3061  ;;  %v6568_v6 = vpop.permute.xlu1 %3178 }
 0x36a   : > { %v7365_v63 = vrot.slane %v6566_v1, 4 }
 0x36b   : > { %3545 = vrot.lane.b32.xlu0 %v6551_v15, %s7391_s30  ;;  %3506 = vrot.lane.b32.xlu1 %v3492_v3, %s7390_s8  ;;  %v3615_v3 = vld [vmem:[#allocation3 + $0x24] sm:$0xf] }
 0x36c   : > { %v3071_v7 = vsel %vm344_vm3, %v3066_v12, %v7365_v63 }
 0x36d   : > { %v6581_v0 = vsel %vm7478_vm0, %v6353_v25, %v3071_v7  ;;  %v6583_v59 = vpop.permute.xlu0 %3133  ;;  %v6585_v61 = vpop.permute.xlu1 %3219  ;;  %vm7483_vm0 = vcmask 48128  }
 0x36e   : > { %v7363_v45 = vrot.slane %v6583_v59, 4 }
 0x36f   : > { %3586 = vrot.lane.b32.xlu0 %v6551_v15, %s7455_s16  ;;  %3547 = vrot.lane.b32.xlu1 %v3533_v58, %s7391_s30  ;;  %s5010_s30 = sshll.u32 %s7567_s22, 6 }
 0x370   : > { %v3146_v12 = vsel %vm344_vm3, %v3140_v32, %v7363_v45 }
 0x371   : > { %v6598_v25 = vsel %vm7479_vm14, %v6375_v17, %v3146_v12  ;;  %v6600_v31 = vpop.permute.xlu0 %3215  ;;  %v6602_v47 = vpop.permute.xlu1 %3260  ;;  %vm7484_vm14 = vcmask 457728  }
 0x372   : > { %v7362_v46 = vrot.slane %v6600_v31, 4 }
 0x373   : > { %3627 = vrot.lane.b32.xlu0 %v6551_v15, %s7392_s27  ;;  %3588 = vrot.lane.b32.xlu1 %v3574_v52, %s7455_s16  ;;  %v3656_v52 = vld [vmem:[#allocation3 + $0x24] sm:$0xf] }
 0x374   : > { %v3228_v32 = vsel %vm344_vm3, %v3222_v50, %v7362_v46 }
 0x375   : > { %v6615_v17 = vsel %vm7480_vm12, %v6397_v44, %v3228_v32  ;;  %v6617_v7 = vpop.permute.xlu0 %3297  ;;  %v6619_v58 = vpop.permute.xlu1 %3301  ;;  %vm7485_vm12 = vcmask 441344  }
 0x376   : > { %v7364_v12 = vrot.slane %v6617_v7, 4 }
 0x377   : > { %3668 = vrot.lane.b32.xlu0 %v6551_v15, %s7393_s9  ;;  %3629 = vrot.lane.b32.xlu1 %v3615_v3, %s7392_s27  ;;  %v3697_v3 = vld [vmem:[#allocation3 + $0x24] sm:$0xf] }
 0x378   : > { %v3310_v50 = vsel %vm344_vm3, %v3304_v16, %v7364_v12 }
 0x379   : > { %v6632_v44 = vsel %vm7481_vm15, %v6419_v13, %v3310_v50  ;;  %v6634_v32 = vpop.permute.xlu0 %3379  ;;  %v6636_v46 = vpop.permute.xlu1 %3342  ;;  %vm7486_vm15 = vcmask 367616  }
 0x37a   : > { %v7366_v45 = vrot.slane %v6634_v32, 4 }
 0x37b   : > { %3709 = vrot.lane.b32.xlu0 %v6551_v15, %s7464_s13  ;;  %3670 = vrot.lane.b32.xlu1 %v3656_v52, %s7393_s9  ;;  %v3738_v52 = vld [vmem:[#allocation3 + $0x24] sm:$0xf]  ;;  %s7274_s9 = scalar_lea.vmem %s7293_s6, %s5010_s30 }
 0x37c   : > { %v3392_v16 = vsel %vm344_vm3, %v3386_v29, %v7366_v45 }
 0x37d   : > { %v6649_v13 = vsel %vm7482_vm2, %v6441_v53, %v3392_v16  ;;  %v6651_v50 = vpop.permute.xlu0 %3461  ;;  %v6653_v12 = vpop.permute.xlu1 %3383  ;;  %vm7488_vm2 = vcmask 293888  }
 0x37e   : > { %v7369_v63 = vrot.slane %v6651_v50, 4 }
 0x37f   : > { %3750 = vrot.lane.b32.xlu0 %v6551_v15, %s7459_s15  ;;  %3711 = vrot.lane.b32.xlu1 %v3697_v3, %s7464_s13  ;;  %v3779_v3 = vld [vmem:[#allocation3 + $0x24] sm:$0xf] }
 0x380   : > { %v3474_v29 = vsel %vm344_vm3, %v3468_v54, %v7369_v63 }
 0x381   : > { %v6666_v53 = vsel %vm7483_vm0, %v6461_v39, %v3474_v29  ;;  %v6668_v16 = vpop.permute.xlu0 %3500  ;;  %v6670_v45 = vpop.permute.xlu1 %3424  ;;  %vm7489_vm0 = vcmask 146432  }
 0x382   : > { %v7371_v56 = vrot.slane %v6668_v16, 4 }
 0x383   : > { %3791 = vrot.lane.b32.xlu0 %v6551_v15, %s7458_s17  ;;  %3752 = vrot.lane.b32.xlu1 %v3738_v52, %s7459_s15  ;;  %v3820_v52 = vld [vmem:[#allocation3 + $0x24] sm:$0xf] }
 0x384   : > { %v3513_v54 = vsel %vm344_vm3, %v3508_v8, %v7371_v56 }
 0x385   : > { %v6682_v39 = vsel %vm7484_vm14, %v6485_v36, %v3513_v54  ;;  %v6684_v29 = vpop.permute.xlu0 %3543  ;;  %v6686_v63 = vpop.permute.xlu1 %2886  ;;  %v3966_v36 = vld [vmem:[%s7291_s4] sm:$0xff]  ;;  %v3590_v54 = vrot.slane %v6497_v55, 4  ;;  %vm7491_vm14 = vcmask 130048  }
 0x386   : > { %v7374_v21 = vrot.slane %v6686_v63, 4 }
 0x387   : > { %3832 = vrot.lane.b32.xlu0 %v6551_v15, %s7460_s19  ;;  %3793 = vrot.lane.b32.xlu1 %v3779_v3, %s7458_s17 }
 0x388   : > { %v2896_v8 = vsel %vm344_vm3, %v2891_v48, %v7374_v21 }
 0x389   : > { %v2897_v56 = vsel %vm411_vm4, %v6283_v23, %v2896_v8  ;;  %v6703_v27 = vpop.permute.xlu0 %3582  ;;  %v6705_v15 = vpop.permute.xlu1 %2956 }
 0x38a   : > { %v7376_v3 = vrot.slane %v6703_v27, 4  ;;  %v7379_v11 = vrot.slane %v6705_v15, 4  ;;  %v4898_v48 = vcombine.low %v2897_v56, %v6544_v35  ;;  %v4899_v21 = vcombine.high %v2897_v56, %v6544_v35 }
 0x38b   : > { %3969 = vperm.xlu0 %5053, %v3966_v36   ;;  %3834 = vrot.lane.b32.xlu1 %v3820_v52, %s7460_s19 }
 0x38c   : > { %v3595_v26 = vsel %vm344_vm3, %v3590_v54, %v7376_v3  ;;  %v2966_v23 = vsel %vm344_vm3, %v2961_v24, %v7379_v11  ;;  %4589 = vmatprep.subr.bf16.mxu1 %v4899_v21 }
 0x38d   : > { %v6722_v8 = vsel %vm7485_vm12, %v6497_v55, %v3595_v26  ;;  %v2967_v56 = vsel %vm535_vm6, %v6305_v38, %v2966_v23  ;;  %v6726_v35 = vpop.permute.xlu0 %3625  ;;  %v6728_v36 = vpop.permute.xlu1 %3026  ;;  %4590 = vmatpush1.bf16.msra.mxu1 %v4898_v48  ;;  %v3672_v38 = vrot.slane %v6504_v10, 4  ;;  %vm7493_vm12 = vcmask 277504  }
 0x38e   : > { %v7377_v52 = vrot.slane %v6728_v36, 4  ;;  %v4906_v54 = vcombine.low %v2967_v56, %v6564_v37  ;;  %v4907_v3 = vcombine.high %v2967_v56, %v6564_v37 }
 0x390   : > { %v3036_v24 = vsel %vm344_vm3, %v3031_v42, %v7377_v52  ;;  %4591 = vmatprep.subr.bf16.mxu1 %v4907_v3 }
 0x391   : > { %v3037_v26 = vsel %vm659_vm9, %v6329_v2, %v3036_v24  ;;  %v6741_v55 = vpop.permute.xlu0 %3664  ;;  %v6743_v21 = vpop.permute.xlu1 %3096  ;;  %4592 = vmatpush1.bf16.msra.mxu1 %v4906_v54 }
 0x392   : > { %v3673_v48 = vrot.slane %v6741_v55, 4  ;;  %v7378_v37 = vrot.slane %v6743_v21, 4  ;;  %v4914_v23 = vcombine.low %v3037_v26, %v6581_v0  ;;  %v4915_v56 = vcombine.high %v3037_v26, %v6581_v0 }
 0x394   : > { %v3677_v42 = vsel %vm344_vm3, %v3672_v38, %v3673_v48  ;;  %v3106_v2 = vsel %vm344_vm3, %v3101_v5, %v7378_v37  ;;  %4593 = vmatprep.subr.bf16.mxu1 %v4915_v56 }
 0x395   : > { %v6759_v3 = vsel %vm7486_vm15, %v6504_v10, %v3677_v42  ;;  %v3107_v54 = vsel %vm783_vm11, %v6351_v40, %v3106_v2  ;;  %v6763_v24 = vpop.permute.xlu0 %3707  ;;  %v6765_v0 = vpop.permute.xlu1 %3174  ;;  %4594 = vmatpush1.bf16.msra.mxu1 %v4914_v23  ;;  %v3754_v40 = vrot.slane %v6512_v18, 4  ;;  %vm7494_vm15 = vcmask 56320  }
 0x396   : > { %v3182_v38 = vrot.slane %v6765_v0, 4  ;;  %v4922_v26 = vcombine.low %v3107_v54, %v6598_v25  ;;  %v4923_v52 = vcombine.high %v3107_v54, %v6598_v25 }
 0x398   : > { %v3187_v5 = vsel %vm344_vm3, %v3181_v41, %v3182_v38  ;;  %4595 = vmatprep.subr.bf16.mxu1 %v4923_v52 }
 0x399   : > { %v3188_v10 = vsel %vm933_vm13, %v6373_v60, %v3187_v5  ;;  %v6778_v56 = vpop.permute.xlu0 %3746  ;;  %v6780_v23 = vpop.permute.xlu1 %3256  ;;  %4596 = vmatpush1.bf16.msra.mxu1 %v4922_v26  ;;  %v7487_v60 = vrot.slane %v6395_v30, 4 }
 0x39a   : > { %v7383_v42 = vrot.slane %v6778_v56, 4  ;;  %v7380_v25 = vrot.slane %v6780_v23, 4  ;;  %v4930_v2 = vcombine.low %v3188_v10, %v6615_v17  ;;  %v4931_v54 = vcombine.high %v3188_v10, %v6615_v17 }
 0x39c   : > { %v3759_v41 = vsel %vm344_vm3, %v3754_v40, %v7383_v42  ;;  %v3269_v52 = vsel %vm344_vm3, %v7487_v60, %v7380_v25  ;;  %4597 = vmatprep.subr.bf16.mxu1 %v4931_v54  ;;  %v7490_v54 = vrot.slane %v6417_v62, 4 }
 0x39d   : > { %v6796_v26 = vsel %vm7488_vm2, %v6512_v18, %v3759_v41  ;;  %v3270_v5 = vsel %vm7489_vm0, %v6395_v30, %v3269_v52  ;;  %v6800_v37 = vpop.permute.xlu0 %3789  ;;  %v6802_v17 = vpop.permute.xlu1 %3338  ;;  %4598 = vmatpush1.bf16.msra.mxu1 %v4930_v2  ;;  %v3836_v30 = vrot.slane %v6528_v51, 4  ;;  %vm7497_vm2 = vcmask 457728  }
 0x39e   : > { %v7381_v40 = vrot.slane %v6802_v17, 4  ;;  %v4938_v10 = vcombine.low %v3270_v5, %v6632_v44  ;;  %v4939_v11 = vcombine.high %v3270_v5, %v6632_v44 }
 0x3a0   : > { %v3351_v18 = vsel %vm344_vm3, %v7490_v54, %v7381_v40  ;;  %4599 = vmatprep.subr.bf16.mxu1 %v4939_v11 }
 0x3a1   : > { %v3352_v41 = vsel %vm7491_vm14, %v6417_v62, %v3351_v18  ;;  %v6815_v60 = vpop.permute.xlu0 %3828  ;;  %v6817_v2 = vpop.permute.xlu1 %3420  ;;  %4600 = vmatpush1.bf16.msra.mxu1 %v4938_v10  ;;  %v7492_v62 = vrot.slane %v6439_v49, 4 }
 0x3a2   : > { %v7382_v52 = vrot.slane %v6815_v60, 4  ;;  %v7386_v44 = vrot.slane %v6817_v2, 4  ;;  %v4946_v5 = vcombine.low %v3352_v41, %v6649_v13  ;;  %v4947_v25 = vcombine.high %v3352_v41, %v6649_v13 }
 0x3a4   : > { %v3841_v11 = vsel %vm344_vm3, %v3836_v30, %v7382_v52  ;;  %v3433_v54 = vsel %vm344_vm3, %v7492_v62, %v7386_v44  ;;  %4601 = vmatprep.subr.bf16.mxu1 %v4947_v25  ;;  %v7495_v25 = vrot.slane %v6510_v9, 4  ;;  %v7501_v44 = vrot.slane %v6546_v33, 4 }
 0x3a5   : > { %v6833_v10 = vsel %vm7493_vm12, %v6528_v51, %v3841_v11  ;;  %v3434_v18 = vsel %vm7494_vm15, %v6439_v49, %v3433_v54  ;;  %v2854_v40 = vpop.permute.xlu0 %2853  ;;  %v6837_v13 = vpop.permute.xlu1 %3502  ;;  %4602 = vmatpush1.bf16.msra.mxu1 %v4946_v5  ;;  %v7496_v49 = vrot.slane %v6668_v16, 4  ;;  %vm7507_vm12 = vcmask 375808  }
 0x3a6   : > { %v2858_v41 = vrot.slane %v2854_v40, 4  ;;  %v7384_v30 = vrot.slane %v6837_v13, 4  ;;  %v4954_v52 = vcombine.low %v3434_v18, %v6666_v53  ;;  %v4955_v42 = vcombine.high %v3434_v18, %v6666_v53  ;;  %vm7508_vm15 = vmmov %vm7507_vm12 }
 0x3a8   : > { %v2863_v62 = vsel %vm344_vm3, %v7495_v25, %v2858_v41  ;;  %v2865_v51 = vsel %vm346_vm5, %v2854_v40, %v2858_v41  ;;  %v3515_v11 = vsel %vm344_vm3, %v7496_v49, %v7384_v30  ;;  %4603 = vmatprep.subr.bf16.mxu1 %v4955_v42  ;;  %v3549_v40 = vrot.slane %v6459_v43, 4 }
 0x3a9   : > { %v6853_v5 = vsel %vm346_vm5, %v6510_v9, %v2863_v62  ;;  %2873 = vst.msk [vmem:[#allocation4 + $0x38] sm:$0xff] %vm6181_vm10, %v2865_v51  ;;  %v3516_v53 = vsel %vm7497_vm2, %v6668_v16, %v3515_v11  ;;  %v2924_v54 = vpop.permute.xlu0 %2923  ;;  %v3542_v18 = vpop.permute.xlu1 %3541  ;;  %4604 = vmatpush1.bf16.msra.mxu1 %v4954_v52  ;;  %v7385_v41 = vrot.slane %v6684_v29, 4  ;;  %v7498_v42 = vrot.slane %v6526_v4, 4 }
 0x3aa   : > { %v2928_v25 = vrot.slane %v2924_v54, 4  ;;  %v3550_v49 = vrot.slane %v3542_v18, 4  ;;  %vm7499_vm5 = vcmask 449536   ;;  %vm7510_vm2 = vcmask 228352  }
 0x3ab   : > { %vm7500_vm0 = vmmov %vm7499_vm5 }
 0x3ac   : > { %v2933_v9 = vsel %vm344_vm3, %v7498_v42, %v2928_v25  ;;  %v2935_v62 = vsel %vm473_vm7, %v2924_v54, %v2928_v25  ;;  %v3554_v51 = vsel %vm344_vm3, %v3549_v40, %v3550_v49  ;;  %v3556_v16 = vsel %vm344_vm3, %v3550_v49, %v7385_v41 }
 0x3ad   : > { %v6871_v52 = vsel %vm473_vm7, %v6526_v4, %v2933_v9  ;;  %2943 = vst.msk [vmem:[#allocation4 + $0x78] sm:$0xff] %vm6181_vm10, %v2935_v62  ;;  %v3555_v11 = vsel %vm7499_vm5, %v6459_v43, %v3554_v51  ;;  %v3557_v42 = vsel %vm7500_vm0, %v3542_v18, %v3556_v16  ;;  %v2994_v30 = vpop.permute.xlu0 %2993  ;;  %v6878_v54 = vpop.permute.xlu1 %3584  ;;  %v7502_v18 = vrot.slane %v6703_v27, 4  ;;  %vm7511_vm5 = vmmov %vm7510_vm2 }
 0x3ae   : > { %v2998_v40 = vrot.slane %v2994_v30, 4  ;;  %v3592_v25 = vrot.slane %v6878_v54, 4  ;;  %v4960_v49 = vcombine.low %v6682_v39, %v3555_v11  ;;  %v4961_v41 = vcombine.high %v6682_v39, %v3555_v11 }
 0x3af   : > { %v4962_v4 = vcombine.low %v3516_v53, %v3557_v42  ;;  %v4963_v9 = vcombine.high %v3516_v53, %v3557_v42  ;;  %vm7503_vm7 = vcmask 441344   ;;  %v3633_v11 = vrot.slane %v6726_v35, 4 }
 0x3b0   : > { %v3003_v62 = vsel %vm344_vm3, %v7501_v44, %v2998_v40  ;;  %v3005_v43 = vsel %vm597_vm8, %v2994_v30, %v2998_v40  ;;  %v3597_v51 = vsel %vm344_vm3, %v7502_v18, %v3592_v25  ;;  %4564 = vmatprep.subr.bf16.mxu0 %v4961_v41  ;;  %v3631_v30 = vrot.slane %v6483_v20, 4 }
 0x3b1   : > { %v6894_v16 = vsel %vm597_vm8, %v6546_v33, %v3003_v62  ;;  %3013 = vst.msk [vmem:[#allocation4 + $0xb8] sm:$0xff] %vm6181_vm10, %v3005_v43  ;;  %v3598_v39 = vsel %vm7503_vm7, %v6703_v27, %v3597_v51  ;;  %v3064_v44 = vpop.permute.xlu0 %3063  ;;  %v3624_v53 = vpop.permute.xlu1 %3623  ;;  %4605 = vmatprep.subr.bf16.mxu1 %v4963_v9  ;;  %4565 = vmatpush1.bf16.msra.mxu0 %v4960_v49  ;;  %v7504_v33 = vrot.slane %v6566_v1, 4  ;;  %vm7505_vm8 = vcmask 875520  }
 0x3b2   : > { %v3068_v42 = vrot.slane %v3064_v44, 4  ;;  %v3632_v41 = vrot.slane %v3624_v53, 4  ;;  %4606 = vmatpush1.bf16.msra.mxu1 %v4962_v4  ;;  %v3143_v49 = vrot.slane %v6548_v14, 4  ;;  %vm7506_vm14 = vmmov %vm7505_vm8  ;;  %vm7512_vm0 = vcmask 367616  }
 0x3b3   : > { %vm7513_vm7 = vcmask 359424  }
 0x3b4   : > { %v3073_v40 = vsel %vm344_vm3, %v7504_v33, %v3068_v42  ;;  %v3075_v62 = vsel %vm7505_vm8, %v3064_v44, %v3068_v42  ;;  %v3636_v43 = vsel %vm344_vm3, %v3631_v30, %v3632_v41  ;;  %v3638_v27 = vsel %vm344_vm3, %v3632_v41, %v3633_v11  ;;  %vm7514_vm8 = vmmov %vm7513_vm7 }
 0x3b5   : > { %v6913_v9 = vsel %vm7506_vm14, %v6566_v1, %v3073_v40  ;;  %3083 = vst.msk [vmem:[#allocation4 + $0xf8] sm:$0xff] %vm6181_vm10, %v3075_v62  ;;  %v3637_v4 = vsel %vm7507_vm12, %v6483_v20, %v3636_v43  ;;  %v3639_v18 = vsel %vm7508_vm15, %v3624_v53, %v3638_v27  ;;  %v3136_v51 = vpop.permute.xlu0 %3135  ;;  %v6920_v44 = vpop.permute.xlu1 %3666  ;;  %v7509_v40 = vrot.slane %v6583_v59, 4 }
 0x3b6   : > { %v3142_v30 = vrot.slane %v3136_v51, 4  ;;  %v3674_v42 = vrot.slane %v6920_v44, 4  ;;  %v4968_v14 = vcombine.low %v6722_v8, %v3637_v4  ;;  %v4969_v41 = vcombine.high %v6722_v8, %v3637_v4 }
 0x3b7   : > { %v4970_v1 = vcombine.low %v3598_v39, %v3639_v18  ;;  %v4971_v33 = vcombine.high %v3598_v39, %v3639_v18  ;;  %v3713_v43 = vrot.slane %v6495_v22, 4  ;;  %v3184_v18 = vrot.slane %v6568_v6, 4 }
 0x3b8   : > { %v3148_v62 = vsel %vm344_vm3, %v7509_v40, %v3142_v30  ;;  %v3150_v20 = vsel %vm344_vm3, %v3142_v30, %v3143_v49  ;;  %v3679_v53 = vsel %vm344_vm3, %v3673_v48, %v3674_v42  ;;  %4566 = vmatprep.subr.bf16.mxu0 %v4969_v41  ;;  %v3715_v48 = vrot.slane %v6763_v24, 4 }
 0x3b9   : > { %v6937_v8 = vsel %vm7510_vm2, %v6583_v59, %v3148_v62  ;;  %v3151_v39 = vsel %vm7511_vm5, %v3136_v51, %v3150_v20  ;;  %v3680_v27 = vsel %vm7512_vm0, %v6741_v55, %v3679_v53  ;;  %v3177_v4 = vpop.permute.xlu0 %3176  ;;  %v3706_v49 = vpop.permute.xlu1 %3705  ;;  %4607 = vmatprep.subr.bf16.mxu1 %v4971_v33  ;;  %4567 = vmatpush1.bf16.msra.mxu0 %v4968_v14  ;;  %v3225_v59 = vrot.slane %v6585_v61, 4 }
 0x3ba   : > { %3159 = vst.msk [vmem:[#allocation4 + $0x138] sm:$0xff] %vm6181_vm10, %v3151_v39  ;;  %v3183_v30 = vrot.slane %v3177_v4, 4  ;;  %v3714_v41 = vrot.slane %v3706_v49, 4  ;;  %4608 = vmatpush1.bf16.msra.mxu1 %v4970_v1  ;;  %vm7519_vm12 = vcmask 293888   ;;  %vm7521_vm15 = vcmask 146432  }
 0x3bb   : > { %vm7522_vm2 = vmmov %vm7521_vm15  ;;  %vm7523_vm5 = vcmask 285696  }
 0x3bc   : > { %v3189_v55 = vsel %vm344_vm3, %v3182_v38, %v3183_v30  ;;  %v3191_v51 = vsel %vm344_vm3, %v3183_v30, %v3184_v18  ;;  %v3718_v14 = vsel %vm344_vm3, %v3713_v43, %v3714_v41  ;;  %v3720_v6 = vsel %vm344_vm3, %v3714_v41, %v3715_v48  ;;  %vm7524_vm0 = vmmov %vm7523_vm5 }
 0x3bd   : > { %v6957_v33 = vsel %vm933_vm13, %v6765_v0, %v3189_v55  ;;  %v3192_v1 = vsel %vm933_vm13, %v3177_v4, %v3191_v51  ;;  %v3719_v61 = vsel %vm7513_vm7, %v6495_v22, %v3718_v14  ;;  %v3721_v40 = vsel %vm7514_vm8, %v3706_v49, %v3720_v6  ;;  %v3218_v38 = vpop.permute.xlu0 %3217  ;;  %v6963_v62 = vpop.permute.xlu1 %3748 }
 0x3be   : > { %3200 = vst.msk [vmem:[#allocation4 + $0x158] sm:$0xff] %vm6181_vm10, %v3192_v1  ;;  %v3224_v20 = vrot.slane %v3218_v38, 4  ;;  %v3756_v53 = vrot.slane %v6963_v62, 4  ;;  %v4976_v43 = vcombine.low %v6759_v3, %v3719_v61  ;;  %v4977_v0 = vcombine.high %v6759_v3, %v3719_v61 }
 0x3bf   : > { %v4978_v39 = vcombine.low %v3680_v27, %v3721_v40  ;;  %v4979_v4 = vcombine.high %v3680_v27, %v3721_v40  ;;  %v7515_v18 = vrot.slane %v6600_v31, 4  ;;  %v7516_v30 = vrot.slane %v6778_v56, 4 }
 0x3c0   : > { %v3232_v49 = vsel %vm344_vm3, %v3224_v20, %v3225_v59  ;;  %4568 = vmatprep.subr.bf16.mxu0 %v4977_v0  ;;  %v3795_v55 = vrot.slane %v6502_v34, 4  ;;  %vm7517_vm13 = vcmask 211968   ;;  %v3266_v6 = vrot.slane %v6602_v47, 4 }
 0x3c1   : > { %v3230_v22 = vsel %vm344_vm3, %v7515_v18, %v3224_v20  ;;  %v3761_v41 = vsel %vm344_vm3, %v7516_v30, %v3756_v53  ;;  %vm7518_vm14 = vmmov %vm7517_vm13  ;;  %v3259_v14 = vpop.permute.xlu0 %3258  ;;  %v3788_v59 = vpop.permute.xlu1 %3787  ;;  %4609 = vmatprep.subr.bf16.mxu1 %v4979_v4  ;;  %4569 = vmatpush1.bf16.msra.mxu0 %v4976_v43  ;;  %v3797_v1 = vrot.slane %v6800_v37, 4  ;;  %vm7527_vm7 = vcmask 138240  }
 0x3c2   : > { %v6982_v3 = vsel %vm7517_vm13, %v6600_v31, %v3230_v22  ;;  %v3233_v27 = vsel %vm7518_vm14, %v3218_v38, %v3232_v49  ;;  %v3762_v51 = vsel %vm7519_vm12, %v6778_v56, %v3761_v41  ;;  %v3265_v61 = vrot.slane %v3259_v14, 4  ;;  %4610 = vmatpush1.bf16.msra.mxu1 %v4978_v39  ;;  %vm7528_vm8 = vmmov %vm7527_vm7 }
 0x3c3   : > { %3241 = vst.msk [vmem:[#allocation4 + $0x178] sm:$0xff] %vm6181_vm10, %v3233_v27  ;;  %v3796_v40 = vrot.slane %v3788_v59, 4  ;;  %v3307_v31 = vrot.slane %v6619_v58, 4  ;;  %v7520_v38 = vrot.slane %v6780_v23, 4  ;;  %vm7529_vm13 = vcmask 277504  }
 0x3c4   : > { %v3273_v20 = vsel %vm344_vm3, %v3265_v61, %v3266_v6  ;;  %vm7531_vm14 = vcmask 130048  }
 0x3c5   : > { %v3271_v56 = vsel %vm344_vm3, %v7520_v38, %v3265_v61  ;;  %v3800_v43 = vsel %vm344_vm3, %v3795_v55, %v3796_v40  ;;  %v3802_v47 = vsel %vm344_vm3, %v3796_v40, %v3797_v1  ;;  %v3274_v39 = vsel %vm7522_vm2, %v3259_v14, %v3273_v20  ;;  %v3300_v18 = vpop.permute.xlu0 %3299  ;;  %v7008_v22 = vpop.permute.xlu1 %3830  ;;  %vm7532_vm12 = vmmov %vm7531_vm14 }
 0x3c6   : > { %v7002_v0 = vsel %vm7521_vm15, %v6780_v23, %v3271_v56  ;;  %v3801_v58 = vsel %vm7523_vm5, %v6502_v34, %v3800_v43  ;;  %v3803_v4 = vsel %vm7524_vm0, %v3788_v59, %v3802_v47  ;;  %3282 = vst.msk [vmem:[#allocation4 + $0x198] sm:$0xff] %vm6181_vm10, %v3274_v39  ;;  %v3306_v49 = vrot.slane %v3300_v18, 4  ;;  %v3865_v39 = vld [vmem:[#allocation4 + $0x38] sm:$0xff] }
 0x3c7   : > { %v3838_v30 = vrot.slane %v7008_v22, 4  ;;  %v4984_v41 = vcombine.low %v6796_v26, %v3801_v58  ;;  %v4985_v23 = vcombine.high %v6796_v26, %v3801_v58  ;;  %v4986_v55 = vcombine.low %v3762_v51, %v3803_v4 }
 0x3c8   : > { %v4987_v27 = vcombine.high %v3762_v51, %v3803_v4  ;;  %v4992_v34 = vcombine.low %v6833_v10, %v6833_v10  ;;  %v7525_v14 = vrot.slane %v6617_v7, 4  ;;  %v3314_v6 = vsel %vm344_vm3, %v3306_v49, %v3307_v31 }
 0x3c9   : > { %v7526_v61 = vrot.slane %v6815_v60, 4  ;;  %4570 = vmatprep.subr.bf16.mxu0 %v4985_v23  ;;  %v4993_v26 = vcombine.high %v6833_v10, %v6833_v10  ;;  %v3315_v38 = vsel %vm7528_vm8, %v3300_v18, %v3314_v6  ;;  %v3341_v31 = vpop.permute.xlu0 %3340  ;;  %v7035_v20 = vpop.permute.xlu1 %3465  ;;  %v3348_v43 = vrot.slane %v6636_v46, 4 }
 0x3ca   : > { %v3312_v59 = vsel %vm344_vm3, %v7525_v14, %v3306_v49  ;;  %4611 = vmatprep.subr.bf16.mxu1 %v4987_v27  ;;  %4571 = vmatpush1.bf16.msra.mxu0 %v4984_v41  ;;  %3323 = vst.msk [vmem:[#allocation4 + $0x1b8] sm:$0xff] %vm6181_vm10, %v3315_v38  ;;  %v3347_v10 = vrot.slane %v3341_v31, 4  ;;  %v4523_v58 = vsel %vm344_vm3, %v4992_v34, 0  ;;  %v7530_v4 = vrot.slane %v6802_v17, 4  ;;  %v5077_v41 = vld [vmem:[#allocation4 + $0x10] sm:$0xff] }
 0x3cb   : > { %v3843_v40 = vsel %vm344_vm3, %v7526_v61, %v3838_v30  ;;  %v7030_v51 = vsel %vm7527_vm7, %v6617_v7, %v3312_v59  ;;  %4612 = vmatpush1.bf16.msra.mxu1 %v4986_v55  ;;  %5000 = vmatprep.subr.msk.bf16.mxu0 %vm344_vm3, %v4993_v26  ;;  %v4893_v23 = vcombine.high %v5077_v41, %v6853_v5  ;;  %v3861_v55 = vld [vmem:[#allocation4 + $0x18] sm:$0xff]  ;;  %v3389_v6 = vrot.slane %v6653_v12, 4 }
 0x3cc   : > { %v3844_v56 = vsel %vm7529_vm13, %v6815_v60, %v3843_v40  ;;  %v7044_v60 = vcombine.low %v6468_v57, %v6468_v57  ;;  %v3353_v46 = vsel %vm344_vm3, %v7530_v4, %v3347_v10  ;;  %v3355_v18 = vsel %vm344_vm3, %v3347_v10, %v3348_v43 }
 0x3cd   : > { %v4995_v7 = vcombine.high %v3844_v56, %v3844_v56  ;;  %v4994_v47 = vcombine.low %v3844_v56, %v3844_v56  ;;  %v7055_v27 = vsel %vm7531_vm14, %v6802_v17, %v3353_v46  ;;  %v3356_v57 = vsel %vm7532_vm12, %v3341_v31, %v3355_v18  ;;  %v3382_v34 = vpop.permute.xlu0 %3381  ;;  %v2889_v14 = vpop.permute.xlu1 %2888 }
 0x3ce   : > { %4573 = vmatpush1.bf16.msra.mxu0 %v4523_v58  ;;  %v4895_v59 = vcombine.high %v3861_v55, %v3865_v39  ;;  %3364 = vst.msk [vmem:[#allocation4 + $0x1d8] sm:$0xff] %vm6181_vm10, %v3356_v57  ;;  %v3388_v61 = vrot.slane %v3382_v34, 4  ;;  %v2893_v40 = vrot.slane %v2889_v14, 4  ;;  %v4892_v26 = vcombine.low %v5077_v41, %v6853_v5 }
 0x3cf   : > { %5002 = vmatprep.subr.msk.bf16.mxu1 %vm344_vm3, %v4995_v7  ;;  %v4529_v49 = vsel %vm344_vm3, %v4994_v47, 0  ;;  %4628 = vmatprep.subr.bf16.mxu0 %v4893_v23  ;;  %v4894_v38 = vcombine.low %v3861_v55, %v3865_v39  ;;  %v7533_v17 = vrot.slane %v6634_v32, 4  ;;  %v7534_v43 = vrot.slane %v6686_v63, 4 }
 0x3d0   : > { %4614 = vmatpush1.bf16.msra.mxu1 %v4529_v49  ;;  %v3396_v31 = vsel %vm344_vm3, %v3388_v61, %v3389_v6  ;;  %v2900_v10 = vsel %vm411_vm4, %v2889_v14, %v2893_v40  ;;  %v3430_v7 = vrot.slane %v6670_v45, 4  ;;  %vm7535_vm15 = vcmask 64512  }
 0x3d1   : > { %4669 = vmatprep.subr.bf16.mxu1 %v4895_v59  ;;  %v3394_v56 = vsel %vm344_vm3, %v7533_v17, %v3388_v61  ;;  %v2898_v12 = vsel %vm344_vm3, %v7534_v43, %v2893_v40  ;;  %4579 = vmatmul.mubr.bf16.vlgmr.msra.gmra.mrb[8].mxu0 %v7044_v60  ;;  %vm7536_vm2 = vmmov %vm7535_vm15  ;;  %2908 = vst.msk [vmem:[#allocation4 + $0x58] sm:$0xff] %vm6181_vm10, %v2900_v10  ;;  %v3423_v58 = vpop.permute.xlu0 %3422  ;;  %v2959_v4 = vpop.permute.xlu1 %2958  ;;  %v7538_v23 = vrot.slane %v6705_v15, 4  ;;  %v7542_v17 = vrot.slane %v6728_v36, 4 }
 0x3d2   : > { %v7074_v5 = vsel %vm7535_vm15, %v6634_v32, %v3394_v56  ;;  %v3397_v47 = vsel %vm7536_vm2, %v3382_v34, %v3396_v31  ;;  %v2899_v39 = vsel %vm411_vm4, %v6686_v63, %v2898_v12  ;;  %4629 = vmatpush1.bf16.msra.mxu0 %v4892_v26  ;;  %v3429_v45 = vrot.slane %v3423_v58, 4  ;;  %5005 = vmatprep.mubr.msk.bf16.mxu0 %vm4518_vm1, %v6476_v19  ;;  %v3873_v12 = vld [vmem:[#allocation4 + $0x78] sm:$0xff] }
 0x3d3   : > { %4620 = vmatmul.mubr.bf16.vlgmr.msra.gmra.mrb[8].mxu1 %v7044_v60  ;;  %3405 = vst.msk [vmem:[#allocation4 + $0x1f8] sm:$0xff] %vm6181_vm10, %v3397_v47  ;;  %v2963_v46 = vrot.slane %v2959_v4, 4  ;;  %v4900_v32 = vcombine.low %v2899_v39, %v6871_v52  ;;  %v4901_v18 = vcombine.high %v2899_v39, %v6871_v52  ;;  %v7537_v63 = vrot.slane %v6817_v2, 4 }
 0x3d4   : > { %4670 = vmatpush1.bf16.msra.mxu1 %v4894_v38  ;;  %5007 = vmatprep.mubr.msk.bf16.mxu1 %vm4518_vm1, %v6476_v19  ;;  %v3437_v41 = vsel %vm344_vm3, %v3429_v45, %v3430_v7  ;;  %v3471_v52 = vrot.slane %v7035_v20, 4  ;;  %vm7539_vm4 = vcmask 56320   ;;  %v7541_v26 = vrot.slane %v6651_v50, 4 }
 0x3d5   : > { %v3435_v49 = vsel %vm344_vm3, %v7537_v63, %v3429_v45  ;;  %v2968_v55 = vsel %vm344_vm3, %v7538_v23, %v2963_v46  ;;  %v2970_v57 = vsel %vm535_vm6, %v2959_v4, %v2963_v46  ;;  %4630 = vmatprep.subr.bf16.mxu0 %v4901_v18  ;;  %vm7540_vm1 = vmmov %vm7539_vm4  ;;  %v3464_v59 = vpop.permute.xlu0 %3463  ;;  %v3029_v6 = vpop.permute.xlu1 %3028  ;;  %v7545_v18 = vrot.slane %v6837_v13, 4 }
 0x3d6   : > { %v7101_v34 = vsel %vm7539_vm4, %v6817_v2, %v3435_v49  ;;  %v3438_v19 = vsel %vm7540_vm1, %v3423_v58, %v3437_v41  ;;  %v2969_v14 = vsel %vm535_vm6, %v6705_v15, %v2968_v55  ;;  %2978 = vst.msk [vmem:[#allocation4 + $0x98] sm:$0xff] %vm6181_vm10, %v2970_v57  ;;  %4631 = vmatpush1.bf16.msra.mxu0 %v4900_v32  ;;  %v3470_v61 = vrot.slane %v3464_v59, 4  ;;  %v3881_v55 = vld [vmem:[#allocation4 + $0xb8] sm:$0xff] }
 0x3d7   : > { %3446 = vst.msk [vmem:[#allocation4 + $0x218] sm:$0xff] %vm6181_vm10, %v3438_v19  ;;  %v3033_v20 = vrot.slane %v3029_v6, 4  ;;  %v4908_v40 = vcombine.low %v2969_v14, %v6894_v16  ;;  %v4909_v2 = vcombine.high %v2969_v14, %v6894_v16  ;;  %vm7543_vm6 = vcmask 48128  }
 0x3d8   : > { %v3476_v38 = vsel %vm344_vm3, %v7541_v26, %v3470_v61  ;;  %v3478_v15 = vsel %vm344_vm3, %v3470_v61, %v3471_v52  ;;  %v3869_v43 = vld [vmem:[#allocation4 + $0x58] sm:$0xff]  ;;  %vm7544_vm5 = vmmov %vm7543_vm6  ;;  %v7546_v63 = vrot.slane %v6743_v21, 4  ;;  %vm7551_vm7 = vcmask 441344  }
 0x3d9   : > { %v3038_v56 = vsel %vm344_vm3, %v7542_v17, %v3033_v20  ;;  %v3040_v31 = vsel %vm659_vm9, %v3029_v6, %v3033_v20  ;;  %4632 = vmatprep.subr.bf16.mxu0 %v4909_v2  ;;  %v7122_v10 = vsel %vm7543_vm6, %v6651_v50, %v3476_v38  ;;  %v3479_v16 = vsel %vm7544_vm5, %v3464_v59, %v3478_v15  ;;  %v3505_v47 = vpop.permute.xlu0 %3504  ;;  %v3099_v39 = vpop.permute.xlu1 %3098  ;;  %v3889_v38 = vld [vmem:[#allocation4 + $0xf8] sm:$0xff]  ;;  %vm7554_vm14 = vmmov %vm7551_vm7 }
 0x3da   : > { %v3039_v7 = vsel %vm659_vm9, %v6728_v36, %v3038_v56  ;;  %3048 = vst.msk [vmem:[#allocation4 + $0xd8] sm:$0xff] %vm6181_vm10, %v3040_v31  ;;  %v4902_v58 = vcombine.low %v3869_v43, %v3873_v12  ;;  %4633 = vmatpush1.bf16.msra.mxu0 %v4908_v40  ;;  %3487 = vst.msk [vmem:[#allocation4 + $0x238] sm:$0xff] %vm6181_vm10, %v3479_v16  ;;  %v3511_v4 = vrot.slane %v3505_v47, 4  ;;  %v3103_v45 = vrot.slane %v3099_v39, 4 }
 0x3db   : > { %v4903_v46 = vcombine.high %v3869_v43, %v3873_v12  ;;  %v4916_v50 = vcombine.low %v3039_v7, %v6913_v9  ;;  %v4917_v32 = vcombine.high %v3039_v7, %v6913_v9  ;;  %vm7547_vm9 = vcmask 457728  }
 0x3dc   : > { %v3517_v36 = vsel %vm344_vm3, %v7545_v18, %v3511_v4  ;;  %v3108_v49 = vsel %vm344_vm3, %v7546_v63, %v3103_v45  ;;  %v3110_v41 = vsel %vm783_vm11, %v3099_v39, %v3103_v45  ;;  %v7548_v40 = vrot.slane %v6684_v29, 4  ;;  %vm7550_vm0 = vmmov %vm7547_vm9 }
 0x3dd   : > { %4671 = vmatprep.subr.bf16.mxu1 %v4903_v46  ;;  %v3877_v23 = vld [vmem:[#allocation4 + $0x98] sm:$0xff]  ;;  %v7142_v57 = vsel %vm7547_vm9, %v6837_v13, %v3517_v36  ;;  %v3109_v9 = vsel %vm783_vm11, %v6743_v21, %v3108_v49  ;;  %3118 = vst.msk [vmem:[#allocation4 + $0x118] sm:$0xff] %vm6181_vm10, %v3110_v41  ;;  %v3546_v52 = vpop.permute.xlu0 %3545  ;;  %v3507_v19 = vpop.permute.xlu1 %3506  ;;  %4634 = vmatprep.subr.bf16.mxu0 %v4917_v32  ;;  %vm7549_vm11 = vcmask 449536   ;;  %vm7553_vm13 = vcmask 375808  }
 0x3de   : > { %4672 = vmatpush1.bf16.msra.mxu1 %v4902_v58  ;;  %v4910_v14 = vcombine.low %v3877_v23, %v3881_v55  ;;  %v4911_v59 = vcombine.high %v3877_v23, %v3881_v55  ;;  %v3552_v6 = vrot.slane %v3546_v52, 4  ;;  %v3512_v61 = vrot.slane %v3507_v19, 4  ;;  %4635 = vmatpush1.bf16.msra.mxu0 %v4916_v50  ;;  %v3897_v58 = vld [vmem:[#allocation4 + $0x138] sm:$0xff]  ;;  %vm7552_vm8 = vmmov %vm7549_vm11 }
 0x3df   : > { %v4925_v20 = vcombine.high %v3109_v9, %v6937_v8  ;;  %v4924_v13 = vcombine.low %v3109_v9, %v6937_v8  ;;  %v4933_v7 = vcombine.high %v6957_v33, %v6982_v3  ;;  %vm7555_vm12 = vcmask 367616   ;;  %vm7556_vm15 = vmmov %vm7553_vm13 }
 0x3e0   : > { %4673 = vmatprep.subr.bf16.mxu1 %v4911_v59  ;;  %v3558_v21 = vsel %vm344_vm3, %v7548_v40, %v3552_v6  ;;  %v3519_v2 = vsel %vm344_vm3, %v3511_v4, %v3512_v61  ;;  %v4932_v4 = vcombine.low %v6957_v33, %v6982_v3  ;;  %v4941_v33 = vcombine.high %v7002_v0, %v7030_v51  ;;  %v3901_v3 = vld [vmem:[#allocation4 + $0x158] sm:$0xff]  ;;  %vm7558_vm4 = vmmov %vm7555_vm12 }
 0x3e1   : > { %v3885_v26 = vld [vmem:[#allocation4 + $0xd8] sm:$0xff]  ;;  %4636 = vmatprep.subr.bf16.mxu0 %v4925_v20  ;;  %v7156_v15 = vsel %vm7549_vm11, %v6684_v29, %v3558_v21  ;;  %v3520_v17 = vsel %vm7550_vm0, %v3505_v47, %v3519_v2  ;;  %v3587_v56 = vpop.permute.xlu0 %3586  ;;  %v3548_v31 = vpop.permute.xlu1 %3547  ;;  %v4949_v61 = vcombine.high %v7055_v27, %v7074_v5  ;;  %vm7557_vm2 = vcmask 359424  }
 0x3e2   : > { %4674 = vmatpush1.bf16.msra.mxu1 %v4910_v14  ;;  %v4918_v43 = vcombine.low %v3885_v26, %v3889_v38  ;;  %v4919_v8 = vcombine.high %v3885_v26, %v3889_v38  ;;  %3528 = vst.msk [vmem:[#allocation4 + $0x258] sm:$0xff] %vm6181_vm10, %v3520_v17  ;;  %v3593_v12 = vrot.slane %v3587_v56, 4  ;;  %v3553_v16 = vrot.slane %v3548_v31, 4  ;;  %4637 = vmatpush1.bf16.msra.mxu0 %v4924_v13  ;;  %v3913_v59 = vld [vmem:[#allocation4 + $0x1b8] sm:$0xff]  ;;  %vm7560_vm6 = vmmov %vm7557_vm2 }
 0x3e3   : > { %4638 = vmatprep.subr.bf16.mxu0 %v4933_v7  ;;  %v4940_v14 = vcombine.low %v7002_v0, %v7030_v51  ;;  %v3909_v20 = vld [vmem:[#allocation4 + $0x198] sm:$0xff]  ;;  %v4948_v38 = vcombine.low %v7055_v27, %v7074_v5  ;;  %v4957_v31 = vcombine.high %v7101_v34, %v7122_v10  ;;  %vm7559_vm1 = vcmask 293888  }
 0x3e4   : > { %4675 = vmatprep.subr.bf16.mxu1 %v4919_v8  ;;  %v3599_v29 = vsel %vm344_vm3, %v3592_v25, %v3593_v12  ;;  %v3560_v47 = vsel %vm344_vm3, %v3552_v6, %v3553_v16  ;;  %v3893_v39 = vld [vmem:[#allocation4 + $0x118] sm:$0xff]  ;;  %v4943_v0 = vcombine.high %v3909_v20, %v3913_v59  ;;  %vm7561_vm5 = vcmask 285696   ;;  %vm7562_vm9 = vmmov %vm7559_vm1 }
 0x3e5   : > { %v7171_v45 = vsel %vm7551_vm7, %v6878_v54, %v3599_v29  ;;  %v3561_v46 = vsel %vm7552_vm8, %v3546_v52, %v3560_v47  ;;  %v3628_v50 = vpop.permute.xlu0 %3627  ;;  %v3589_v32 = vpop.permute.xlu1 %3588  ;;  %v4926_v18 = vcombine.low %v3893_v39, %v3897_v58  ;;  %v4927_v36 = vcombine.high %v3893_v39, %v3897_v58  ;;  %v3905_v25 = vld [vmem:[#allocation4 + $0x178] sm:$0xff]  ;;  %vm7564_vm0 = vmmov %vm7561_vm5 }
 0x3e6   : > { %4676 = vmatpush1.bf16.msra.mxu1 %v4918_v43  ;;  %3569 = vst.msk [vmem:[#allocation4 + $0x278] sm:$0xff] %vm6181_vm10, %v3561_v46  ;;  %v3634_v63 = vrot.slane %v3628_v50, 4  ;;  %v3594_v49 = vrot.slane %v3589_v32, 4  ;;  %4639 = vmatpush1.bf16.msra.mxu0 %v4932_v4  ;;  %v4935_v23 = vcombine.high %v3901_v3, %v3905_v25  ;;  %v3921_v17 = vld [vmem:[#allocation4 + $0x1f8] sm:$0xff]  ;;  %v4956_v47 = vcombine.low %v7101_v34, %v7122_v10 }
 0x3e7   : > { %4677 = vmatprep.subr.bf16.mxu1 %v4927_v36  ;;  %4640 = vmatprep.subr.bf16.mxu0 %v4941_v33  ;;  %v3917_v43 = vld [vmem:[#allocation4 + $0x1d8] sm:$0xff]  ;;  %v4965_v4 = vcombine.high %v7142_v57, %v7156_v15  ;;  %vm7563_vm11 = vcmask 277504  }
 0x3e8   : > { %v3640_v54 = vsel %vm344_vm3, %v3633_v11, %v3634_v63  ;;  %v3601_v41 = vsel %vm344_vm3, %v3593_v12, %v3594_v49  ;;  %v4951_v27 = vcombine.high %v3917_v43, %v3921_v17  ;;  %v3929_v39 = vld [vmem:[#allocation4 + $0x238] sm:$0xff]  ;;  %vm7565_vm7 = vmmov %vm7563_vm11 }
 0x3e9   : > { %v7184_v55 = vsel %vm7553_vm13, %v6726_v35, %v3640_v54  ;;  %v3602_v9 = vsel %vm7554_vm14, %v3587_v56, %v3601_v41  ;;  %v3669_v52 = vpop.permute.xlu0 %3668  ;;  %v3630_v19 = vpop.permute.xlu1 %3629  ;;  %v4934_v35 = vcombine.low %v3901_v3, %v3905_v25  ;;  %v3925_v46 = vld [vmem:[#allocation4 + $0x218] sm:$0xff] }
 0x3ea   : > { %4678 = vmatpush1.bf16.msra.mxu1 %v4926_v18  ;;  %3610 = vst.msk [vmem:[#allocation4 + $0x298] sm:$0xff] %vm6181_vm10, %v3602_v9  ;;  %v3675_v11 = vrot.slane %v3669_v52, 4  ;;  %v3635_v6 = vrot.slane %v3630_v19, 4  ;;  %4641 = vmatpush1.bf16.msra.mxu0 %v4940_v14  ;;  %v4959_v34 = vcombine.high %v3925_v46, %v3929_v39  ;;  %v4973_v3 = vcombine.high %v7171_v45, %v7184_v55 }
 0x3eb   : > { %4679 = vmatprep.subr.bf16.mxu1 %v4935_v23  ;;  %4642 = vmatprep.subr.bf16.mxu0 %v4949_v61  ;;  %v4958_v54 = vcombine.low %v3925_v46, %v3929_v39  ;;  %v4972_v14 = vcombine.low %v7171_v45, %v7184_v55 }
 0x3ec   : > { %v3681_v13 = vsel %vm344_vm3, %v3674_v42, %v3675_v11  ;;  %v3642_v40 = vsel %vm344_vm3, %v3634_v63, %v3635_v6  ;;  %v4964_v63 = vcombine.low %v7142_v57, %v7156_v15 }
 0x3ed   : > { %v7199_v51 = vsel %vm7555_vm12, %v6920_v44, %v3681_v13  ;;  %v3643_v21 = vsel %vm7556_vm15, %v3628_v50, %v3642_v40  ;;  %v3710_v2 = vpop.permute.xlu0 %3709  ;;  %v3671_v26 = vpop.permute.xlu1 %3670  ;;  %v4942_v44 = vcombine.low %v3909_v20, %v3913_v59  ;;  %v3937_v49 = vld [vmem:[#allocation4 + $0x278] sm:$0xff] }
 0x3ee   : > { %4680 = vmatpush1.bf16.msra.mxu1 %v4934_v35  ;;  %3651 = vst.msk [vmem:[#allocation4 + $0x2b8] sm:$0xff] %vm6181_vm10, %v3643_v21  ;;  %v3716_v42 = vrot.slane %v3710_v2, 4  ;;  %v3676_v56 = vrot.slane %v3671_v26, 4  ;;  %4643 = vmatpush1.bf16.msra.mxu0 %v4948_v38 }
 0x3ef   : > { %4681 = vmatprep.subr.bf16.mxu1 %v4943_v0  ;;  %4644 = vmatprep.subr.bf16.mxu0 %v4957_v31 }
 0x3f0   : > { %v3722_v8 = vsel %vm344_vm3, %v3715_v48, %v3716_v42  ;;  %v3683_v12 = vsel %vm344_vm3, %v3675_v11, %v3676_v56 }
 0x3f1   : > { %v7214_v5 = vsel %vm7557_vm2, %v6763_v24, %v3722_v8  ;;  %v3684_v16 = vsel %vm7558_vm4, %v3669_v52, %v3683_v12  ;;  %v3751_v7 = vpop.permute.xlu0 %3750  ;;  %v3712_v29 = vpop.permute.xlu1 %3711  ;;  %v4950_v24 = vcombine.low %v3917_v43, %v3921_v17  ;;  %vm4741_vm4 = vcmask 850944  }
 0x3f2   : > { %4682 = vmatpush1.bf16.msra.mxu1 %v4942_v44  ;;  %3692 = vst.msk [vmem:[#allocation4 + $0x2d8] sm:$0xff] %vm6181_vm10, %v3684_v16  ;;  %v3757_v48 = vrot.slane %v3751_v7, 4  ;;  %v3717_v58 = vrot.slane %v3712_v29, 4  ;;  %4645 = vmatpush1.bf16.msra.mxu0 %v4956_v47  ;;  %v4981_v6 = vcombine.high %v7199_v51, %v7214_v5  ;;  %v4980_v0 = vcombine.low %v7199_v51, %v7214_v5 }
 0x3f3   : > { %4683 = vmatprep.subr.bf16.mxu1 %v4951_v27  ;;  %4646 = vmatprep.subr.bf16.mxu0 %v4965_v4 }
 0x3f4   : > { %v3763_v50 = vsel %vm344_vm3, %v3756_v53, %v3757_v48  ;;  %v3724_v32 = vsel %vm344_vm3, %v3716_v42, %v3717_v58 }
 0x3f5   : > { %v3764_v10 = vsel %vm7559_vm1, %v6963_v62, %v3763_v50  ;;  %v3725_v18 = vsel %vm7560_vm6, %v3710_v2, %v3724_v32  ;;  %v3792_v36 = vpop.permute.xlu0 %3791  ;;  %v3753_v25 = vpop.permute.xlu1 %3752  ;;  %v3933_v62 = vld [vmem:[#allocation4 + $0x258] sm:$0xff] }
 0x3f6   : > { %4684 = vmatpush1.bf16.msra.mxu1 %v4950_v24  ;;  %3733 = vst.msk [vmem:[#allocation4 + $0x2f8] sm:$0xff] %vm6181_vm10, %v3725_v18  ;;  %v3798_v53 = vrot.slane %v3792_v36, 4  ;;  %v3758_v33 = vrot.slane %v3753_v25, 4  ;;  %4647 = vmatpush1.bf16.msra.mxu0 %v4964_v63  ;;  %v4967_v57 = vcombine.high %v3933_v62, %v3937_v49  ;;  %v3945_v59 = vld [vmem:[#allocation4 + $0x2b8] sm:$0xff]  ;;  %v4966_v61 = vcombine.low %v3933_v62, %v3937_v49 }
 0x3f7   : > { %4685 = vmatprep.subr.bf16.mxu1 %v4959_v34  ;;  %4648 = vmatprep.subr.bf16.mxu0 %v4973_v3 }
 0x3f8   : > { %v3804_v41 = vsel %vm344_vm3, %v3797_v1, %v3798_v53  ;;  %v3765_v23 = vsel %vm344_vm3, %v3757_v48, %v3758_v33 }
 0x3f9   : > { %v3805_v15 = vsel %vm7561_vm5, %v6800_v37, %v3804_v41  ;;  %v3766_v9 = vsel %vm7562_vm9, %v3751_v7, %v3765_v23  ;;  %v3833_v52 = vpop.permute.xlu0 %3832  ;;  %v3794_v19 = vpop.permute.xlu1 %3793  ;;  %v3941_v37 = vld [vmem:[#allocation4 + $0x298] sm:$0xff] }
 0x3fa   : > { %4686 = vmatpush1.bf16.msra.mxu1 %v4958_v54  ;;  %3774 = vst.msk [vmem:[#allocation4 + $0x318] sm:$0xff] %vm6181_vm10, %v3766_v9  ;;  %v3839_v1 = vrot.slane %v3833_v52, 4  ;;  %v3799_v11 = vrot.slane %v3794_v19, 4  ;;  %4649 = vmatpush1.bf16.msra.mxu0 %v4972_v14  ;;  %v4975_v45 = vcombine.high %v3941_v37, %v3945_v59  ;;  %v3949_v21 = vld [vmem:[#allocation4 + $0x2d8] sm:$0xff]  ;;  %v4989_v38 = vcombine.high %v3764_v10, %v3805_v15 }
 0x3fb   : > { %4687 = vmatprep.subr.bf16.mxu1 %v4967_v57  ;;  %4650 = vmatprep.subr.bf16.mxu0 %v4981_v6  ;;  %v4974_v17 = vcombine.low %v3941_v37, %v3945_v59  ;;  %v4988_v56 = vcombine.low %v3764_v10, %v3805_v15 }
 0x3fc   : > { %v3845_v35 = vsel %vm344_vm3, %v3838_v30, %v3839_v1  ;;  %v3806_v20 = vsel %vm344_vm3, %v3798_v53, %v3799_v11 }
 0x3fd   : > { %v3846_v55 = vsel %vm7563_vm11, %v7008_v22, %v3845_v35  ;;  %v3807_v13 = vsel %vm7564_vm0, %v3792_v36, %v3806_v20  ;;  %v3835_v40 = vpop.permute.xlu1 %3834  ;;  %v3953_v2 = vld [vmem:[#allocation4 + $0x2f8] sm:$0xff] }
 0x3fe   : > { %4688 = vmatpush1.bf16.msra.mxu1 %v4966_v61  ;;  %3815 = vst.msk [vmem:[#allocation4 + $0x338] sm:$0xff] %vm6181_vm10, %v3807_v13  ;;  %v3840_v30 = vrot.slane %v3835_v40, 4  ;;  %v4983_v26 = vcombine.high %v3949_v21, %v3953_v2  ;;  %4651 = vmatpush1.bf16.msra.mxu0 %v4980_v0  ;;  %v4997_v51 = vcombine.high %v3846_v55, %v3846_v55 }
 0x3ff   : > { %4689 = vmatprep.subr.bf16.mxu1 %v4975_v45  ;;  %4652 = vmatprep.subr.bf16.mxu0 %v4989_v38  ;;  %v4996_v31 = vcombine.low %v3846_v55, %v3846_v55  ;;  %v4982_v44 = vcombine.low %v3949_v21, %v3953_v2 }
 0x400   : > { %v3847_v22 = vsel %vm344_vm3, %v3839_v1, %v3840_v30 }
 0x401   : > { %v3848_v42 = vsel %vm7565_vm7, %v3833_v52, %v3847_v22  ;;  %v3957_v43 = vld [vmem:[#allocation4 + $0x318] sm:$0xff]  ;;  %v4535_v5 = vsel %vm344_vm3, %v4996_v31, 0 }
 0x402   : > { %4690 = vmatpush1.bf16.msra.mxu1 %v4974_v17  ;;  %3856 = vst.msk [vmem:[#allocation4 + $0x358] sm:$0xff] %vm6181_vm10, %v3848_v42  ;;  %4653 = vmatpush1.bf16.msra.mxu0 %v4988_v56 }
 0x403   : > { %4691 = vmatprep.subr.bf16.mxu1 %v4983_v26  ;;  %5004 = vmatprep.subr.msk.bf16.mxu0 %vm344_vm3, %v4997_v51 }
 0x405   : > { %v3961_v8 = vld [vmem:[#allocation4 + $0x338] sm:$0xff] }
 0x406   : > { %4692 = vmatpush1.bf16.msra.mxu1 %v4982_v44  ;;  %v4990_v12 = vcombine.low %v3957_v43, %v3961_v8  ;;  %v4991_v27 = vcombine.high %v3957_v43, %v3961_v8  ;;  %4655 = vmatpush1.bf16.msra.mxu0 %v4535_v5 }
 0x408   : > { %4693 = vmatprep.subr.bf16.mxu1 %v4991_v27 }
 0x409   : > { %v3965_v28 = vld [vmem:[#allocation4 + $0x358] sm:$0xff]  ;;  %4661 = vmatmul.mubr.bf16.vlgmr.msra.gmra.mrb[12].mxu0 %v7044_v60 }
 0x40a   : > { %4694 = vmatpush1.bf16.msra.mxu1 %v4990_v12  ;;  %v4999_v16 = vcombine.high %v3965_v28, %v3965_v28  ;;  %v4998_v7 = vcombine.low %v3965_v28, %v3965_v28  ;;  %v3970_v47 = vpop.permute.xlu0 %3969 }
 0x40c   : > { %5006 = vmatprep.subr.msk.bf16.mxu1 %vm344_vm3, %v4999_v16  ;;  %v4541_v29 = vsel %vm344_vm3, %v4998_v7, 0 }
 0x40e   : > { %4696 = vmatpush1.bf16.msra.mxu1 %v4541_v29 }
 0x411   : > { %4702 = vmatmul.mubr.bf16.vlgmr.msra.gmra.mrb[12].mxu1 %v7044_v60 }
 0x4a4   : > { %v4580_v39 = vpop.f32.mrb[8].mxu0 }
 0x4a5   : > { %v4581_v48 = vadd.f32 %v4580_v39, %v3970_v47  ;;  %v4582_v4 = vpop.f32.mrb[9].mxu0 }
 0x4a6   : > { %v4621_v58 = vpop.f32.mrb[8].mxu1  ;;  %v4583_v46 = vadd.f32 %v4582_v4, %v3970_v47  ;;  %v4584_v32 = vpop.f32.mrb[10].mxu0 }
 0x4a7   : > { %v4622_v24 = vadd.f32 %v4621_v58, %v3970_v47  ;;  %v4623_v50 = vpop.f32.mrb[9].mxu1  ;;  %vm4710_vm3 = vcmp.gt.f32.partialorder %v4581_v48, 0.0  ;;  %v4718_v34 = vmul.f32 0.2, %v4581_v48  ;;  %v4585_v18 = vpop.f32.mrb[11].mxu0 }
 0x4a8   : > { %v4624_v60 = vadd.f32 %v4623_v50, %v3970_v47  ;;  %v4625_v10 = vpop.f32.mrb[10].mxu1  ;;  %vm4711_vm8 = vcmp.gt.f32.partialorder %v4583_v46, 0.0  ;;  %v4719_v25 = vmul.f32 0.2, %v4583_v46 }
 0x4a9   : > { %vm4712_vm10 = vcmp.gt.f32.partialorder %v4622_v24, 0.0  ;;  %v4720_v36 = vmul.f32 0.2, %v4622_v24  ;;  %v4726_v63 = vsel %vm4710_vm3, %v4581_v48, %v4718_v34  ;;  %v4626_v53 = vpop.f32.mrb[11].mxu1 }
 0x4aa   : > { %vm4713_vm13 = vcmp.gt.f32.partialorder %v4624_v60, 0.0  ;;  %v4721_v49 = vmul.f32 0.2, %v4624_v60  ;;  %4734 = vst [vmem:[%s7274_s9] sm:$0xff] %v4726_v63  ;;  %v4727_v3 = vsel %vm4711_vm8, %v4583_v46, %v4719_v25 }
 0x4ab   : > { %v4728_v33 = vsel %vm4712_vm10, %v4622_v24, %v4720_v36  ;;  %4735 = vst [vmem:[%s7274_s9 + $0x8] sm:$0xff] %v4727_v3 }
 0x4ac   : > { %4736 = vst [vmem:[%s7274_s9 + $0x10] sm:$0xff] %v4728_v33  ;;  %v4729_v54 = vsel %vm4713_vm13, %v4624_v60, %v4721_v49 }
 0x4ad   : > { %4737 = vst [vmem:[%s7274_s9 + $0x18] sm:$0xff] %v4729_v54 }
 0x4dc   : > { %v4662_v62 = vpop.f32.mrb[12].mxu0 }
 0x4dd   : > { %v4663_v41 = vadd.f32 %v4662_v62, %v3970_v47  ;;  %v4664_v23 = vpop.f32.mrb[13].mxu0 }
 0x4de   : > { %v4665_v57 = vadd.f32 %v4664_v23, %v3970_v47  ;;  %v4666_v15 = vpop.f32.mrb[14].mxu0 }
 0x4df   : > { %vm4714_vm14 = vcmp.gt.f32.partialorder %v4663_v41, 0.0  ;;  %v4722_v9 = vmul.f32 0.2, %v4663_v41  ;;  %v4667_v52 = vpop.f32.mrb[15].mxu0 }
 0x4e0   : > { %vm4715_vm12 = vcmp.gt.f32.partialorder %v4665_v57, 0.0  ;;  %v4723_v19 = vmul.f32 0.2, %v4665_v57 }
 0x4e1   : > { %v4730_v14 = vsel %vm4714_vm14, %v4663_v41, %v4722_v9 }
 0x4e2   : > { %4738 = vst [vmem:[%s7274_s9 + $0x20] sm:$0xff] %v4730_v14  ;;  %v4731_v1 = vsel %vm4715_vm12, %v4665_v57, %v4723_v19 }
 0x4e3   : > { %4739 = vst [vmem:[%s7274_s9 + $0x28] sm:$0xff] %v4731_v1 }
 0x4e4   : > { %v4703_v59 = vpop.f32.mrb[12].mxu1 }
 0x4e5   : > { %v4704_v11 = vadd.f32 %v4703_v59, %v3970_v47  ;;  %v4705_v6 = vpop.f32.mrb[13].mxu1 }
 0x4e6   : > { %v4706_v61 = vadd.f32 %v4705_v6, %v3970_v47  ;;  %v4707_v37 = vpop.f32.mrb[14].mxu1 }
 0x4e7   : > { %vm4716_vm15 = vcmp.gt.f32.partialorder %v4704_v11, 0.0  ;;  %v4724_v35 = vmul.f32 0.2, %v4704_v11  ;;  %v4708_v20 = vpop.f32.mrb[15].mxu1 }
 0x4e8   : > { %vm4717_vm2 = vcmp.gt.f32.partialorder %v4706_v61, 0.0  ;;  %v4725_v45 = vmul.f32 0.2, %v4706_v61 }
 0x4e9   : > { %v4732_v55 = vsel %vm4716_vm15, %v4704_v11, %v4724_v35 }
 0x4ea   : > { %4740 = vst [vmem:[%s7274_s9 + $0x30] sm:$0xff] %v4732_v55  ;;  %v4733_v13 = vsel %vm4717_vm2, %v4706_v61, %v4725_v45 }
 0x4eb   : > { %4742 = vst.msk [vmem:[%s7274_s9 + $0x38] sm:$0xff] %vm4741_vm4, %v4733_v13 }
 0x4ec PF: > { %s16_s21 = sadd.s32 1, %s5084_s21  }
 0x4ed   : > { %p13_p4 = scmp.ge.s32.totalorder %s16_s21, 4  }
 0x4ef   :  { %15 = sbr.rel (!%p13_p4) target bundleno = 1 (0x1), region = 74 }

</bundles_post_ra>
